<compile_context>
chip_gen: v5e
topology: v5e:2x2
jax: 0.10.0
libtpu: 0.0.40
codegen_flags: <defaults>
</compile_context>

<pallas_src>
import math
import functools

import jax
import jax.numpy as jnp
from jax.experimental import pallas as pl
from jax.experimental.pallas import tpu as pltpu

LANE = 128  # TPU vreg lane width


def _round_up(x, m):
    return ((x + m - 1) // m) * m


# ----------------------------------------------------------------------------
# in-kernel helpers (traced inside Pallas kernels)
# ----------------------------------------------------------------------------

def _bf16(x):
    return x.astype(jnp.bfloat16)


def _gelu_tanh(x):
    # TODO(synk): HF BERT default is exact erf-GELU; tanh approximation used here.
    c = math.sqrt(2.0 / math.pi)
    return 0.5 * x * (1.0 + jnp.tanh(c * (x + 0.044715 * x * x * x)))


def _layernorm(x, g, b):
    mu = jnp.mean(x, axis=-1, keepdims=True)
    var = jnp.mean(jnp.square(x - mu), axis=-1, keepdims=True)
    return (x - mu) * jax.lax.rsqrt(var + 1e-12) * g + b


_TRANS_B = (((1,), (1,)), ((), ()))   # contract last dims: A @ B^T on the MXU


# ----------------------------------------------------------------------------
# fused embedding gather + add + LayerNorm
# ----------------------------------------------------------------------------

def _embed_kernel(wid_ref, tid_ref, pid_ref, wemb_ref, temb_ref, pemb_ref,
                  g_ref, b_ref, o_ref):
    BS = o_ref.shape[0]
    V = wemb_ref.shape[0]
    T = temb_ref.shape[0]
    P = pemb_ref.shape[0]

    # One-hot gathers on the MXU (exact: 0/1 selectors against f32 tables).
    w_oh = (jax.lax.broadcasted_iota(jnp.int32, (BS, V), 1)
            == wid_ref[...]).astype(jnp.float32)
    t_oh = (jax.lax.broadcasted_iota(jnp.int32, (BS, T), 1)
            == tid_ref[...]).astype(jnp.float32)
    p_oh = (jax.lax.broadcasted_iota(jnp.int32, (BS, P), 1)
            == pid_ref[...]).astype(jnp.float32)

    x = (jnp.dot(w_oh, wemb_ref[...], preferred_element_type=jnp.float32)
         + jnp.dot(t_oh, temb_ref[...], preferred_element_type=jnp.float32)
         + jnp.dot(p_oh, pemb_ref[...], preferred_element_type=jnp.float32))
    o_ref[...] = _layernorm(x, g_ref[...], b_ref[...])


def embed_gather_layernorm(word_ids, type_ids, pos_ids, kp):
    """word/type/pos ids: [B*S, 1] int32 -> embedded+LayerNorm'd [B*S, H] f32."""
    BS = word_ids.shape[0]
    H = kp["word_emb"].shape[1]
    return pl.pallas_call(
        _embed_kernel,
        out_shape=jax.ShapeDtypeStruct((BS, H), jnp.float32),
    )(word_ids, type_ids, pos_ids,
      kp["word_emb"], kp["type_emb"], kp["pos_emb"],
      kp["emb_ln_g"], kp["emb_ln_b"])


# ----------------------------------------------------------------------------
# one fused BERT encoder layer (single invocation, flattened rows)
# ----------------------------------------------------------------------------

def _encoder_layer_kernel(x_ref, mask_ref, wqkv_ref, bqkv_ref, wo_ref,
                          wi_ref, wo2_ref, vec_ref, o_ref, ctx_ref,
                          *, batch, seq, heads, d_head, d_pad, hidden, inter):
    H, I, Dp = hidden, inter, d_pad

    x = x_ref[...]                                   # [B*S, H] f32

    # small vector operands, packed into one [8, max(H,I)] block (one DMA)
    bo = vec_ref[0:1, :H]
    bi = vec_ref[1:2, :I]
    bo2 = vec_ref[2:3, :H]
    ln1g = vec_ref[3:4, :H]
    ln1b = vec_ref[4:5, :H]
    ln2g = vec_ref[5:6, :H]
    ln2b = vec_ref[6:7, :H]

    # fused QKV projection over the flattened rows; head columns are padded to
    # 128-lane boundaries so the per-head slices below are lane-aligned.
    qkv = jnp.dot(_bf16(x), wqkv_ref[...],
                  preferred_element_type=jnp.float32) + bqkv_ref[...]   # [B*S, 3*heads*Dp]

    scale = 1.0 / math.sqrt(d_head)
    for b in range(batch):                           # static unroll (tiny B)
        r0 = b * seq
        mask = mask_ref[b]                           # [1, S] additive mask
        for h in range(heads):                       # static unroll (no grid steps)
            q = qkv[r0:r0 + seq, h * Dp:(h + 1) * Dp]
            k = qkv[r0:r0 + seq, (heads + h) * Dp:(heads + h + 1) * Dp]
            v = qkv[r0:r0 + seq, (2 * heads + h) * Dp:(2 * heads + h + 1) * Dp]
            s = jax.lax.dot_general(_bf16(q), _bf16(k), _TRANS_B,
                                    preferred_element_type=jnp.float32) * scale
            s = s + mask
            s = s - jnp.max(s, axis=-1, keepdims=True)
            p = jnp.exp(s)
            p = p * pl.reciprocal(jnp.sum(p, axis=-1, keepdims=True), approx=True)
            ctx = jnp.dot(_bf16(p), _bf16(v), preferred_element_type=jnp.float32)
            # stage merged-head context into the lane-aligned VMEM scratch
            ctx_ref[r0:r0 + seq, h * Dp:(h + 1) * Dp] = ctx

    # ONE output projection over the merged heads (full-K MXU contraction)
    attn = jnp.dot(_bf16(ctx_ref[...]), wo_ref[...],
                   preferred_element_type=jnp.float32) + bo

    # residual + LayerNorm 1 (f32 math)
    h1 = _layernorm(x + attn, ln1g, ln1b)

    # fused FFN (GELU) + residual + LayerNorm 2
    ff = _gelu_tanh(jnp.dot(_bf16(h1), wi_ref[...],
                            preferred_element_type=jnp.float32) + bi)
    ff = jnp.dot(_bf16(ff), wo2_ref[...],
                 preferred_element_type=jnp.float32) + bo2
    o_ref[...] = _layernorm(h1 + ff, ln2g, ln2b)


def encoder_layer(x, add_mask, lp, cfg):
    """x: [B*S, H] f32; add_mask: [B, 1, S] additive mask; lp: packed layer params."""
    BS, H = x.shape
    B = add_mask.shape[0]
    S = BS // B
    heads = cfg.heads
    D = H // heads
    Dp = lp["wo"].shape[0] // heads
    I = lp["wi"].shape[1]
    return pl.pallas_call(
        functools.partial(_encoder_layer_kernel, batch=B, seq=S, heads=heads,
                          d_head=D, d_pad=Dp, hidden=H, inter=I),
        out_shape=jax.ShapeDtypeStruct((BS, H), jnp.float32),
        scratch_shapes=[pltpu.VMEM((BS, heads * Dp), jnp.float32)],
    )(x, add_mask, lp["wqkv"], lp["bqkv"], lp["wo"], lp["wi"], lp["wo2"], lp["vec"])


# ----------------------------------------------------------------------------
# fused pooler + intent head + slot head (lane-dense padded outputs)
# ----------------------------------------------------------------------------

def _heads_kernel(x_ref, poolw_ref, poolb_ref, intw_ref, intb_ref,
                  slotw_ref, slotb_ref, slots_ref, intent_ref, *, batch, seq):
    x = x_ref[...]                                   # [B*S, H] f32

    # slot head: ONE [B*S,H] x [H, 128] matmul; 128-lane zero-padded columns
    # give an unmasked lane-dense store (un-padding happens in the wrapper).
    slots_ref[...] = (jnp.dot(_bf16(x), slotw_ref[...],
                              preferred_element_type=jnp.float32) + slotb_ref[...])

    # pooler: tanh(W * x[:, 0]) on the CLS rows, then intent head
    cls = jnp.concatenate([x[b * seq:b * seq + 1, :] for b in range(batch)], axis=0)
    pooled = jnp.tanh(jnp.dot(_bf16(cls), poolw_ref[...],
                              preferred_element_type=jnp.float32) + poolb_ref[...])
    intent_ref[...] = (jnp.dot(_bf16(pooled), intw_ref[...],
                               preferred_element_type=jnp.float32) + intb_ref[...])


def joint_heads(x, kp, batch, seq):
    """x: [B*S, H] -> (slots_pad [B*S, 128], intent_pad [B, 128])."""
    BS, H = x.shape
    slot_pad = kp["slot_w"].shape[1]
    int_pad = kp["int_w"].shape[1]
    return pl.pallas_call(
        functools.partial(_heads_kernel, batch=batch, seq=seq),
        out_shape=(jax.ShapeDtypeStruct((BS, slot_pad), jnp.float32),
                   jax.ShapeDtypeStruct((batch, int_pad), jnp.float32)),
    )(x, kp["pool_w"], kp["pool_b"], kp["int_w"], kp["int_b"],
      kp["slot_w"], kp["slot_b"])


# ----------------------------------------------------------------------------
# Synthetic (deterministic) parameters
# ----------------------------------------------------------------------------

class Config:
    vocab = 100
    type_vocab = 2
    max_pos = 16
    hidden = 32
    heads = 4
    layers = 2
    intermediate = 64
    out_slot = 10
    out_int = 5


def init_params(cfg, key):
    def nrm(k, shape, std=0.02):
        return std * jax.random.normal(k, shape, jnp.float32)

    keys = iter(jax.random.split(key, 200))
    H, I = cfg.hidden, cfg.intermediate
    p = {
        "word_emb": nrm(next(keys), (cfg.vocab, H)),
        "pos_emb": nrm(next(keys), (cfg.max_pos, H)),
        "type_emb": nrm(next(keys), (cfg.type_vocab, H)),
        "emb_ln_g": jnp.ones((H,), jnp.float32),
        "emb_ln_b": jnp.zeros((H,), jnp.float32),
        "layers": [],
        "pool_w": nrm(next(keys), (H, H)),
        "pool_b": jnp.zeros((H,), jnp.float32),
        "slot_w": nrm(next(keys), (H, cfg.out_slot)),
        "slot_b": jnp.zeros((cfg.out_slot,), jnp.float32),
        "int_w": nrm(next(keys), (H, cfg.out_int)),
        "int_b": jnp.zeros((cfg.out_int,), jnp.float32),
    }
    for _ in range(cfg.layers):
        p["layers"].append({
            "wq": nrm(next(keys), (H, H)), "bq": jnp.zeros((H,), jnp.float32),
            "wk": nrm(next(keys), (H, H)), "bk": jnp.zeros((H,), jnp.float32),
            "wv": nrm(next(keys), (H, H)), "bv": jnp.zeros((H,), jnp.float32),
            "wo": nrm(next(keys), (H, H)), "bo": jnp.zeros((H,), jnp.float32),
            "ln1_g": jnp.ones((H,), jnp.float32), "ln1_b": jnp.zeros((H,), jnp.float32),
            "wi": nrm(next(keys), (H, I)), "bi": jnp.zeros((I,), jnp.float32),
            "wo2": nrm(next(keys), (I, H)), "bo2": jnp.zeros((H,), jnp.float32),
            "ln2_g": jnp.ones((H,), jnp.float32), "ln2_b": jnp.zeros((H,), jnp.float32),
        })
    return p


def prepare_kernel_params(params, cfg):
    """Repack params for the fused kernels: head-lane-padded fused QKV, padded
    (zero-row) output projection, bf16 MXU weights, 128-lane-padded slot/intent
    heads, and the small per-layer vector operands packed into one block."""
    H, I, heads = cfg.hidden, cfg.intermediate, cfg.heads
    D = H // heads
    Dp = _round_up(D, LANE)              # per-head lane-aligned column width
    W = max(H, I)
    slot_pad = _round_up(cfg.out_slot, LANE)
    int_pad = _round_up(cfg.out_int, LANE)
    bf16 = jnp.bfloat16

    kp = {
        "word_emb": params["word_emb"],
        "type_emb": params["type_emb"],
        "pos_emb": params["pos_emb"],
        "emb_ln_g": params["emb_ln_g"].reshape(1, H),
        "emb_ln_b": params["emb_ln_b"].reshape(1, H),
        "pool_w": params["pool_w"].astype(bf16),
        "pool_b": params["pool_b"].reshape(1, H),
        "int_w": jnp.zeros((H, int_pad), jnp.float32)
                   .at[:, :cfg.out_int].set(params["int_w"]).astype(bf16),
        "int_b": jnp.zeros((1, int_pad), jnp.float32)
                   .at[0, :cfg.out_int].set(params["int_b"]),
        "slot_w": jnp.zeros((H, slot_pad), jnp.float32)
                    .at[:, :cfg.out_slot].set(params["slot_w"]).astype(bf16),
        "slot_b": jnp.zeros((1, slot_pad), jnp.float32)
                    .at[0, :cfg.out_slot].set(params["slot_b"]),
        "layers": [],
    }

    for l in params["layers"]:
        wqkv = jnp.zeros((H, 3 * heads * Dp), jnp.float32)
        bqkv = jnp.zeros((1, 3 * heads * Dp), jnp.float32)
        wo = jnp.zeros((heads * Dp, H), jnp.float32)
        for h in range(heads):
            for j, (wn, bn) in enumerate((("wq", "bq"), ("wk", "bk"), ("wv", "bv"))):
                c0 = (j * heads + h) * Dp
                wqkv = wqkv.at[:, c0:c0 + D].set(l[wn][:, h * D:(h + 1) * D])
                bqkv = bqkv.at[0, c0:c0 + D].set(l[bn][h * D:(h + 1) * D])
            wo = wo.at[h * Dp:h * Dp + D, :].set(l["wo"][h * D:(h + 1) * D, :])

        vec = jnp.zeros((8, W), jnp.float32)
        vec = vec.at[0, :H].set(l["bo"])
        vec = vec.at[1, :I].set(l["bi"])
        vec = vec.at[2, :H].set(l["bo2"])
        vec = vec.at[3, :H].set(l["ln1_g"])
        vec = vec.at[4, :H].set(l["ln1_b"])
        vec = vec.at[5, :H].set(l["ln2_g"])
        vec = vec.at[6, :H].set(l["ln2_b"])

        kp["layers"].append({
            "wqkv": wqkv.astype(bf16),
            "bqkv": bqkv,
            "wo": wo.astype(bf16),
            "wi": l["wi"].astype(bf16),
            "wo2": l["wo2"].astype(bf16),
            "vec": vec,
        })
    return kp


# ----------------------------------------------------------------------------
# JointBERT forward
# ----------------------------------------------------------------------------

def joint_bert_forward(kparams, cfg, utterance, attentions, token_type_ids):
    B, S = utterance.shape
    BS = B * S

    word_ids = utterance.reshape(BS, 1).astype(jnp.int32)
    type_ids = token_type_ids.reshape(BS, 1).astype(jnp.int32)
    pos_ids = jnp.tile(jnp.arange(S, dtype=jnp.int32), B).reshape(BS, 1)

    # fused embedding gather + add + LayerNorm (one [B*S, H] HBM write)
    x = embed_gather_layernorm(word_ids, type_ids, pos_ids, kparams)

    # additive attention mask (HF convention: 0 attend, -10000 padding)
    add_mask = ((1.0 - attentions.astype(jnp.float32)) * -10000.0).reshape(B, 1, S)

    # fused transformer encoder layers (one pallas_call each, no grid)
    for lp in kparams["layers"]:
        x = encoder_layer(x, add_mask, lp, cfg)

    # fused pooler + intent head + slot head (lane-dense padded outputs)
    slots_pad, intent_pad = joint_heads(x, kparams, B, S)

    # wrapper-side layout plumbing: un-pad + permute (matches torch .permute(0,2,1))
    slots = slots_pad[:, :cfg.out_slot].reshape(B, S, cfg.out_slot).transpose(0, 2, 1)
    intent = intent_pad[:, :cfg.out_int]
    return slots, intent


# ----------------------------------------------------------------------------
# main
# ----------------------------------------------------------------------------

if __name__ == "__main__":
    cfg = Config()
    B, S = 2, 8

    key = jax.random.PRNGKey(0)
    k_param, k_ids = jax.random.split(key)

    params = init_params(cfg, k_param)
    kparams = prepare_kernel_params(params, cfg)

    utterance = jax.random.randint(k_ids, (B, S), 0, cfg.vocab, jnp.int32)
    # second example padded on last 3 tokens
    attentions = jnp.array([[1, 1, 1, 1, 1, 1, 1, 1],
                            [1, 1, 1, 1, 1, 0, 0, 0]], jnp.int32)
    token_type_ids = jnp.zeros((B, S), jnp.int32)

    fwd = jax.jit(functools.partial(joint_bert_forward, kparams, cfg))
    slots, intent = fwd(utterance, attentions, token_type_ids)
    jax.block_until_ready((slots, intent))

    assert slots.shape == (B, cfg.out_slot, S), slots.shape
    assert intent.shape == (B, cfg.out_int), intent.shape
    assert jnp.all(jnp.isfinite(slots)) and jnp.all(jnp.isfinite(intent))

    print("KERNEL_OK")
</pallas_src>

<mosaic_0001>
module attributes {stable_mosaic.version = 11 : i64} {
  func.func @_embed_kernel(%arg0: memref<16x1xi32, #tpu.memory_space<vmem>>, %arg1: memref<16x1xi32, #tpu.memory_space<vmem>>, %arg2: memref<16x1xi32, #tpu.memory_space<vmem>>, %arg3: memref<100x32xf32, #tpu.memory_space<vmem>>, %arg4: memref<2x32xf32, #tpu.memory_space<vmem>>, %arg5: memref<16x32xf32, #tpu.memory_space<vmem>>, %arg6: memref<1x32xf32, #tpu.memory_space<vmem>>, %arg7: memref<1x32xf32, #tpu.memory_space<vmem>>, %arg8: memref<16x32xf32, #tpu.memory_space<vmem>>) attributes {dimension_semantics = [], scalar_prefetch = 0 : i64, scratch_operands = 0 : i64, tpu.core_type = #tpu.core_type<tc>} {
    %0 = tpu.iota {dimensions = array<i32: 1>} : vector<16x100xi32>
    %c0 = arith.constant 0 : index
    %c0_0 = arith.constant 0 : index
    %1 = vector.load %arg0[%c0, %c0_0] : memref<16x1xi32, #tpu.memory_space<vmem>>, vector<16x1xi32>
    %2 = vector.broadcast %1 : vector<16x1xi32> to vector<16x100xi32>
    %3 = arith.cmpi eq, %0, %2 : vector<16x100xi32>
    %4 = arith.extui %3 : vector<16x100xi1> to vector<16x100xi32>
    %5 = arith.sitofp %4 : vector<16x100xi32> to vector<16x100xf32>
    %6 = tpu.iota {dimensions = array<i32: 1>} : vector<16x2xi32>
    %c0_1 = arith.constant 0 : index
    %c0_2 = arith.constant 0 : index
    %7 = vector.load %arg1[%c0_1, %c0_2] : memref<16x1xi32, #tpu.memory_space<vmem>>, vector<16x1xi32>
    %8 = vector.broadcast %7 : vector<16x1xi32> to vector<16x2xi32>
    %9 = arith.cmpi eq, %6, %8 : vector<16x2xi32>
    %10 = arith.extui %9 : vector<16x2xi1> to vector<16x2xi32>
    %11 = arith.sitofp %10 : vector<16x2xi32> to vector<16x2xf32>
    %12 = tpu.iota {dimensions = array<i32: 1>} : vector<16x16xi32>
    %c0_3 = arith.constant 0 : index
    %c0_4 = arith.constant 0 : index
    %13 = vector.load %arg2[%c0_3, %c0_4] : memref<16x1xi32, #tpu.memory_space<vmem>>, vector<16x1xi32>
    %14 = vector.broadcast %13 : vector<16x1xi32> to vector<16x16xi32>
    %15 = arith.cmpi eq, %12, %14 : vector<16x16xi32>
    %16 = arith.extui %15 : vector<16x16xi1> to vector<16x16xi32>
    %17 = arith.sitofp %16 : vector<16x16xi32> to vector<16x16xf32>
    %c0_5 = arith.constant 0 : index
    %c0_6 = arith.constant 0 : index
    %18 = vector.load %arg3[%c0_5, %c0_6] : memref<100x32xf32, #tpu.memory_space<vmem>>, vector<100x32xf32>
    %cst = arith.constant dense<0.000000e+00> : vector<16x32xf32>
    %19 = tpu.matmul %5, %18, %cst {dimension_numbers = #tpu.dot_dimension_numbers<[1], [0], [0], [1], [0, 0, 1, 1], [], []>} : vector<16x100xf32>, vector<100x32xf32>, vector<16x32xf32> -> vector<16x32xf32>
    %c0_7 = arith.constant 0 : index
    %c0_8 = arith.constant 0 : index
    %20 = vector.load %arg4[%c0_7, %c0_8] : memref<2x32xf32, #tpu.memory_space<vmem>>, vector<2x32xf32>
    %cst_9 = arith.constant dense<0.000000e+00> : vector<16x32xf32>
    %21 = tpu.matmul %11, %20, %cst_9 {dimension_numbers = #tpu.dot_dimension_numbers<[1], [0], [0], [1], [0, 0, 1, 1], [], []>} : vector<16x2xf32>, vector<2x32xf32>, vector<16x32xf32> -> vector<16x32xf32>
    %22 = arith.addf %19, %21 : vector<16x32xf32>
    %c0_10 = arith.constant 0 : index
    %c0_11 = arith.constant 0 : index
    %23 = vector.load %arg5[%c0_10, %c0_11] : memref<16x32xf32, #tpu.memory_space<vmem>>, vector<16x32xf32>
    %cst_12 = arith.constant dense<0.000000e+00> : vector<16x32xf32>
    %24 = tpu.matmul %17, %23, %cst_12 {dimension_numbers = #tpu.dot_dimension_numbers<[1], [0], [0], [1], [0, 0, 1, 1], [], []>} : vector<16x16xf32>, vector<16x32xf32>, vector<16x32xf32> -> vector<16x32xf32>
    %25 = arith.addf %22, %24 : vector<16x32xf32>
    %c0_13 = arith.constant 0 : index
    %c0_14 = arith.constant 0 : index
    %26 = vector.load %arg6[%c0_13, %c0_14] : memref<1x32xf32, #tpu.memory_space<vmem>>, vector<1x32xf32>
    %c0_15 = arith.constant 0 : index
    %c0_16 = arith.constant 0 : index
    %27 = vector.load %arg7[%c0_15, %c0_16] : memref<1x32xf32, #tpu.memory_space<vmem>>, vector<1x32xf32>
    %cst_17 = arith.constant dense<0.000000e+00> : vector<16xf32>
    %28 = vector.multi_reduction <add>, %25, %cst_17 [1] : vector<16x32xf32> to vector<16xf32>
    %29 = vector.shape_cast %28 : vector<16xf32> to vector<16x1xf32>
    %cst_18 = arith.constant 3.200000e+01 : f32
    %30 = vector.broadcast %cst_18 : f32 to vector<16x1xf32>
    %31 = arith.divf %29, %30 : vector<16x1xf32>
    %32 = vector.broadcast %31 : vector<16x1xf32> to vector<16x32xf32>
    %33 = arith.subf %25, %32 : vector<16x32xf32>
    %34 = arith.mulf %33, %33 : vector<16x32xf32>
    %cst_19 = arith.constant dense<0.000000e+00> : vector<16xf32>
    %35 = vector.multi_reduction <add>, %34, %cst_19 [1] : vector<16x32xf32> to vector<16xf32>
    %36 = vector.shape_cast %35 : vector<16xf32> to vector<16x1xf32>
    %cst_20 = arith.constant 3.200000e+01 : f32
    %37 = vector.broadcast %cst_20 : f32 to vector<16x1xf32>
    %38 = arith.divf %36, %37 : vector<16x1xf32>
    %39 = vector.broadcast %31 : vector<16x1xf32> to vector<16x32xf32>
    %40 = arith.subf %25, %39 : vector<16x32xf32>
    %cst_21 = arith.constant 9.99999996E-13 : f32
    %41 = vector.broadcast %cst_21 : f32 to vector<16x1xf32>
    %42 = arith.addf %38, %41 : vector<16x1xf32>
    %43 = math.rsqrt %42 : vector<16x1xf32>
    %44 = vector.broadcast %43 : vector<16x1xf32> to vector<16x32xf32>
    %45 = arith.mulf %40, %44 : vector<16x32xf32>
    %46 = vector.broadcast %26 : vector<1x32xf32> to vector<16x32xf32>
    %47 = arith.mulf %45, %46 : vector<16x32xf32>
    %48 = vector.broadcast %27 : vector<1x32xf32> to vector<16x32xf32>
    %49 = arith.addf %47, %48 : vector<16x32xf32>
    %c0_22 = arith.constant 0 : index
    %c0_23 = arith.constant 0 : index
    %50 = vector.load %arg8[%c0_22, %c0_23] : memref<16x32xf32, #tpu.memory_space<vmem>>, vector<16x32xf32>
    tpu.vector_store %arg8[%c0_22, %c0_23], %49 {strides = array<i32>} : memref<16x32xf32, #tpu.memory_space<vmem>>, vector<16x32xf32>,
    return
  }
}

module attributes {stable_mosaic.version = 11 : i64} {
  func.func @_encoder_layer_kernel(%arg0: memref<16x32xf32, #tpu.memory_space<vmem>>, %arg1: memref<2x1x8xf32, #tpu.memory_space<vmem>>, %arg2: memref<32x1536xbf16, #tpu.memory_space<vmem>>, %arg3: memref<1x1536xf32, #tpu.memory_space<vmem>>, %arg4: memref<512x32xbf16, #tpu.memory_space<vmem>>, %arg5: memref<32x64xbf16, #tpu.memory_space<vmem>>, %arg6: memref<64x32xbf16, #tpu.memory_space<vmem>>, %arg7: memref<8x64xf32, #tpu.memory_space<vmem>>, %arg8: memref<16x32xf32, #tpu.memory_space<vmem>>, %arg9: memref<16x512xf32, #tpu.memory_space<vmem>>) attributes {dimension_semantics = [], scalar_prefetch = 0 : i64, scratch_operands = 1 : i64, tpu.core_type = #tpu.core_type<tc>} {
    %c0 = arith.constant 0 : index
    %c0_0 = arith.constant 0 : index
    %0 = vector.load %arg0[%c0, %c0_0] : memref<16x32xf32, #tpu.memory_space<vmem>>, vector<16x32xf32>
    %c0_1 = arith.constant 0 : index
    %c0_2 = arith.constant 0 : index
    %1 = vector.load %arg7[%c0_1, %c0_2] : memref<8x64xf32, #tpu.memory_space<vmem>>, vector<1x32xf32>
    %c1 = arith.constant 1 : index
    %c0_3 = arith.constant 0 : index
    %2 = vector.load %arg7[%c1, %c0_3] : memref<8x64xf32, #tpu.memory_space<vmem>>, vector<1x64xf32>
    %c2 = arith.constant 2 : index
    %c0_4 = arith.constant 0 : index
    %3 = vector.load %arg7[%c2, %c0_4] : memref<8x64xf32, #tpu.memory_space<vmem>>, vector<1x32xf32>
    %c3 = arith.constant 3 : index
    %c0_5 = arith.constant 0 : index
    %4 = vector.load %arg7[%c3, %c0_5] : memref<8x64xf32, #tpu.memory_space<vmem>>, vector<1x32xf32>
    %c4 = arith.constant 4 : index
    %c0_6 = arith.constant 0 : index
    %5 = vector.load %arg7[%c4, %c0_6] : memref<8x64xf32, #tpu.memory_space<vmem>>, vector<1x32xf32>
    %c5 = arith.constant 5 : index
    %c0_7 = arith.constant 0 : index
    %6 = vector.load %arg7[%c5, %c0_7] : memref<8x64xf32, #tpu.memory_space<vmem>>, vector<1x32xf32>
    %c6 = arith.constant 6 : index
    %c0_8 = arith.constant 0 : index
    %7 = vector.load %arg7[%c6, %c0_8] : memref<8x64xf32, #tpu.memory_space<vmem>>, vector<1x32xf32>
    %8 = arith.truncf %0 : vector<16x32xf32> to vector<16x32xbf16>
    %c0_9 = arith.constant 0 : index
    %c0_10 = arith.constant 0 : index
    %9 = vector.load %arg2[%c0_9, %c0_10] : memref<32x1536xbf16, #tpu.memory_space<vmem>>, vector<32x1536xbf16>
    %cst = arith.constant dense<0.000000e+00> : vector<16x1536xf32>
    %10 = tpu.matmul %8, %9, %cst {dimension_numbers = #tpu.dot_dimension_numbers<[1], [0], [0], [1], [0, 0, 1, 1], [], []>} : vector<16x32xbf16>, vector<32x1536xbf16>, vector<16x1536xf32> -> vector<16x1536xf32>
    %c0_11 = arith.constant 0 : index
    %c0_12 = arith.constant 0 : index
    %11 = vector.load %arg3[%c0_11, %c0_12] : memref<1x1536xf32, #tpu.memory_space<vmem>>, vector<1x1536xf32>
    %12 = vector.broadcast %11 : vector<1x1536xf32> to vector<16x1536xf32>
    %13 = arith.addf %10, %12 : vector<16x1536xf32>
    %c0_13 = arith.constant 0 : index
    %c0_14 = arith.constant 0 : index
    %c0_15 = arith.constant 0 : index
    %14 = vector.load %arg1[%c0_13, %c0_14, %c0_15] : memref<2x1x8xf32, #tpu.memory_space<vmem>>, vector<1x1x8xf32>
    %15 = vector.shape_cast %14 : vector<1x1x8xf32> to vector<1x8xf32>
    %16 = vector.extract_strided_slice %13 {offsets = [0, 0], sizes = [8, 128], strides = [1, 1]} : vector<16x1536xf32> to vector<8x128xf32>
    %17 = vector.extract_strided_slice %13 {offsets = [0, 512], sizes = [8, 128], strides = [1, 1]} : vector<16x1536xf32> to vector<8x128xf32>
    %18 = vector.extract_strided_slice %13 {offsets = [0, 1024], sizes = [8, 128], strides = [1, 1]} : vector<16x1536xf32> to vector<8x128xf32>
    %19 = arith.truncf %16 : vector<8x128xf32> to vector<8x128xbf16>
    %20 = arith.truncf %17 : vector<8x128xf32> to vector<8x128xbf16>
    %cst_16 = arith.constant dense<0.000000e+00> : vector<8x8xf32>
    %21 = tpu.matmul %19, %20, %cst_16 {dimension_numbers = #tpu.dot_dimension_numbers<[1], [1], [0], [0], [0, 0, 1, 0], [], []>} : vector<8x128xbf16>, vector<8x128xbf16>, vector<8x8xf32> -> vector<8x8xf32>
    %cst_17 = arith.constant 0.353553385 : f32
    %22 = vector.broadcast %cst_17 : f32 to vector<8x8xf32>
    %23 = arith.mulf %21, %22 : vector<8x8xf32>
    %24 = vector.broadcast %15 : vector<1x8xf32> to vector<8x8xf32>
    %25 = arith.addf %23, %24 : vector<8x8xf32>
    %cst_18 = arith.constant dense<0xFF800000> : vector<8xf32>
    %26 = vector.multi_reduction <maximumf>, %25, %cst_18 [1] : vector<8x8xf32> to vector<8xf32>
    %27 = vector.shape_cast %26 : vector<8xf32> to vector<8x1xf32>
    %28 = vector.broadcast %27 : vector<8x1xf32> to vector<8x8xf32>
    %29 = arith.subf %25, %28 : vector<8x8xf32>
    %30 = math.exp %29 : vector<8x8xf32>
    %cst_19 = arith.constant dense<0.000000e+00> : vector<8xf32>
    %31 = vector.multi_reduction <add>, %30, %cst_19 [1] : vector<8x8xf32> to vector<8xf32>
    %32 = vector.shape_cast %31 : vector<8xf32> to vector<8x1xf32>
    %33 = tpu.reciprocal %32 {approx = true} : vector<8x1xf32> -> vector<8x1xf32>
    %34 = vector.broadcast %33 : vector<8x1xf32> to vector<8x8xf32>
    %35 = arith.mulf %30, %34 : vector<8x8xf32>
    %36 = arith.truncf %35 : vector<8x8xf32> to vector<8x8xbf16>
    %37 = arith.truncf %18 : vector<8x128xf32> to vector<8x128xbf16>
    %cst_20 = arith.constant dense<0.000000e+00> : vector<8x128xf32>
    %38 = tpu.matmul %36, %37, %cst_20 {dimension_numbers = #tpu.dot_dimension_numbers<[1], [0], [0], [1], [0, 0, 1, 1], [], []>} : vector<8x8xbf16>, vector<8x128xbf16>, vector<8x128xf32> -> vector<8x128xf32>
    %c0_21 = arith.constant 0 : index
    %c0_22 = arith.constant 0 : index
    %39 = vector.load %arg9[%c0_21, %c0_22] : memref<16x512xf32, #tpu.memory_space<vmem>>, vector<8x128xf32>
    tpu.vector_store %arg9[%c0_21, %c0_22], %38 {strides = array<i32>} : memref<16x512xf32, #tpu.memory_space<vmem>>, vector<8x128xf32>,
    %40 = vector.extract_strided_slice %13 {offsets = [0, 128], sizes = [8, 128], strides = [1, 1]} : vector<16x1536xf32> to vector<8x128xf32>
    %41 = vector.extract_strided_slice %13 {offsets = [0, 640], sizes = [8, 128], strides = [1, 1]} : vector<16x1536xf32> to vector<8x128xf32>
    %42 = vector.extract_strided_slice %13 {offsets = [0, 1152], sizes = [8, 128], strides = [1, 1]} : vector<16x1536xf32> to vector<8x128xf32>
    %43 = arith.truncf %40 : vector<8x128xf32> to vector<8x128xbf16>
    %44 = arith.truncf %41 : vector<8x128xf32> to vector<8x128xbf16>
    %cst_23 = arith.constant dense<0.000000e+00> : vector<8x8xf32>
    %45 = tpu.matmul %43, %44, %cst_23 {dimension_numbers = #tpu.dot_dimension_numbers<[1], [1], [0], [0], [0, 0, 1, 0], [], []>} : vector<8x128xbf16>, vector<8x128xbf16>, vector<8x8xf32> -> vector<8x8xf32>
    %cst_24 = arith.constant 0.353553385 : f32
    %46 = vector.broadcast %cst_24 : f32 to vector<8x8xf32>
    %47 = arith.mulf %45, %46 : vector<8x8xf32>
    %48 = vector.broadcast %15 : vector<1x8xf32> to vector<8x8xf32>
    %49 = arith.addf %47, %48 : vector<8x8xf32>
    %cst_25 = arith.constant dense<0xFF800000> : vector<8xf32>
    %50 = vector.multi_reduction <maximumf>, %49, %cst_25 [1] : vector<8x8xf32> to vector<8xf32>
    %51 = vector.shape_cast %50 : vector<8xf32> to vector<8x1xf32>
    %52 = vector.broadcast %51 : vector<8x1xf32> to vector<8x8xf32>
    %53 = arith.subf %49, %52 : vector<8x8xf32>
    %54 = math.exp %53 : vector<8x8xf32>
    %cst_26 = arith.constant dense<0.000000e+00> : vector<8xf32>
    %55 = vector.multi_reduction <add>, %54, %cst_26 [1] : vector<8x8xf32> to vector<8xf32>
    %56 = vector.shape_cast %55 : vector<8xf32> to vector<8x1xf32>
    %57 = tpu.reciprocal %56 {approx = true} : vector<8x1xf32> -> vector<8x1xf32>
    %58 = vector.broadcast %57 : vector<8x1xf32> to vector<8x8xf32>
    %59 = arith.mulf %54, %58 : vector<8x8xf32>
    %60 = arith.truncf %59 : vector<8x8xf32> to vector<8x8xbf16>
    %61 = arith.truncf %42 : vector<8x128xf32> to vector<8x128xbf16>
    %cst_27 = arith.constant dense<0.000000e+00> : vector<8x128xf32>
    %62 = tpu.matmul %60, %61, %cst_27 {dimension_numbers = #tpu.dot_dimension_numbers<[1], [0], [0], [1], [0, 0, 1, 1], [], []>} : vector<8x8xbf16>, vector<8x128xbf16>, vector<8x128xf32> -> vector<8x128xf32>
    %c0_28 = arith.constant 0 : index
    %c128 = arith.constant 128 : index
    %63 = vector.load %arg9[%c0_28, %c128] : memref<16x512xf32, #tpu.memory_space<vmem>>, vector<8x128xf32>
    tpu.vector_store %arg9[%c0_28, %c128], %62 {strides = array<i32>} : memref<16x512xf32, #tpu.memory_space<vmem>>, vector<8x128xf32>,
    %64 = vector.extract_strided_slice %13 {offsets = [0, 256], sizes = [8, 128], strides = [1, 1]} : vector<16x1536xf32> to vector<8x128xf32>
    %65 = vector.extract_strided_slice %13 {offsets = [0, 768], sizes = [8, 128], strides = [1, 1]} : vector<16x1536xf32> to vector<8x128xf32>
    %66 = vector.extract_strided_slice %13 {offsets = [0, 1280], sizes = [8, 128], strides = [1, 1]} : vector<16x1536xf32> to vector<8x128xf32>
    %67 = arith.truncf %64 : vector<8x128xf32> to vector<8x128xbf16>
    %68 = arith.truncf %65 : vector<8x128xf32> to vector<8x128xbf16>
    %cst_29 = arith.constant dense<0.000000e+00> : vector<8x8xf32>
    %69 = tpu.matmul %67, %68, %cst_29 {dimension_numbers = #tpu.dot_dimension_numbers<[1], [1], [0], [0], [0, 0, 1, 0], [], []>} : vector<8x128xbf16>, vector<8x128xbf16>, vector<8x8xf32> -> vector<8x8xf32>
    %cst_30 = arith.constant 0.353553385 : f32
    %70 = vector.broadcast %cst_30 : f32 to vector<8x8xf32>
    %71 = arith.mulf %69, %70 : vector<8x8xf32>
    %72 = vector.broadcast %15 : vector<1x8xf32> to vector<8x8xf32>
    %73 = arith.addf %71, %72 : vector<8x8xf32>
    %cst_31 = arith.constant dense<0xFF800000> : vector<8xf32>
    %74 = vector.multi_reduction <maximumf>, %73, %cst_31 [1] : vector<8x8xf32> to vector<8xf32>
    %75 = vector.shape_cast %74 : vector<8xf32> to vector<8x1xf32>
    %76 = vector.broadcast %75 : vector<8x1xf32> to vector<8x8xf32>
    %77 = arith.subf %73, %76 : vector<8x8xf32>
    %78 = math.exp %77 : vector<8x8xf32>
    %cst_32 = arith.constant dense<0.000000e+00> : vector<8xf32>
    %79 = vector.multi_reduction <add>, %78, %cst_32 [1] : vector<8x8xf32> to vector<8xf32>
    %80 = vector.shape_cast %79 : vector<8xf32> to vector<8x1xf32>
    %81 = tpu.reciprocal %80 {approx = true} : vector<8x1xf32> -> vector<8x1xf32>
    %82 = vector.broadcast %81 : vector<8x1xf32> to vector<8x8xf32>
    %83 = arith.mulf %78, %82 : vector<8x8xf32>
    %84 = arith.truncf %83 : vector<8x8xf32> to vector<8x8xbf16>
    %85 = arith.truncf %66 : vector<8x128xf32> to vector<8x128xbf16>
    %cst_33 = arith.constant dense<0.000000e+00> : vector<8x128xf32>
    %86 = tpu.matmul %84, %85, %cst_33 {dimension_numbers = #tpu.dot_dimension_numbers<[1], [0], [0], [1], [0, 0, 1, 1], [], []>} : vector<8x8xbf16>, vector<8x128xbf16>, vector<8x128xf32> -> vector<8x128xf32>
    %c0_34 = arith.constant 0 : index
    %c256 = arith.constant 256 : index
    %87 = vector.load %arg9[%c0_34, %c256] : memref<16x512xf32, #tpu.memory_space<vmem>>, vector<8x128xf32>
    tpu.vector_store %arg9[%c0_34, %c256], %86 {strides = array<i32>} : memref<16x512xf32, #tpu.memory_space<vmem>>, vector<8x128xf32>,
    %88 = vector.extract_strided_slice %13 {offsets = [0, 384], sizes = [8, 128], strides = [1, 1]} : vector<16x1536xf32> to vector<8x128xf32>
    %89 = vector.extract_strided_slice %13 {offsets = [0, 896], sizes = [8, 128], strides = [1, 1]} : vector<16x1536xf32> to vector<8x128xf32>
    %90 = vector.extract_strided_slice %13 {offsets = [0, 1408], sizes = [8, 128], strides = [1, 1]} : vector<16x1536xf32> to vector<8x128xf32>
    %91 = arith.truncf %88 : vector<8x128xf32> to vector<8x128xbf16>
    %92 = arith.truncf %89 : vector<8x128xf32> to vector<8x128xbf16>
    %cst_35 = arith.constant dense<0.000000e+00> : vector<8x8xf32>
    %93 = tpu.matmul %91, %92, %cst_35 {dimension_numbers = #tpu.dot_dimension_numbers<[1], [1], [0], [0], [0, 0, 1, 0], [], []>} : vector<8x128xbf16>, vector<8x128xbf16>, vector<8x8xf32> -> vector<8x8xf32>
    %cst_36 = arith.constant 0.353553385 : f32
    %94 = vector.broadcast %cst_36 : f32 to vector<8x8xf32>
    %95 = arith.mulf %93, %94 : vector<8x8xf32>
    %96 = vector.broadcast %15 : vector<1x8xf32> to vector<8x8xf32>
    %97 = arith.addf %95, %96 : vector<8x8xf32>
    %cst_37 = arith.constant dense<0xFF800000> : vector<8xf32>
    %98 = vector.multi_reduction <maximumf>, %97, %cst_37 [1] : vector<8x8xf32> to vector<8xf32>
    %99 = vector.shape_cast %98 : vector<8xf32> to vector<8x1xf32>
    %100 = vector.broadcast %99 : vector<8x1xf32> to vector<8x8xf32>
    %101 = arith.subf %97, %100 : vector<8x8xf32>
    %102 = math.exp %101 : vector<8x8xf32>
    %cst_38 = arith.constant dense<0.000000e+00> : vector<8xf32>
    %103 = vector.multi_reduction <add>, %102, %cst_38 [1] : vector<8x8xf32> to vector<8xf32>
    %104 = vector.shape_cast %103 : vector<8xf32> to vector<8x1xf32>
    %105 = tpu.reciprocal %104 {approx = true} : vector<8x1xf32> -> vector<8x1xf32>
    %106 = vector.broadcast %105 : vector<8x1xf32> to vector<8x8xf32>
    %107 = arith.mulf %102, %106 : vector<8x8xf32>
    %108 = arith.truncf %107 : vector<8x8xf32> to vector<8x8xbf16>
    %109 = arith.truncf %90 : vector<8x128xf32> to vector<8x128xbf16>
    %cst_39 = arith.constant dense<0.000000e+00> : vector<8x128xf32>
    %110 = tpu.matmul %108, %109, %cst_39 {dimension_numbers = #tpu.dot_dimension_numbers<[1], [0], [0], [1], [0, 0, 1, 1], [], []>} : vector<8x8xbf16>, vector<8x128xbf16>, vector<8x128xf32> -> vector<8x128xf32>
    %c0_40 = arith.constant 0 : index
    %c384 = arith.constant 384 : index
    %111 = vector.load %arg9[%c0_40, %c384] : memref<16x512xf32, #tpu.memory_space<vmem>>, vector<8x128xf32>
    tpu.vector_store %arg9[%c0_40, %c384], %110 {strides = array<i32>} : memref<16x512xf32, #tpu.memory_space<vmem>>, vector<8x128xf32>,
    %c1_41 = arith.constant 1 : index
    %c0_42 = arith.constant 0 : index
    %c0_43 = arith.constant 0 : index
    %112 = vector.load %arg1[%c1_41, %c0_42, %c0_43] : memref<2x1x8xf32, #tpu.memory_space<vmem>>, vector<1x1x8xf32>
    %113 = vector.shape_cast %112 : vector<1x1x8xf32> to vector<1x8xf32>
    %114 = vector.extract_strided_slice %13 {offsets = [8, 0], sizes = [8, 128], strides = [1, 1]} : vector<16x1536xf32> to vector<8x128xf32>
    %115 = vector.extract_strided_slice %13 {offsets = [8, 512], sizes = [8, 128], strides = [1, 1]} : vector<16x1536xf32> to vector<8x128xf32>
    %116 = vector.extract_strided_slice %13 {offsets = [8, 1024], sizes = [8, 128], strides = [1, 1]} : vector<16x1536xf32> to vector<8x128xf32>
    %117 = arith.truncf %114 : vector<8x128xf32> to vector<8x128xbf16>
    %118 = arith.truncf %115 : vector<8x128xf32> to vector<8x128xbf16>
    %cst_44 = arith.constant dense<0.000000e+00> : vector<8x8xf32>
    %119 = tpu.matmul %117, %118, %cst_44 {dimension_numbers = #tpu.dot_dimension_numbers<[1], [1], [0], [0], [0, 0, 1, 0], [], []>} : vector<8x128xbf16>, vector<8x128xbf16>, vector<8x8xf32> -> vector<8x8xf32>
    %cst_45 = arith.constant 0.353553385 : f32
    %120 = vector.broadcast %cst_45 : f32 to vector<8x8xf32>
    %121 = arith.mulf %119, %120 : vector<8x8xf32>
    %122 = vector.broadcast %113 : vector<1x8xf32> to vector<8x8xf32>
    %123 = arith.addf %121, %122 : vector<8x8xf32>
    %cst_46 = arith.constant dense<0xFF800000> : vector<8xf32>
    %124 = vector.multi_reduction <maximumf>, %123, %cst_46 [1] : vector<8x8xf32> to vector<8xf32>
    %125 = vector.shape_cast %124 : vector<8xf32> to vector<8x1xf32>
    %126 = vector.broadcast %125 : vector<8x1xf32> to vector<8x8xf32>
    %127 = arith.subf %123, %126 : vector<8x8xf32>
    %128 = math.exp %127 : vector<8x8xf32>
    %cst_47 = arith.constant dense<0.000000e+00> : vector<8xf32>
    %129 = vector.multi_reduction <add>, %128, %cst_47 [1] : vector<8x8xf32> to vector<8xf32>
    %130 = vector.shape_cast %129 : vector<8xf32> to vector<8x1xf32>
    %131 = tpu.reciprocal %130 {approx = true} : vector<8x1xf32> -> vector<8x1xf32>
    %132 = vector.broadcast %131 : vector<8x1xf32> to vector<8x8xf32>
    %133 = arith.mulf %128, %132 : vector<8x8xf32>
    %134 = arith.truncf %133 : vector<8x8xf32> to vector<8x8xbf16>
    %135 = arith.truncf %116 : vector<8x128xf32> to vector<8x128xbf16>
    %cst_48 = arith.constant dense<0.000000e+00> : vector<8x128xf32>
    %136 = tpu.matmul %134, %135, %cst_48 {dimension_numbers = #tpu.dot_dimension_numbers<[1], [0], [0], [1], [0, 0, 1, 1], [], []>} : vector<8x8xbf16>, vector<8x128xbf16>, vector<8x128xf32> -> vector<8x128xf32>
    %c8 = arith.constant 8 : index
    %c0_49 = arith.constant 0 : index
    %137 = vector.load %arg9[%c8, %c0_49] : memref<16x512xf32, #tpu.memory_space<vmem>>, vector<8x128xf32>
    tpu.vector_store %arg9[%c8, %c0_49], %136 {strides = array<i32>} : memref<16x512xf32, #tpu.memory_space<vmem>>, vector<8x128xf32>,
    %138 = vector.extract_strided_slice %13 {offsets = [8, 128], sizes = [8, 128], strides = [1, 1]} : vector<16x1536xf32> to vector<8x128xf32>
    %139 = vector.extract_strided_slice %13 {offsets = [8, 640], sizes = [8, 128], strides = [1, 1]} : vector<16x1536xf32> to vector<8x128xf32>
    %140 = vector.extract_strided_slice %13 {offsets = [8, 1152], sizes = [8, 128], strides = [1, 1]} : vector<16x1536xf32> to vector<8x128xf32>
    %141 = arith.truncf %138 : vector<8x128xf32> to vector<8x128xbf16>
    %142 = arith.truncf %139 : vector<8x128xf32> to vector<8x128xbf16>
    %cst_50 = arith.constant dense<0.000000e+00> : vector<8x8xf32>
    %143 = tpu.matmul %141, %142, %cst_50 {dimension_numbers = #tpu.dot_dimension_numbers<[1], [1], [0], [0], [0, 0, 1, 0], [], []>} : vector<8x128xbf16>, vector<8x128xbf16>, vector<8x8xf32> -> vector<8x8xf32>
    %cst_51 = arith.constant 0.353553385 : f32
    %144 = vector.broadcast %cst_51 : f32 to vector<8x8xf32>
    %145 = arith.mulf %143, %144 : vector<8x8xf32>
    %146 = vector.broadcast %113 : vector<1x8xf32> to vector<8x8xf32>
    %147 = arith.addf %145, %146 : vector<8x8xf32>
    %cst_52 = arith.constant dense<0xFF800000> : vector<8xf32>
    %148 = vector.multi_reduction <maximumf>, %147, %cst_52 [1] : vector<8x8xf32> to vector<8xf32>
    %149 = vector.shape_cast %148 : vector<8xf32> to vector<8x1xf32>
    %150 = vector.broadcast %149 : vector<8x1xf32> to vector<8x8xf32>
    %151 = arith.subf %147, %150 : vector<8x8xf32>
    %152 = math.exp %151 : vector<8x8xf32>
    %cst_53 = arith.constant dense<0.000000e+00> : vector<8xf32>
    %153 = vector.multi_reduction <add>, %152, %cst_53 [1] : vector<8x8xf32> to vector<8xf32>
    %154 = vector.shape_cast %153 : vector<8xf32> to vector<8x1xf32>
    %155 = tpu.reciprocal %154 {approx = true} : vector<8x1xf32> -> vector<8x1xf32>
    %156 = vector.broadcast %155 : vector<8x1xf32> to vector<8x8xf32>
    %157 = arith.mulf %152, %156 : vector<8x8xf32>
    %158 = arith.truncf %157 : vector<8x8xf32> to vector<8x8xbf16>
    %159 = arith.truncf %140 : vector<8x128xf32> to vector<8x128xbf16>
    %cst_54 = arith.constant dense<0.000000e+00> : vector<8x128xf32>
    %160 = tpu.matmul %158, %159, %cst_54 {dimension_numbers = #tpu.dot_dimension_numbers<[1], [0], [0], [1], [0, 0, 1, 1], [], []>} : vector<8x8xbf16>, vector<8x128xbf16>, vector<8x128xf32> -> vector<8x128xf32>
    %c8_55 = arith.constant 8 : index
    %c128_56 = arith.constant 128 : index
    %161 = vector.load %arg9[%c8_55, %c128_56] : memref<16x512xf32, #tpu.memory_space<vmem>>, vector<8x128xf32>
    tpu.vector_store %arg9[%c8_55, %c128_56], %160 {strides = array<i32>} : memref<16x512xf32, #tpu.memory_space<vmem>>, vector<8x128xf32>,
    %162 = vector.extract_strided_slice %13 {offsets = [8, 256], sizes = [8, 128], strides = [1, 1]} : vector<16x1536xf32> to vector<8x128xf32>
    %163 = vector.extract_strided_slice %13 {offsets = [8, 768], sizes = [8, 128], strides = [1, 1]} : vector<16x1536xf32> to vector<8x128xf32>
    %164 = vector.extract_strided_slice %13 {offsets = [8, 1280], sizes = [8, 128], strides = [1, 1]} : vector<16x1536xf32> to vector<8x128xf32>
    %165 = arith.truncf %162 : vector<8x128xf32> to vector<8x128xbf16>
    %166 = arith.truncf %163 : vector<8x128xf32> to vector<8x128xbf16>
    %cst_57 = arith.constant dense<0.000000e+00> : vector<8x8xf32>
    %167 = tpu.matmul %165, %166, %cst_57 {dimension_numbers = #tpu.dot_dimension_numbers<[1], [1], [0], [0], [0, 0, 1, 0], [], []>} : vector<8x128xbf16>, vector<8x128xbf16>, vector<8x8xf32> -> vector<8x8xf32>
    %cst_58 = arith.constant 0.353553385 : f32
    %168 = vector.broadcast %cst_58 : f32 to vector<8x8xf32>
    %169 = arith.mulf %167, %168 : vector<8x8xf32>
    %170 = vector.broadcast %113 : vector<1x8xf32> to vector<8x8xf32>
    %171 = arith.addf %169, %170 : vector<8x8xf32>
    %cst_59 = arith.constant dense<0xFF800000> : vector<8xf32>
    %172 = vector.multi_reduction <maximumf>, %171, %cst_59 [1] : vector<8x8xf32> to vector<8xf32>
    %173 = vector.shape_cast %172 : vector<8xf32> to vector<8x1xf32>
    %174 = vector.broadcast %173 : vector<8x1xf32> to vector<8x8xf32>
    %175 = arith.subf %171, %174 : vector<8x8xf32>
    %176 = math.exp %175 : vector<8x8xf32>
    %cst_60 = arith.constant dense<0.000000e+00> : vector<8xf32>
    %177 = vector.multi_reduction <add>, %176, %cst_60 [1] : vector<8x8xf32> to vector<8xf32>
    %178 = vector.shape_cast %177 : vector<8xf32> to vector<8x1xf32>
    %179 = tpu.reciprocal %178 {approx = true} : vector<8x1xf32> -> vector<8x1xf32>
    %180 = vector.broadcast %179 : vector<8x1xf32> to vector<8x8xf32>
    %181 = arith.mulf %176, %180 : vector<8x8xf32>
    %182 = arith.truncf %181 : vector<8x8xf32> to vector<8x8xbf16>
    %183 = arith.truncf %164 : vector<8x128xf32> to vector<8x128xbf16>
    %cst_61 = arith.constant dense<0.000000e+00> : vector<8x128xf32>
    %184 = tpu.matmul %182, %183, %cst_61 {dimension_numbers = #tpu.dot_dimension_numbers<[1], [0], [0], [1], [0, 0, 1, 1], [], []>} : vector<8x8xbf16>, vector<8x128xbf16>, vector<8x128xf32> -> vector<8x128xf32>
    %c8_62 = arith.constant 8 : index
    %c256_63 = arith.constant 256 : index
    %185 = vector.load %arg9[%c8_62, %c256_63] : memref<16x512xf32, #tpu.memory_space<vmem>>, vector<8x128xf32>
    tpu.vector_store %arg9[%c8_62, %c256_63], %184 {strides = array<i32>} : memref<16x512xf32, #tpu.memory_space<vmem>>, vector<8x128xf32>,
    %186 = vector.extract_strided_slice %13 {offsets = [8, 384], sizes = [8, 128], strides = [1, 1]} : vector<16x1536xf32> to vector<8x128xf32>
    %187 = vector.extract_strided_slice %13 {offsets = [8, 896], sizes = [8, 128], strides = [1, 1]} : vector<16x1536xf32> to vector<8x128xf32>
    %188 = vector.extract_strided_slice %13 {offsets = [8, 1408], sizes = [8, 128], strides = [1, 1]} : vector<16x1536xf32> to vector<8x128xf32>
    %189 = arith.truncf %186 : vector<8x128xf32> to vector<8x128xbf16>
    %190 = arith.truncf %187 : vector<8x128xf32> to vector<8x128xbf16>
    %cst_64 = arith.constant dense<0.000000e+00> : vector<8x8xf32>
    %191 = tpu.matmul %189, %190, %cst_64 {dimension_numbers = #tpu.dot_dimension_numbers<[1], [1], [0], [0], [0, 0, 1, 0], [], []>} : vector<8x128xbf16>, vector<8x128xbf16>, vector<8x8xf32> -> vector<8x8xf32>
    %cst_65 = arith.constant 0.353553385 : f32
    %192 = vector.broadcast %cst_65 : f32 to vector<8x8xf32>
    %193 = arith.mulf %191, %192 : vector<8x8xf32>
    %194 = vector.broadcast %113 : vector<1x8xf32> to vector<8x8xf32>
    %195 = arith.addf %193, %194 : vector<8x8xf32>
    %cst_66 = arith.constant dense<0xFF800000> : vector<8xf32>
    %196 = vector.multi_reduction <maximumf>, %195, %cst_66 [1] : vector<8x8xf32> to vector<8xf32>
    %197 = vector.shape_cast %196 : vector<8xf32> to vector<8x1xf32>
    %198 = vector.broadcast %197 : vector<8x1xf32> to vector<8x8xf32>
    %199 = arith.subf %195, %198 : vector<8x8xf32>
    %200 = math.exp %199 : vector<8x8xf32>
    %cst_67 = arith.constant dense<0.000000e+00> : vector<8xf32>
    %201 = vector.multi_reduction <add>, %200, %cst_67 [1] : vector<8x8xf32> to vector<8xf32>
    %202 = vector.shape_cast %201 : vector<8xf32> to vector<8x1xf32>
    %203 = tpu.reciprocal %202 {approx = true} : vector<8x1xf32> -> vector<8x1xf32>
    %204 = vector.broadcast %203 : vector<8x1xf32> to vector<8x8xf32>
    %205 = arith.mulf %200, %204 : vector<8x8xf32>
    %206 = arith.truncf %205 : vector<8x8xf32> to vector<8x8xbf16>
    %207 = arith.truncf %188 : vector<8x128xf32> to vector<8x128xbf16>
    %cst_68 = arith.constant dense<0.000000e+00> : vector<8x128xf32>
    %208 = tpu.matmul %206, %207, %cst_68 {dimension_numbers = #tpu.dot_dimension_numbers<[1], [0], [0], [1], [0, 0, 1, 1], [], []>} : vector<8x8xbf16>, vector<8x128xbf16>, vector<8x128xf32> -> vector<8x128xf32>
    %c8_69 = arith.constant 8 : index
    %c384_70 = arith.constant 384 : index
    %209 = vector.load %arg9[%c8_69, %c384_70] : memref<16x512xf32, #tpu.memory_space<vmem>>, vector<8x128xf32>
    tpu.vector_store %arg9[%c8_69, %c384_70], %208 {strides = array<i32>} : memref<16x512xf32, #tpu.memory_space<vmem>>, vector<8x128xf32>,
    %c0_71 = arith.constant 0 : index
    %c0_72 = arith.constant 0 : index
    %210 = vector.load %arg9[%c0_71, %c0_72] : memref<16x512xf32, #tpu.memory_space<vmem>>, vector<16x512xf32>
    %211 = arith.truncf %210 : vector<16x512xf32> to vector<16x512xbf16>
    %c0_73 = arith.constant 0 : index
    %c0_74 = arith.constant 0 : index
    %212 = vector.load %arg4[%c0_73, %c0_74] : memref<512x32xbf16, #tpu.memory_space<vmem>>, vector<512x32xbf16>
    %cst_75 = arith.constant dense<0.000000e+00> : vector<16x32xf32>
    %213 = tpu.matmul %211, %212, %cst_75 {dimension_numbers = #tpu.dot_dimension_numbers<[1], [0], [0], [1], [0, 0, 1, 1], [], []>} : vector<16x512xbf16>, vector<512x32xbf16>, vector<16x32xf32> -> vector<16x32xf32>
    %214 = vector.broadcast %1 : vector<1x32xf32> to vector<16x32xf32>
    %215 = arith.addf %213, %214 : vector<16x32xf32>
    %216 = arith.addf %0, %215 : vector<16x32xf32>
    %cst_76 = arith.constant dense<0.000000e+00> : vector<16xf32>
    %217 = vector.multi_reduction <add>, %216, %cst_76 [1] : vector<16x32xf32> to vector<16xf32>
    %218 = vector.shape_cast %217 : vector<16xf32> to vector<16x1xf32>
    %cst_77 = arith.constant 3.200000e+01 : f32
    %219 = vector.broadcast %cst_77 : f32 to vector<16x1xf32>
    %220 = arith.divf %218, %219 : vector<16x1xf32>
    %221 = vector.broadcast %220 : vector<16x1xf32> to vector<16x32xf32>
    %222 = arith.subf %216, %221 : vector<16x32xf32>
    %223 = arith.mulf %222, %222 : vector<16x32xf32>
    %cst_78 = arith.constant dense<0.000000e+00> : vector<16xf32>
    %224 = vector.multi_reduction <add>, %223, %cst_78 [1] : vector<16x32xf32> to vector<16xf32>
    %225 = vector.shape_cast %224 : vector<16xf32> to vector<16x1xf32>
    %cst_79 = arith.constant 3.200000e+01 : f32
    %226 = vector.broadcast %cst_79 : f32 to vector<16x1xf32>
    %227 = arith.divf %225, %226 : vector<16x1xf32>
    %228 = vector.broadcast %220 : vector<16x1xf32> to vector<16x32xf32>
    %229 = arith.subf %216, %228 : vector<16x32xf32>
    %cst_80 = arith.constant 9.99999996E-13 : f32
    %230 = vector.broadcast %cst_80 : f32 to vector<16x1xf32>
    %231 = arith.addf %227, %230 : vector<16x1xf32>
    %232 = math.rsqrt %231 : vector<16x1xf32>
    %233 = vector.broadcast %232 : vector<16x1xf32> to vector<16x32xf32>
    %234 = arith.mulf %229, %233 : vector<16x32xf32>
    %235 = vector.broadcast %4 : vector<1x32xf32> to vector<16x32xf32>
    %236 = arith.mulf %234, %235 : vector<16x32xf32>
    %237 = vector.broadcast %5 : vector<1x32xf32> to vector<16x32xf32>
    %238 = arith.addf %236, %237 : vector<16x32xf32>
    %239 = arith.truncf %238 : vector<16x32xf32> to vector<16x32xbf16>
    %c0_81 = arith.constant 0 : index
    %c0_82 = arith.constant 0 : index
    %240 = vector.load %arg5[%c0_81, %c0_82] : memref<32x64xbf16, #tpu.memory_space<vmem>>, vector<32x64xbf16>
    %cst_83 = arith.constant dense<0.000000e+00> : vector<16x64xf32>
    %241 = tpu.matmul %239, %240, %cst_83 {dimension_numbers = #tpu.dot_dimension_numbers<[1], [0], [0], [1], [0, 0, 1, 1], [], []>} : vector<16x32xbf16>, vector<32x64xbf16>, vector<16x64xf32> -> vector<16x64xf32>
    %242 = vector.broadcast %2 : vector<1x64xf32> to vector<16x64xf32>
    %243 = arith.addf %241, %242 : vector<16x64xf32>
    %cst_84 = arith.constant 5.000000e-01 : f32
    %244 = vector.broadcast %cst_84 : f32 to vector<16x64xf32>
    %245 = arith.mulf %244, %243 : vector<16x64xf32>
    %cst_85 = arith.constant 4.471500e-02 : f32
    %246 = vector.broadcast %cst_85 : f32 to vector<16x64xf32>
    %247 = arith.mulf %246, %243 : vector<16x64xf32>
    %248 = arith.mulf %247, %243 : vector<16x64xf32>
    %249 = arith.mulf %248, %243 : vector<16x64xf32>
    %250 = arith.addf %243, %249 : vector<16x64xf32>
    %cst_86 = arith.constant 0.797884583 : f32
    %251 = vector.broadcast %cst_86 : f32 to vector<16x64xf32>
    %252 = arith.mulf %251, %250 : vector<16x64xf32>
    %253 = math.tanh %252 : vector<16x64xf32>
    %cst_87 = arith.constant 1.000000e+00 : f32
    %254 = vector.broadcast %cst_87 : f32 to vector<16x64xf32>
    %255 = arith.addf %254, %253 : vector<16x64xf32>
    %256 = arith.mulf %245, %255 : vector<16x64xf32>
    %257 = arith.truncf %256 : vector<16x64xf32> to vector<16x64xbf16>
    %c0_88 = arith.constant 0 : index
    %c0_89 = arith.constant 0 : index
    %258 = vector.load %arg6[%c0_88, %c0_89] : memref<64x32xbf16, #tpu.memory_space<vmem>>, vector<64x32xbf16>
    %cst_90 = arith.constant dense<0.000000e+00> : vector<16x32xf32>
    %259 = tpu.matmul %257, %258, %cst_90 {dimension_numbers = #tpu.dot_dimension_numbers<[1], [0], [0], [1], [0, 0, 1, 1], [], []>} : vector<16x64xbf16>, vector<64x32xbf16>, vector<16x32xf32> -> vector<16x32xf32>
    %260 = vector.broadcast %3 : vector<1x32xf32> to vector<16x32xf32>
    %261 = arith.addf %259, %260 : vector<16x32xf32>
    %262 = arith.addf %238, %261 : vector<16x32xf32>
    %cst_91 = arith.constant dense<0.000000e+00> : vector<16xf32>
    %263 = vector.multi_reduction <add>, %262, %cst_91 [1] : vector<16x32xf32> to vector<16xf32>
    %264 = vector.shape_cast %263 : vector<16xf32> to vector<16x1xf32>
    %cst_92 = arith.constant 3.200000e+01 : f32
    %265 = vector.broadcast %cst_92 : f32 to vector<16x1xf32>
    %266 = arith.divf %264, %265 : vector<16x1xf32>
    %267 = vector.broadcast %266 : vector<16x1xf32> to vector<16x32xf32>
    %268 = arith.subf %262, %267 : vector<16x32xf32>
    %269 = arith.mulf %268, %268 : vector<16x32xf32>
    %cst_93 = arith.constant dense<0.000000e+00> : vector<16xf32>
    %270 = vector.multi_reduction <add>, %269, %cst_93 [1] : vector<16x32xf32> to vector<16xf32>
    %271 = vector.shape_cast %270 : vector<16xf32> to vector<16x1xf32>
    %cst_94 = arith.constant 3.200000e+01 : f32
    %272 = vector.broadcast %cst_94 : f32 to vector<16x1xf32>
    %273 = arith.divf %271, %272 : vector<16x1xf32>
    %274 = vector.broadcast %266 : vector<16x1xf32> to vector<16x32xf32>
    %275 = arith.subf %262, %274 : vector<16x32xf32>
    %cst_95 = arith.constant 9.99999996E-13 : f32
    %276 = vector.broadcast %cst_95 : f32 to vector<16x1xf32>
    %277 = arith.addf %273, %276 : vector<16x1xf32>
    %278 = math.rsqrt %277 : vector<16x1xf32>
    %279 = vector.broadcast %278 : vector<16x1xf32> to vector<16x32xf32>
    %280 = arith.mulf %275, %279 : vector<16x32xf32>
    %281 = vector.broadcast %6 : vector<1x32xf32> to vector<16x32xf32>
    %282 = arith.mulf %280, %281 : vector<16x32xf32>
    %283 = vector.broadcast %7 : vector<1x32xf32> to vector<16x32xf32>
    %284 = arith.addf %282, %283 : vector<16x32xf32>
    %c0_96 = arith.constant 0 : index
    %c0_97 = arith.constant 0 : index
    %285 = vector.load %arg8[%c0_96, %c0_97] : memref<16x32xf32, #tpu.memory_space<vmem>>, vector<16x32xf32>
    tpu.vector_store %arg8[%c0_96, %c0_97], %284 {strides = array<i32>} : memref<16x32xf32, #tpu.memory_space<vmem>>, vector<16x32xf32>,
    return
  }
}

module attributes {stable_mosaic.version = 11 : i64} {
  func.func @_encoder_layer_kernel(%arg0: memref<16x32xf32, #tpu.memory_space<vmem>>, %arg1: memref<2x1x8xf32, #tpu.memory_space<vmem>>, %arg2: memref<32x1536xbf16, #tpu.memory_space<vmem>>, %arg3: memref<1x1536xf32, #tpu.memory_space<vmem>>, %arg4: memref<512x32xbf16, #tpu.memory_space<vmem>>, %arg5: memref<32x64xbf16, #tpu.memory_space<vmem>>, %arg6: memref<64x32xbf16, #tpu.memory_space<vmem>>, %arg7: memref<8x64xf32, #tpu.memory_space<vmem>>, %arg8: memref<16x32xf32, #tpu.memory_space<vmem>>, %arg9: memref<16x512xf32, #tpu.memory_space<vmem>>) attributes {dimension_semantics = [], scalar_prefetch = 0 : i64, scratch_operands = 1 : i64, tpu.core_type = #tpu.core_type<tc>} {
    %c0 = arith.constant 0 : index
    %c0_0 = arith.constant 0 : index
    %0 = vector.load %arg0[%c0, %c0_0] : memref<16x32xf32, #tpu.memory_space<vmem>>, vector<16x32xf32>
    %c0_1 = arith.constant 0 : index
    %c0_2 = arith.constant 0 : index
    %1 = vector.load %arg7[%c0_1, %c0_2] : memref<8x64xf32, #tpu.memory_space<vmem>>, vector<1x32xf32>
    %c1 = arith.constant 1 : index
    %c0_3 = arith.constant 0 : index
    %2 = vector.load %arg7[%c1, %c0_3] : memref<8x64xf32, #tpu.memory_space<vmem>>, vector<1x64xf32>
    %c2 = arith.constant 2 : index
    %c0_4 = arith.constant 0 : index
    %3 = vector.load %arg7[%c2, %c0_4] : memref<8x64xf32, #tpu.memory_space<vmem>>, vector<1x32xf32>
    %c3 = arith.constant 3 : index
    %c0_5 = arith.constant 0 : index
    %4 = vector.load %arg7[%c3, %c0_5] : memref<8x64xf32, #tpu.memory_space<vmem>>, vector<1x32xf32>
    %c4 = arith.constant 4 : index
    %c0_6 = arith.constant 0 : index
    %5 = vector.load %arg7[%c4, %c0_6] : memref<8x64xf32, #tpu.memory_space<vmem>>, vector<1x32xf32>
    %c5 = arith.constant 5 : index
    %c0_7 = arith.constant 0 : index
    %6 = vector.load %arg7[%c5, %c0_7] : memref<8x64xf32, #tpu.memory_space<vmem>>, vector<1x32xf32>
    %c6 = arith.constant 6 : index
    %c0_8 = arith.constant 0 : index
    %7 = vector.load %arg7[%c6, %c0_8] : memref<8x64xf32, #tpu.memory_space<vmem>>, vector<1x32xf32>
    %8 = arith.truncf %0 : vector<16x32xf32> to vector<16x32xbf16>
    %c0_9 = arith.constant 0 : index
    %c0_10 = arith.constant 0 : index
    %9 = vector.load %arg2[%c0_9, %c0_10] : memref<32x1536xbf16, #tpu.memory_space<vmem>>, vector<32x1536xbf16>
    %cst = arith.constant dense<0.000000e+00> : vector<16x1536xf32>
    %10 = tpu.matmul %8, %9, %cst {dimension_numbers = #tpu.dot_dimension_numbers<[1], [0], [0], [1], [0, 0, 1, 1], [], []>} : vector<16x32xbf16>, vector<32x1536xbf16>, vector<16x1536xf32> -> vector<16x1536xf32>
    %c0_11 = arith.constant 0 : index
    %c0_12 = arith.constant 0 : index
    %11 = vector.load %arg3[%c0_11, %c0_12] : memref<1x1536xf32, #tpu.memory_space<vmem>>, vector<1x1536xf32>
    %12 = vector.broadcast %11 : vector<1x1536xf32> to vector<16x1536xf32>
    %13 = arith.addf %10, %12 : vector<16x1536xf32>
    %c0_13 = arith.constant 0 : index
    %c0_14 = arith.constant 0 : index
    %c0_15 = arith.constant 0 : index
    %14 = vector.load %arg1[%c0_13, %c0_14, %c0_15] : memref<2x1x8xf32, #tpu.memory_space<vmem>>, vector<1x1x8xf32>
    %15 = vector.shape_cast %14 : vector<1x1x8xf32> to vector<1x8xf32>
    %16 = vector.extract_strided_slice %13 {offsets = [0, 0], sizes = [8, 128], strides = [1, 1]} : vector<16x1536xf32> to vector<8x128xf32>
    %17 = vector.extract_strided_slice %13 {offsets = [0, 512], sizes = [8, 128], strides = [1, 1]} : vector<16x1536xf32> to vector<8x128xf32>
    %18 = vector.extract_strided_slice %13 {offsets = [0, 1024], sizes = [8, 128], strides = [1, 1]} : vector<16x1536xf32> to vector<8x128xf32>
    %19 = arith.truncf %16 : vector<8x128xf32> to vector<8x128xbf16>
    %20 = arith.truncf %17 : vector<8x128xf32> to vector<8x128xbf16>
    %cst_16 = arith.constant dense<0.000000e+00> : vector<8x8xf32>
    %21 = tpu.matmul %19, %20, %cst_16 {dimension_numbers = #tpu.dot_dimension_numbers<[1], [1], [0], [0], [0, 0, 1, 0], [], []>} : vector<8x128xbf16>, vector<8x128xbf16>, vector<8x8xf32> -> vector<8x8xf32>
    %cst_17 = arith.constant 0.353553385 : f32
    %22 = vector.broadcast %cst_17 : f32 to vector<8x8xf32>
    %23 = arith.mulf %21, %22 : vector<8x8xf32>
    %24 = vector.broadcast %15 : vector<1x8xf32> to vector<8x8xf32>
    %25 = arith.addf %23, %24 : vector<8x8xf32>
    %cst_18 = arith.constant dense<0xFF800000> : vector<8xf32>
    %26 = vector.multi_reduction <maximumf>, %25, %cst_18 [1] : vector<8x8xf32> to vector<8xf32>
    %27 = vector.shape_cast %26 : vector<8xf32> to vector<8x1xf32>
    %28 = vector.broadcast %27 : vector<8x1xf32> to vector<8x8xf32>
    %29 = arith.subf %25, %28 : vector<8x8xf32>
    %30 = math.exp %29 : vector<8x8xf32>
    %cst_19 = arith.constant dense<0.000000e+00> : vector<8xf32>
    %31 = vector.multi_reduction <add>, %30, %cst_19 [1] : vector<8x8xf32> to vector<8xf32>
    %32 = vector.shape_cast %31 : vector<8xf32> to vector<8x1xf32>
    %33 = tpu.reciprocal %32 {approx = true} : vector<8x1xf32> -> vector<8x1xf32>
    %34 = vector.broadcast %33 : vector<8x1xf32> to vector<8x8xf32>
    %35 = arith.mulf %30, %34 : vector<8x8xf32>
    %36 = arith.truncf %35 : vector<8x8xf32> to vector<8x8xbf16>
    %37 = arith.truncf %18 : vector<8x128xf32> to vector<8x128xbf16>
    %cst_20 = arith.constant dense<0.000000e+00> : vector<8x128xf32>
    %38 = tpu.matmul %36, %37, %cst_20 {dimension_numbers = #tpu.dot_dimension_numbers<[1], [0], [0], [1], [0, 0, 1, 1], [], []>} : vector<8x8xbf16>, vector<8x128xbf16>, vector<8x128xf32> -> vector<8x128xf32>
    %c0_21 = arith.constant 0 : index
    %c0_22 = arith.constant 0 : index
    %39 = vector.load %arg9[%c0_21, %c0_22] : memref<16x512xf32, #tpu.memory_space<vmem>>, vector<8x128xf32>
    tpu.vector_store %arg9[%c0_21, %c0_22], %38 {strides = array<i32>} : memref<16x512xf32, #tpu.memory_space<vmem>>, vector<8x128xf32>,
    %40 = vector.extract_strided_slice %13 {offsets = [0, 128], sizes = [8, 128], strides = [1, 1]} : vector<16x1536xf32> to vector<8x128xf32>
    %41 = vector.extract_strided_slice %13 {offsets = [0, 640], sizes = [8, 128], strides = [1, 1]} : vector<16x1536xf32> to vector<8x128xf32>
    %42 = vector.extract_strided_slice %13 {offsets = [0, 1152], sizes = [8, 128], strides = [1, 1]} : vector<16x1536xf32> to vector<8x128xf32>
    %43 = arith.truncf %40 : vector<8x128xf32> to vector<8x128xbf16>
    %44 = arith.truncf %41 : vector<8x128xf32> to vector<8x128xbf16>
    %cst_23 = arith.constant dense<0.000000e+00> : vector<8x8xf32>
    %45 = tpu.matmul %43, %44, %cst_23 {dimension_numbers = #tpu.dot_dimension_numbers<[1], [1], [0], [0], [0, 0, 1, 0], [], []>} : vector<8x128xbf16>, vector<8x128xbf16>, vector<8x8xf32> -> vector<8x8xf32>
    %cst_24 = arith.constant 0.353553385 : f32
    %46 = vector.broadcast %cst_24 : f32 to vector<8x8xf32>
    %47 = arith.mulf %45, %46 : vector<8x8xf32>
    %48 = vector.broadcast %15 : vector<1x8xf32> to vector<8x8xf32>
    %49 = arith.addf %47, %48 : vector<8x8xf32>
    %cst_25 = arith.constant dense<0xFF800000> : vector<8xf32>
    %50 = vector.multi_reduction <maximumf>, %49, %cst_25 [1] : vector<8x8xf32> to vector<8xf32>
    %51 = vector.shape_cast %50 : vector<8xf32> to vector<8x1xf32>
    %52 = vector.broadcast %51 : vector<8x1xf32> to vector<8x8xf32>
    %53 = arith.subf %49, %52 : vector<8x8xf32>
    %54 = math.exp %53 : vector<8x8xf32>
    %cst_26 = arith.constant dense<0.000000e+00> : vector<8xf32>
    %55 = vector.multi_reduction <add>, %54, %cst_26 [1] : vector<8x8xf32> to vector<8xf32>
    %56 = vector.shape_cast %55 : vector<8xf32> to vector<8x1xf32>
    %57 = tpu.reciprocal %56 {approx = true} : vector<8x1xf32> -> vector<8x1xf32>
    %58 = vector.broadcast %57 : vector<8x1xf32> to vector<8x8xf32>
    %59 = arith.mulf %54, %58 : vector<8x8xf32>
    %60 = arith.truncf %59 : vector<8x8xf32> to vector<8x8xbf16>
    %61 = arith.truncf %42 : vector<8x128xf32> to vector<8x128xbf16>
    %cst_27 = arith.constant dense<0.000000e+00> : vector<8x128xf32>
    %62 = tpu.matmul %60, %61, %cst_27 {dimension_numbers = #tpu.dot_dimension_numbers<[1], [0], [0], [1], [0, 0, 1, 1], [], []>} : vector<8x8xbf16>, vector<8x128xbf16>, vector<8x128xf32> -> vector<8x128xf32>
    %c0_28 = arith.constant 0 : index
    %c128 = arith.constant 128 : index
    %63 = vector.load %arg9[%c0_28, %c128] : memref<16x512xf32, #tpu.memory_space<vmem>>, vector<8x128xf32>
    tpu.vector_store %arg9[%c0_28, %c128], %62 {strides = array<i32>} : memref<16x512xf32, #tpu.memory_space<vmem>>, vector<8x128xf32>,
    %64 = vector.extract_strided_slice %13 {offsets = [0, 256], sizes = [8, 128], strides = [1, 1]} : vector<16x1536xf32> to vector<8x128xf32>
    %65 = vector.extract_strided_slice %13 {offsets = [0, 768], sizes = [8, 128], strides = [1, 1]} : vector<16x1536xf32> to vector<8x128xf32>
    %66 = vector.extract_strided_slice %13 {offsets = [0, 1280], sizes = [8, 128], strides = [1, 1]} : vector<16x1536xf32> to vector<8x128xf32>
    %67 = arith.truncf %64 : vector<8x128xf32> to vector<8x128xbf16>
    %68 = arith.truncf %65 : vector<8x128xf32> to vector<8x128xbf16>
    %cst_29 = arith.constant dense<0.000000e+00> : vector<8x8xf32>
    %69 = tpu.matmul %67, %68, %cst_29 {dimension_numbers = #tpu.dot_dimension_numbers<[1], [1], [0], [0], [0, 0, 1, 0], [], []>} : vector<8x128xbf16>, vector<8x128xbf16>, vector<8x8xf32> -> vector<8x8xf32>
    %cst_30 = arith.constant 0.353553385 : f32
    %70 = vector.broadcast %cst_30 : f32 to vector<8x8xf32>
    %71 = arith.mulf %69, %70 : vector<8x8xf32>
    %72 = vector.broadcast %15 : vector<1x8xf32> to vector<8x8xf32>
    %73 = arith.addf %71, %72 : vector<8x8xf32>
    %cst_31 = arith.constant dense<0xFF800000> : vector<8xf32>
    %74 = vector.multi_reduction <maximumf>, %73, %cst_31 [1] : vector<8x8xf32> to vector<8xf32>
    %75 = vector.shape_cast %74 : vector<8xf32> to vector<8x1xf32>
    %76 = vector.broadcast %75 : vector<8x1xf32> to vector<8x8xf32>
    %77 = arith.subf %73, %76 : vector<8x8xf32>
    %78 = math.exp %77 : vector<8x8xf32>
    %cst_32 = arith.constant dense<0.000000e+00> : vector<8xf32>
    %79 = vector.multi_reduction <add>, %78, %cst_32 [1] : vector<8x8xf32> to vector<8xf32>
    %80 = vector.shape_cast %79 : vector<8xf32> to vector<8x1xf32>
    %81 = tpu.reciprocal %80 {approx = true} : vector<8x1xf32> -> vector<8x1xf32>
    %82 = vector.broadcast %81 : vector<8x1xf32> to vector<8x8xf32>
    %83 = arith.mulf %78, %82 : vector<8x8xf32>
    %84 = arith.truncf %83 : vector<8x8xf32> to vector<8x8xbf16>
    %85 = arith.truncf %66 : vector<8x128xf32> to vector<8x128xbf16>
    %cst_33 = arith.constant dense<0.000000e+00> : vector<8x128xf32>
    %86 = tpu.matmul %84, %85, %cst_33 {dimension_numbers = #tpu.dot_dimension_numbers<[1], [0], [0], [1], [0, 0, 1, 1], [], []>} : vector<8x8xbf16>, vector<8x128xbf16>, vector<8x128xf32> -> vector<8x128xf32>
    %c0_34 = arith.constant 0 : index
    %c256 = arith.constant 256 : index
    %87 = vector.load %arg9[%c0_34, %c256] : memref<16x512xf32, #tpu.memory_space<vmem>>, vector<8x128xf32>
    tpu.vector_store %arg9[%c0_34, %c256], %86 {strides = array<i32>} : memref<16x512xf32, #tpu.memory_space<vmem>>, vector<8x128xf32>,
    %88 = vector.extract_strided_slice %13 {offsets = [0, 384], sizes = [8, 128], strides = [1, 1]} : vector<16x1536xf32> to vector<8x128xf32>
    %89 = vector.extract_strided_slice %13 {offsets = [0, 896], sizes = [8, 128], strides = [1, 1]} : vector<16x1536xf32> to vector<8x128xf32>
    %90 = vector.extract_strided_slice %13 {offsets = [0, 1408], sizes = [8, 128], strides = [1, 1]} : vector<16x1536xf32> to vector<8x128xf32>
    %91 = arith.truncf %88 : vector<8x128xf32> to vector<8x128xbf16>
    %92 = arith.truncf %89 : vector<8x128xf32> to vector<8x128xbf16>
    %cst_35 = arith.constant dense<0.000000e+00> : vector<8x8xf32>
    %93 = tpu.matmul %91, %92, %cst_35 {dimension_numbers = #tpu.dot_dimension_numbers<[1], [1], [0], [0], [0, 0, 1, 0], [], []>} : vector<8x128xbf16>, vector<8x128xbf16>, vector<8x8xf32> -> vector<8x8xf32>
    %cst_36 = arith.constant 0.353553385 : f32
    %94 = vector.broadcast %cst_36 : f32 to vector<8x8xf32>
    %95 = arith.mulf %93, %94 : vector<8x8xf32>
    %96 = vector.broadcast %15 : vector<1x8xf32> to vector<8x8xf32>
    %97 = arith.addf %95, %96 : vector<8x8xf32>
    %cst_37 = arith.constant dense<0xFF800000> : vector<8xf32>
    %98 = vector.multi_reduction <maximumf>, %97, %cst_37 [1] : vector<8x8xf32> to vector<8xf32>
    %99 = vector.shape_cast %98 : vector<8xf32> to vector<8x1xf32>
    %100 = vector.broadcast %99 : vector<8x1xf32> to vector<8x8xf32>
    %101 = arith.subf %97, %100 : vector<8x8xf32>
    %102 = math.exp %101 : vector<8x8xf32>
    %cst_38 = arith.constant dense<0.000000e+00> : vector<8xf32>
    %103 = vector.multi_reduction <add>, %102, %cst_38 [1] : vector<8x8xf32> to vector<8xf32>
    %104 = vector.shape_cast %103 : vector<8xf32> to vector<8x1xf32>
    %105 = tpu.reciprocal %104 {approx = true} : vector<8x1xf32> -> vector<8x1xf32>
    %106 = vector.broadcast %105 : vector<8x1xf32> to vector<8x8xf32>
    %107 = arith.mulf %102, %106 : vector<8x8xf32>
    %108 = arith.truncf %107 : vector<8x8xf32> to vector<8x8xbf16>
    %109 = arith.truncf %90 : vector<8x128xf32> to vector<8x128xbf16>
    %cst_39 = arith.constant dense<0.000000e+00> : vector<8x128xf32>
    %110 = tpu.matmul %108, %109, %cst_39 {dimension_numbers = #tpu.dot_dimension_numbers<[1], [0], [0], [1], [0, 0, 1, 1], [], []>} : vector<8x8xbf16>, vector<8x128xbf16>, vector<8x128xf32> -> vector<8x128xf32>
    %c0_40 = arith.constant 0 : index
    %c384 = arith.constant 384 : index
    %111 = vector.load %arg9[%c0_40, %c384] : memref<16x512xf32, #tpu.memory_space<vmem>>, vector<8x128xf32>
    tpu.vector_store %arg9[%c0_40, %c384], %110 {strides = array<i32>} : memref<16x512xf32, #tpu.memory_space<vmem>>, vector<8x128xf32>,
    %c1_41 = arith.constant 1 : index
    %c0_42 = arith.constant 0 : index
    %c0_43 = arith.constant 0 : index
    %112 = vector.load %arg1[%c1_41, %c0_42, %c0_43] : memref<2x1x8xf32, #tpu.memory_space<vmem>>, vector<1x1x8xf32>
    %113 = vector.shape_cast %112 : vector<1x1x8xf32> to vector<1x8xf32>
    %114 = vector.extract_strided_slice %13 {offsets = [8, 0], sizes = [8, 128], strides = [1, 1]} : vector<16x1536xf32> to vector<8x128xf32>
    %115 = vector.extract_strided_slice %13 {offsets = [8, 512], sizes = [8, 128], strides = [1, 1]} : vector<16x1536xf32> to vector<8x128xf32>
    %116 = vector.extract_strided_slice %13 {offsets = [8, 1024], sizes = [8, 128], strides = [1, 1]} : vector<16x1536xf32> to vector<8x128xf32>
    %117 = arith.truncf %114 : vector<8x128xf32> to vector<8x128xbf16>
    %118 = arith.truncf %115 : vector<8x128xf32> to vector<8x128xbf16>
    %cst_44 = arith.constant dense<0.000000e+00> : vector<8x8xf32>
    %119 = tpu.matmul %117, %118, %cst_44 {dimension_numbers = #tpu.dot_dimension_numbers<[1], [1], [0], [0], [0, 0, 1, 0], [], []>} : vector<8x128xbf16>, vector<8x128xbf16>, vector<8x8xf32> -> vector<8x8xf32>
    %cst_45 = arith.constant 0.353553385 : f32
    %120 = vector.broadcast %cst_45 : f32 to vector<8x8xf32>
    %121 = arith.mulf %119, %120 : vector<8x8xf32>
    %122 = vector.broadcast %113 : vector<1x8xf32> to vector<8x8xf32>
    %123 = arith.addf %121, %122 : vector<8x8xf32>
    %cst_46 = arith.constant dense<0xFF800000> : vector<8xf32>
    %124 = vector.multi_reduction <maximumf>, %123, %cst_46 [1] : vector<8x8xf32> to vector<8xf32>
    %125 = vector.shape_cast %124 : vector<8xf32> to vector<8x1xf32>
    %126 = vector.broadcast %125 : vector<8x1xf32> to vector<8x8xf32>
    %127 = arith.subf %123, %126 : vector<8x8xf32>
    %128 = math.exp %127 : vector<8x8xf32>
    %cst_47 = arith.constant dense<0.000000e+00> : vector<8xf32>
    %129 = vector.multi_reduction <add>, %128, %cst_47 [1] : vector<8x8xf32> to vector<8xf32>
    %130 = vector.shape_cast %129 : vector<8xf32> to vector<8x1xf32>
    %131 = tpu.reciprocal %130 {approx = true} : vector<8x1xf32> -> vector<8x1xf32>
    %132 = vector.broadcast %131 : vector<8x1xf32> to vector<8x8xf32>
    %133 = arith.mulf %128, %132 : vector<8x8xf32>
    %134 = arith.truncf %133 : vector<8x8xf32> to vector<8x8xbf16>
    %135 = arith.truncf %116 : vector<8x128xf32> to vector<8x128xbf16>
    %cst_48 = arith.constant dense<0.000000e+00> : vector<8x128xf32>
    %136 = tpu.matmul %134, %135, %cst_48 {dimension_numbers = #tpu.dot_dimension_numbers<[1], [0], [0], [1], [0, 0, 1, 1], [], []>} : vector<8x8xbf16>, vector<8x128xbf16>, vector<8x128xf32> -> vector<8x128xf32>
    %c8 = arith.constant 8 : index
    %c0_49 = arith.constant 0 : index
    %137 = vector.load %arg9[%c8, %c0_49] : memref<16x512xf32, #tpu.memory_space<vmem>>, vector<8x128xf32>
    tpu.vector_store %arg9[%c8, %c0_49], %136 {strides = array<i32>} : memref<16x512xf32, #tpu.memory_space<vmem>>, vector<8x128xf32>,
    %138 = vector.extract_strided_slice %13 {offsets = [8, 128], sizes = [8, 128], strides = [1, 1]} : vector<16x1536xf32> to vector<8x128xf32>
    %139 = vector.extract_strided_slice %13 {offsets = [8, 640], sizes = [8, 128], strides = [1, 1]} : vector<16x1536xf32> to vector<8x128xf32>
    %140 = vector.extract_strided_slice %13 {offsets = [8, 1152], sizes = [8, 128], strides = [1, 1]} : vector<16x1536xf32> to vector<8x128xf32>
    %141 = arith.truncf %138 : vector<8x128xf32> to vector<8x128xbf16>
    %142 = arith.truncf %139 : vector<8x128xf32> to vector<8x128xbf16>
    %cst_50 = arith.constant dense<0.000000e+00> : vector<8x8xf32>
    %143 = tpu.matmul %141, %142, %cst_50 {dimension_numbers = #tpu.dot_dimension_numbers<[1], [1], [0], [0], [0, 0, 1, 0], [], []>} : vector<8x128xbf16>, vector<8x128xbf16>, vector<8x8xf32> -> vector<8x8xf32>
    %cst_51 = arith.constant 0.353553385 : f32
    %144 = vector.broadcast %cst_51 : f32 to vector<8x8xf32>
    %145 = arith.mulf %143, %144 : vector<8x8xf32>
    %146 = vector.broadcast %113 : vector<1x8xf32> to vector<8x8xf32>
    %147 = arith.addf %145, %146 : vector<8x8xf32>
    %cst_52 = arith.constant dense<0xFF800000> : vector<8xf32>
    %148 = vector.multi_reduction <maximumf>, %147, %cst_52 [1] : vector<8x8xf32> to vector<8xf32>
    %149 = vector.shape_cast %148 : vector<8xf32> to vector<8x1xf32>
    %150 = vector.broadcast %149 : vector<8x1xf32> to vector<8x8xf32>
    %151 = arith.subf %147, %150 : vector<8x8xf32>
    %152 = math.exp %151 : vector<8x8xf32>
    %cst_53 = arith.constant dense<0.000000e+00> : vector<8xf32>
    %153 = vector.multi_reduction <add>, %152, %cst_53 [1] : vector<8x8xf32> to vector<8xf32>
    %154 = vector.shape_cast %153 : vector<8xf32> to vector<8x1xf32>
    %155 = tpu.reciprocal %154 {approx = true} : vector<8x1xf32> -> vector<8x1xf32>
    %156 = vector.broadcast %155 : vector<8x1xf32> to vector<8x8xf32>
    %157 = arith.mulf %152, %156 : vector<8x8xf32>
    %158 = arith.truncf %157 : vector<8x8xf32> to vector<8x8xbf16>
    %159 = arith.truncf %140 : vector<8x128xf32> to vector<8x128xbf16>
    %cst_54 = arith.constant dense<0.000000e+00> : vector<8x128xf32>
    %160 = tpu.matmul %158, %159, %cst_54 {dimension_numbers = #tpu.dot_dimension_numbers<[1], [0], [0], [1], [0, 0, 1, 1], [], []>} : vector<8x8xbf16>, vector<8x128xbf16>, vector<8x128xf32> -> vector<8x128xf32>
    %c8_55 = arith.constant 8 : index
    %c128_56 = arith.constant 128 : index
    %161 = vector.load %arg9[%c8_55, %c128_56] : memref<16x512xf32, #tpu.memory_space<vmem>>, vector<8x128xf32>
    tpu.vector_store %arg9[%c8_55, %c128_56], %160 {strides = array<i32>} : memref<16x512xf32, #tpu.memory_space<vmem>>, vector<8x128xf32>,
    %162 = vector.extract_strided_slice %13 {offsets = [8, 256], sizes = [8, 128], strides = [1, 1]} : vector<16x1536xf32> to vector<8x128xf32>
    %163 = vector.extract_strided_slice %13 {offsets = [8, 768], sizes = [8, 128], strides = [1, 1]} : vector<16x1536xf32> to vector<8x128xf32>
    %164 = vector.extract_strided_slice %13 {offsets = [8, 1280], sizes = [8, 128], strides = [1, 1]} : vector<16x1536xf32> to vector<8x128xf32>
    %165 = arith.truncf %162 : vector<8x128xf32> to vector<8x128xbf16>
    %166 = arith.truncf %163 : vector<8x128xf32> to vector<8x128xbf16>
    %cst_57 = arith.constant dense<0.000000e+00> : vector<8x8xf32>
    %167 = tpu.matmul %165, %166, %cst_57 {dimension_numbers = #tpu.dot_dimension_numbers<[1], [1], [0], [0], [0, 0, 1, 0], [], []>} : vector<8x128xbf16>, vector<8x128xbf16>, vector<8x8xf32> -> vector<8x8xf32>
    %cst_58 = arith.constant 0.353553385 : f32
    %168 = vector.broadcast %cst_58 : f32 to vector<8x8xf32>
    %169 = arith.mulf %167, %168 : vector<8x8xf32>
    %170 = vector.broadcast %113 : vector<1x8xf32> to vector<8x8xf32>
    %171 = arith.addf %169, %170 : vector<8x8xf32>
    %cst_59 = arith.constant dense<0xFF800000> : vector<8xf32>
    %172 = vector.multi_reduction <maximumf>, %171, %cst_59 [1] : vector<8x8xf32> to vector<8xf32>
    %173 = vector.shape_cast %172 : vector<8xf32> to vector<8x1xf32>
    %174 = vector.broadcast %173 : vector<8x1xf32> to vector<8x8xf32>
    %175 = arith.subf %171, %174 : vector<8x8xf32>
    %176 = math.exp %175 : vector<8x8xf32>
    %cst_60 = arith.constant dense<0.000000e+00> : vector<8xf32>
    %177 = vector.multi_reduction <add>, %176, %cst_60 [1] : vector<8x8xf32> to vector<8xf32>
    %178 = vector.shape_cast %177 : vector<8xf32> to vector<8x1xf32>
    %179 = tpu.reciprocal %178 {approx = true} : vector<8x1xf32> -> vector<8x1xf32>
    %180 = vector.broadcast %179 : vector<8x1xf32> to vector<8x8xf32>
    %181 = arith.mulf %176, %180 : vector<8x8xf32>
    %182 = arith.truncf %181 : vector<8x8xf32> to vector<8x8xbf16>
    %183 = arith.truncf %164 : vector<8x128xf32> to vector<8x128xbf16>
    %cst_61 = arith.constant dense<0.000000e+00> : vector<8x128xf32>
    %184 = tpu.matmul %182, %183, %cst_61 {dimension_numbers = #tpu.dot_dimension_numbers<[1], [0], [0], [1], [0, 0, 1, 1], [], []>} : vector<8x8xbf16>, vector<8x128xbf16>, vector<8x128xf32> -> vector<8x128xf32>
    %c8_62 = arith.constant 8 : index
    %c256_63 = arith.constant 256 : index
    %185 = vector.load %arg9[%c8_62, %c256_63] : memref<16x512xf32, #tpu.memory_space<vmem>>, vector<8x128xf32>
    tpu.vector_store %arg9[%c8_62, %c256_63], %184 {strides = array<i32>} : memref<16x512xf32, #tpu.memory_space<vmem>>, vector<8x128xf32>,
    %186 = vector.extract_strided_slice %13 {offsets = [8, 384], sizes = [8, 128], strides = [1, 1]} : vector<16x1536xf32> to vector<8x128xf32>
    %187 = vector.extract_strided_slice %13 {offsets = [8, 896], sizes = [8, 128], strides = [1, 1]} : vector<16x1536xf32> to vector<8x128xf32>
    %188 = vector.extract_strided_slice %13 {offsets = [8, 1408], sizes = [8, 128], strides = [1, 1]} : vector<16x1536xf32> to vector<8x128xf32>
    %189 = arith.truncf %186 : vector<8x128xf32> to vector<8x128xbf16>
    %190 = arith.truncf %187 : vector<8x128xf32> to vector<8x128xbf16>
    %cst_64 = arith.constant dense<0.000000e+00> : vector<8x8xf32>
    %191 = tpu.matmul %189, %190, %cst_64 {dimension_numbers = #tpu.dot_dimension_numbers<[1], [1], [0], [0], [0, 0, 1, 0], [], []>} : vector<8x128xbf16>, vector<8x128xbf16>, vector<8x8xf32> -> vector<8x8xf32>
    %cst_65 = arith.constant 0.353553385 : f32
    %192 = vector.broadcast %cst_65 : f32 to vector<8x8xf32>
    %193 = arith.mulf %191, %192 : vector<8x8xf32>
    %194 = vector.broadcast %113 : vector<1x8xf32> to vector<8x8xf32>
    %195 = arith.addf %193, %194 : vector<8x8xf32>
    %cst_66 = arith.constant dense<0xFF800000> : vector<8xf32>
    %196 = vector.multi_reduction <maximumf>, %195, %cst_66 [1] : vector<8x8xf32> to vector<8xf32>
    %197 = vector.shape_cast %196 : vector<8xf32> to vector<8x1xf32>
    %198 = vector.broadcast %197 : vector<8x1xf32> to vector<8x8xf32>
    %199 = arith.subf %195, %198 : vector<8x8xf32>
    %200 = math.exp %199 : vector<8x8xf32>
    %cst_67 = arith.constant dense<0.000000e+00> : vector<8xf32>
    %201 = vector.multi_reduction <add>, %200, %cst_67 [1] : vector<8x8xf32> to vector<8xf32>
    %202 = vector.shape_cast %201 : vector<8xf32> to vector<8x1xf32>
    %203 = tpu.reciprocal %202 {approx = true} : vector<8x1xf32> -> vector<8x1xf32>
    %204 = vector.broadcast %203 : vector<8x1xf32> to vector<8x8xf32>
    %205 = arith.mulf %200, %204 : vector<8x8xf32>
    %206 = arith.truncf %205 : vector<8x8xf32> to vector<8x8xbf16>
    %207 = arith.truncf %188 : vector<8x128xf32> to vector<8x128xbf16>
    %cst_68 = arith.constant dense<0.000000e+00> : vector<8x128xf32>
    %208 = tpu.matmul %206, %207, %cst_68 {dimension_numbers = #tpu.dot_dimension_numbers<[1], [0], [0], [1], [0, 0, 1, 1], [], []>} : vector<8x8xbf16>, vector<8x128xbf16>, vector<8x128xf32> -> vector<8x128xf32>
    %c8_69 = arith.constant 8 : index
    %c384_70 = arith.constant 384 : index
    %209 = vector.load %arg9[%c8_69, %c384_70] : memref<16x512xf32, #tpu.memory_space<vmem>>, vector<8x128xf32>
    tpu.vector_store %arg9[%c8_69, %c384_70], %208 {strides = array<i32>} : memref<16x512xf32, #tpu.memory_space<vmem>>, vector<8x128xf32>,
    %c0_71 = arith.constant 0 : index
    %c0_72 = arith.constant 0 : index
    %210 = vector.load %arg9[%c0_71, %c0_72] : memref<16x512xf32, #tpu.memory_space<vmem>>, vector<16x512xf32>
    %211 = arith.truncf %210 : vector<16x512xf32> to vector<16x512xbf16>
    %c0_73 = arith.constant 0 : index
    %c0_74 = arith.constant 0 : index
    %212 = vector.load %arg4[%c0_73, %c0_74] : memref<512x32xbf16, #tpu.memory_space<vmem>>, vector<512x32xbf16>
    %cst_75 = arith.constant dense<0.000000e+00> : vector<16x32xf32>
    %213 = tpu.matmul %211, %212, %cst_75 {dimension_numbers = #tpu.dot_dimension_numbers<[1], [0], [0], [1], [0, 0, 1, 1], [], []>} : vector<16x512xbf16>, vector<512x32xbf16>, vector<16x32xf32> -> vector<16x32xf32>
    %214 = vector.broadcast %1 : vector<1x32xf32> to vector<16x32xf32>
    %215 = arith.addf %213, %214 : vector<16x32xf32>
    %216 = arith.addf %0, %215 : vector<16x32xf32>
    %cst_76 = arith.constant dense<0.000000e+00> : vector<16xf32>
    %217 = vector.multi_reduction <add>, %216, %cst_76 [1] : vector<16x32xf32> to vector<16xf32>
    %218 = vector.shape_cast %217 : vector<16xf32> to vector<16x1xf32>
    %cst_77 = arith.constant 3.200000e+01 : f32
    %219 = vector.broadcast %cst_77 : f32 to vector<16x1xf32>
    %220 = arith.divf %218, %219 : vector<16x1xf32>
    %221 = vector.broadcast %220 : vector<16x1xf32> to vector<16x32xf32>
    %222 = arith.subf %216, %221 : vector<16x32xf32>
    %223 = arith.mulf %222, %222 : vector<16x32xf32>
    %cst_78 = arith.constant dense<0.000000e+00> : vector<16xf32>
    %224 = vector.multi_reduction <add>, %223, %cst_78 [1] : vector<16x32xf32> to vector<16xf32>
    %225 = vector.shape_cast %224 : vector<16xf32> to vector<16x1xf32>
    %cst_79 = arith.constant 3.200000e+01 : f32
    %226 = vector.broadcast %cst_79 : f32 to vector<16x1xf32>
    %227 = arith.divf %225, %226 : vector<16x1xf32>
    %228 = vector.broadcast %220 : vector<16x1xf32> to vector<16x32xf32>
    %229 = arith.subf %216, %228 : vector<16x32xf32>
    %cst_80 = arith.constant 9.99999996E-13 : f32
    %230 = vector.broadcast %cst_80 : f32 to vector<16x1xf32>
    %231 = arith.addf %227, %230 : vector<16x1xf32>
    %232 = math.rsqrt %231 : vector<16x1xf32>
    %233 = vector.broadcast %232 : vector<16x1xf32> to vector<16x32xf32>
    %234 = arith.mulf %229, %233 : vector<16x32xf32>
    %235 = vector.broadcast %4 : vector<1x32xf32> to vector<16x32xf32>
    %236 = arith.mulf %234, %235 : vector<16x32xf32>
    %237 = vector.broadcast %5 : vector<1x32xf32> to vector<16x32xf32>
    %238 = arith.addf %236, %237 : vector<16x32xf32>
    %239 = arith.truncf %238 : vector<16x32xf32> to vector<16x32xbf16>
    %c0_81 = arith.constant 0 : index
    %c0_82 = arith.constant 0 : index
    %240 = vector.load %arg5[%c0_81, %c0_82] : memref<32x64xbf16, #tpu.memory_space<vmem>>, vector<32x64xbf16>
    %cst_83 = arith.constant dense<0.000000e+00> : vector<16x64xf32>
    %241 = tpu.matmul %239, %240, %cst_83 {dimension_numbers = #tpu.dot_dimension_numbers<[1], [0], [0], [1], [0, 0, 1, 1], [], []>} : vector<16x32xbf16>, vector<32x64xbf16>, vector<16x64xf32> -> vector<16x64xf32>
    %242 = vector.broadcast %2 : vector<1x64xf32> to vector<16x64xf32>
    %243 = arith.addf %241, %242 : vector<16x64xf32>
    %cst_84 = arith.constant 5.000000e-01 : f32
    %244 = vector.broadcast %cst_84 : f32 to vector<16x64xf32>
    %245 = arith.mulf %244, %243 : vector<16x64xf32>
    %cst_85 = arith.constant 4.471500e-02 : f32
    %246 = vector.broadcast %cst_85 : f32 to vector<16x64xf32>
    %247 = arith.mulf %246, %243 : vector<16x64xf32>
    %248 = arith.mulf %247, %243 : vector<16x64xf32>
    %249 = arith.mulf %248, %243 : vector<16x64xf32>
    %250 = arith.addf %243, %249 : vector<16x64xf32>
    %cst_86 = arith.constant 0.797884583 : f32
    %251 = vector.broadcast %cst_86 : f32 to vector<16x64xf32>
    %252 = arith.mulf %251, %250 : vector<16x64xf32>
    %253 = math.tanh %252 : vector<16x64xf32>
    %cst_87 = arith.constant 1.000000e+00 : f32
    %254 = vector.broadcast %cst_87 : f32 to vector<16x64xf32>
    %255 = arith.addf %254, %253 : vector<16x64xf32>
    %256 = arith.mulf %245, %255 : vector<16x64xf32>
    %257 = arith.truncf %256 : vector<16x64xf32> to vector<16x64xbf16>
    %c0_88 = arith.constant 0 : index
    %c0_89 = arith.constant 0 : index
    %258 = vector.load %arg6[%c0_88, %c0_89] : memref<64x32xbf16, #tpu.memory_space<vmem>>, vector<64x32xbf16>
    %cst_90 = arith.constant dense<0.000000e+00> : vector<16x32xf32>
    %259 = tpu.matmul %257, %258, %cst_90 {dimension_numbers = #tpu.dot_dimension_numbers<[1], [0], [0], [1], [0, 0, 1, 1], [], []>} : vector<16x64xbf16>, vector<64x32xbf16>, vector<16x32xf32> -> vector<16x32xf32>
    %260 = vector.broadcast %3 : vector<1x32xf32> to vector<16x32xf32>
    %261 = arith.addf %259, %260 : vector<16x32xf32>
    %262 = arith.addf %238, %261 : vector<16x32xf32>
    %cst_91 = arith.constant dense<0.000000e+00> : vector<16xf32>
    %263 = vector.multi_reduction <add>, %262, %cst_91 [1] : vector<16x32xf32> to vector<16xf32>
    %264 = vector.shape_cast %263 : vector<16xf32> to vector<16x1xf32>
    %cst_92 = arith.constant 3.200000e+01 : f32
    %265 = vector.broadcast %cst_92 : f32 to vector<16x1xf32>
    %266 = arith.divf %264, %265 : vector<16x1xf32>
    %267 = vector.broadcast %266 : vector<16x1xf32> to vector<16x32xf32>
    %268 = arith.subf %262, %267 : vector<16x32xf32>
    %269 = arith.mulf %268, %268 : vector<16x32xf32>
    %cst_93 = arith.constant dense<0.000000e+00> : vector<16xf32>
    %270 = vector.multi_reduction <add>, %269, %cst_93 [1] : vector<16x32xf32> to vector<16xf32>
    %271 = vector.shape_cast %270 : vector<16xf32> to vector<16x1xf32>
    %cst_94 = arith.constant 3.200000e+01 : f32
    %272 = vector.broadcast %cst_94 : f32 to vector<16x1xf32>
    %273 = arith.divf %271, %272 : vector<16x1xf32>
    %274 = vector.broadcast %266 : vector<16x1xf32> to vector<16x32xf32>
    %275 = arith.subf %262, %274 : vector<16x32xf32>
    %cst_95 = arith.constant 9.99999996E-13 : f32
    %276 = vector.broadcast %cst_95 : f32 to vector<16x1xf32>
    %277 = arith.addf %273, %276 : vector<16x1xf32>
    %278 = math.rsqrt %277 : vector<16x1xf32>
    %279 = vector.broadcast %278 : vector<16x1xf32> to vector<16x32xf32>
    %280 = arith.mulf %275, %279 : vector<16x32xf32>
    %281 = vector.broadcast %6 : vector<1x32xf32> to vector<16x32xf32>
    %282 = arith.mulf %280, %281 : vector<16x32xf32>
    %283 = vector.broadcast %7 : vector<1x32xf32> to vector<16x32xf32>
    %284 = arith.addf %282, %283 : vector<16x32xf32>
    %c0_96 = arith.constant 0 : index
    %c0_97 = arith.constant 0 : index
    %285 = vector.load %arg8[%c0_96, %c0_97] : memref<16x32xf32, #tpu.memory_space<vmem>>, vector<16x32xf32>
    tpu.vector_store %arg8[%c0_96, %c0_97], %284 {strides = array<i32>} : memref<16x32xf32, #tpu.memory_space<vmem>>, vector<16x32xf32>,
    return
  }
}

module attributes {stable_mosaic.version = 11 : i64} {
  func.func @_heads_kernel(%arg0: memref<16x32xf32, #tpu.memory_space<vmem>>, %arg1: memref<32x32xbf16, #tpu.memory_space<vmem>>, %arg2: memref<1x32xf32, #tpu.memory_space<vmem>>, %arg3: memref<32x128xbf16, #tpu.memory_space<vmem>>, %arg4: memref<1x128xf32, #tpu.memory_space<vmem>>, %arg5: memref<32x128xbf16, #tpu.memory_space<vmem>>, %arg6: memref<1x128xf32, #tpu.memory_space<vmem>>, %arg7: memref<16x128xf32, #tpu.memory_space<vmem>>, %arg8: memref<2x128xf32, #tpu.memory_space<vmem>>) attributes {dimension_semantics = [], scalar_prefetch = 0 : i64, scratch_operands = 0 : i64, tpu.core_type = #tpu.core_type<tc>} {
    %c0 = arith.constant 0 : index
    %c0_0 = arith.constant 0 : index
    %0 = vector.load %arg0[%c0, %c0_0] : memref<16x32xf32, #tpu.memory_space<vmem>>, vector<16x32xf32>
    %1 = arith.truncf %0 : vector<16x32xf32> to vector<16x32xbf16>
    %c0_1 = arith.constant 0 : index
    %c0_2 = arith.constant 0 : index
    %2 = vector.load %arg5[%c0_1, %c0_2] : memref<32x128xbf16, #tpu.memory_space<vmem>>, vector<32x128xbf16>
    %cst = arith.constant dense<0.000000e+00> : vector<16x128xf32>
    %3 = tpu.matmul %1, %2, %cst {dimension_numbers = #tpu.dot_dimension_numbers<[1], [0], [0], [1], [0, 0, 1, 1], [], []>} : vector<16x32xbf16>, vector<32x128xbf16>, vector<16x128xf32> -> vector<16x128xf32>
    %c0_3 = arith.constant 0 : index
    %c0_4 = arith.constant 0 : index
    %4 = vector.load %arg6[%c0_3, %c0_4] : memref<1x128xf32, #tpu.memory_space<vmem>>, vector<1x128xf32>
    %5 = vector.broadcast %4 : vector<1x128xf32> to vector<16x128xf32>
    %6 = arith.addf %3, %5 : vector<16x128xf32>
    %c0_5 = arith.constant 0 : index
    %c0_6 = arith.constant 0 : index
    %7 = vector.load %arg7[%c0_5, %c0_6] : memref<16x128xf32, #tpu.memory_space<vmem>>, vector<16x128xf32>
    tpu.vector_store %arg7[%c0_5, %c0_6], %6 {strides = array<i32>} : memref<16x128xf32, #tpu.memory_space<vmem>>, vector<16x128xf32>,
    %8 = vector.extract_strided_slice %0 {offsets = [0, 0], sizes = [1, 32], strides = [1, 1]} : vector<16x32xf32> to vector<1x32xf32>
    %9 = vector.extract_strided_slice %0 {offsets = [8, 0], sizes = [1, 32], strides = [1, 1]} : vector<16x32xf32> to vector<1x32xf32>
    %10 = tpu.concatenate %8, %9 in 0 : vector<1x32xf32>, vector<1x32xf32> -> vector<2x32xf32>
    %11 = arith.truncf %10 : vector<2x32xf32> to vector<2x32xbf16>
    %c0_7 = arith.constant 0 : index
    %c0_8 = arith.constant 0 : index
    %12 = vector.load %arg1[%c0_7, %c0_8] : memref<32x32xbf16, #tpu.memory_space<vmem>>, vector<32x32xbf16>
    %cst_9 = arith.constant dense<0.000000e+00> : vector<2x32xf32>
    %13 = tpu.matmul %11, %12, %cst_9 {dimension_numbers = #tpu.dot_dimension_numbers<[1], [0], [0], [1], [0, 0, 1, 1], [], []>} : vector<2x32xbf16>, vector<32x32xbf16>, vector<2x32xf32> -> vector<2x32xf32>
    %c0_10 = arith.constant 0 : index
    %c0_11 = arith.constant 0 : index
    %14 = vector.load %arg2[%c0_10, %c0_11] : memref<1x32xf32, #tpu.memory_space<vmem>>, vector<1x32xf32>
    %15 = vector.broadcast %14 : vector<1x32xf32> to vector<2x32xf32>
    %16 = arith.addf %13, %15 : vector<2x32xf32>
    %17 = math.tanh %16 : vector<2x32xf32>
    %18 = arith.truncf %17 : vector<2x32xf32> to vector<2x32xbf16>
    %c0_12 = arith.constant 0 : index
    %c0_13 = arith.constant 0 : index
    %19 = vector.load %arg3[%c0_12, %c0_13] : memref<32x128xbf16, #tpu.memory_space<vmem>>, vector<32x128xbf16>
    %cst_14 = arith.constant dense<0.000000e+00> : vector<2x128xf32>
    %20 = tpu.matmul %18, %19, %cst_14 {dimension_numbers = #tpu.dot_dimension_numbers<[1], [0], [0], [1], [0, 0, 1, 1], [], []>} : vector<2x32xbf16>, vector<32x128xbf16>, vector<2x128xf32> -> vector<2x128xf32>
    %c0_15 = arith.constant 0 : index
    %c0_16 = arith.constant 0 : index
    %21 = vector.load %arg4[%c0_15, %c0_16] : memref<1x128xf32, #tpu.memory_space<vmem>>, vector<1x128xf32>
    %22 = vector.broadcast %21 : vector<1x128xf32> to vector<2x128xf32>
    %23 = arith.addf %20, %22 : vector<2x128xf32>
    %c0_17 = arith.constant 0 : index
    %c0_18 = arith.constant 0 : index
    %24 = vector.load %arg8[%c0_17, %c0_18] : memref<2x128xf32, #tpu.memory_space<vmem>>, vector<2x128xf32>
    tpu.vector_store %arg8[%c0_17, %c0_18], %23 {strides = array<i32>} : memref<2x128xf32, #tpu.memory_space<vmem>>, vector<2x128xf32>,
    return
  }
}

</mosaic_0001>

<bundles_post_ra>
// kernel: tile.0
= control target key start
LH: loop header
LB: loop body
LE: loop exit
PB: predicated region body
PF: predicated region fallthrough
CT: control target
= control target key end

     0   :  { %s66_s8 = smov 125   ;;  %s67_s9 = smov 123   ;;  %vm7_vm0 = vcmask 7168   ;;  %s117_s0 = inlined_call_operand.vmem [shape: s32[2,8], index: 0, kind: input, shape index: {}]   ;;  %s118_s1 = inlined_call_operand.vmem [shape: s32[16,1], index: 1, kind: output, shape index: {}]  }
   0x1   :  { %v4_v0 = vld [vmem:[%s117_s0] sm:$0x3]  ;;  %s65_s0 = smov 127   ;;  %s68_s10 = smov 126  }
   0x2   :  { %5 = vst [vmem:[#allocation0] sm:$0x3] %v4_v0  ;;  %s69_s11 = smov 124   ;;  %s70_s12 = smov 122  }
   0x3   :  { %s71_s13 = smov 121  }
   0x9   :  { %v9_v1 = vld [vmem:[#allocation0] sm:$0x3]  }
   0xa   :  { %v21_v2 = vld [vmem:[#allocation0] sm:$0x3]   ;;  %10 = vrot.lane.b32.xlu0 %v9_v1, %s65_s0 }
   0xb   :  { %22 = vrot.lane.b32.xlu1 %v21_v2, %s66_s8  ;;  %v33_v3 = vld [vmem:[#allocation0] sm:$0x3]  }
   0xc   :  { %34 = vrot.lane.b32.xlu2 %v33_v3, %s67_s9  ;;  %v15_v4 = vld [vmem:[#allocation0] sm:$0x3]  }
   0xd   :  { %v27_v5 = vld [vmem:[#allocation0] sm:$0x3]  }
   0xe   :  { %v39_v6 = vld [vmem:[#allocation0] sm:$0x3]  }
   0xf   :  { %v45_v7 = vld [vmem:[#allocation0] sm:$0x3]  }
  0x10   :  { %v6_v8 = vld [vmem:[#allocation0] sm:$0x3]  }
  0x11   :  { %8 = vst.msk [vmem:[%s118_s1] ss:$8 sm:$0x3] %vm7_vm0, %v6_v8  }
  0x12   :  { %16 = vrot.lane.b32.xlu0 %v15_v4, %s68_s10 }
  0x13   :  { %28 = vrot.lane.b32.xlu1 %v27_v5, %s69_s11 }
  0x14   :  { %40 = vrot.lane.b32.xlu2 %v39_v6, %s70_s12 }
  0x1a   :  { %46 = vrot.lane.b32.xlu0 %v45_v7, %s71_s13 }
  0x66   :  { %v35_v9 = vpop.permute.xlu2 %34  }
  0x67   :  { %55 = vst.msk [vmem:[%s118_s1 + $0x5] ss:$8 sm:$0x3] %vm7_vm0, %v35_v9  }
  0x6e   :  { %v41_v10 = vpop.permute.xlu2 %40  }
  0x6f   :  { %56 = vst.msk [vmem:[%s118_s1 + $0x6] ss:$8 sm:$0x3] %vm7_vm0, %v41_v10  }
  0x7c   :  { %v11_v11 = vpop.permute.xlu0 %10  }
  0x7d   :  { %v23_v12 = vpop.permute.xlu1 %22   ;;  %51 = vst.msk [vmem:[%s118_s1 + $0x1] ss:$8 sm:$0x3] %vm7_vm0, %v11_v11  }
  0x7e   :  { %53 = vst.msk [vmem:[%s118_s1 + $0x3] ss:$8 sm:$0x3] %vm7_vm0, %v23_v12  }
  0x84   :  { %v17_v13 = vpop.permute.xlu0 %16  }
  0x85   :  { %v29_v14 = vpop.permute.xlu1 %28   ;;  %52 = vst.msk [vmem:[%s118_s1 + $0x2] ss:$8 sm:$0x3] %vm7_vm0, %v17_v13  }
  0x86   :  { %54 = vst.msk [vmem:[%s118_s1 + $0x4] ss:$8 sm:$0x3] %vm7_vm0, %v29_v14  }
  0x8c   :  { %v47_v15 = vpop.permute.xlu0 %46  }
  0x8d   :  { %57 = vst.msk [vmem:[%s118_s1 + $0x7] ss:$8 sm:$0x3] %vm7_vm0, %v47_v15  }

// kernel: joint_bert_forward.7
= control target key start
LH: loop header
LB: loop body
LE: loop exit
PB: predicated region body
PF: predicated region fallthrough
CT: control target
= control target key end

     0   :  { %14 = vsyncpa [#allocation3], 0  ;;  %s376_s0 = inlined_call_operand.vmem [shape: f32[16,32], index: 0, kind: input, shape index: {}]   ;;  %s377_s1 = inlined_call_operand.vmem [shape: bf16[32,32], index: 1, kind: input, shape index: {}]   ;;  %s378_s2 = inlined_call_operand.vmem [shape: f32[1,32], index: 2, kind: input, shape index: {}]   ;;  %s379_s3 = inlined_call_operand.vmem [shape: bf16[32,128], index: 3, kind: input, shape index: {}]   ;;  %s380_s4 = inlined_call_operand.vmem [shape: f32[1,128], index: 4, kind: input, shape index: {}, may-alias: {4,6}]   ;;  %s381_s5 = inlined_call_operand.hbm [shape: bf16[32,128], index: 5, kind: input, shape index: {}]   ;;  %s382_s6 = inlined_call_operand.vmem [shape: f32[1,128], index: 6, kind: input, shape index: {}, may-alias: {4,6}]   ;;  %s383_s7 = inlined_call_operand.vmem [shape: f32[16,128], index: 7, kind: output, shape index: {0}]   ;;  %s384_s8 = inlined_call_operand.hbm [shape: f32[2,128], index: 8, kind: output, shape index: {1}]  }
   0x1   :  { %15 = vsyncpa [#allocation4], 0  ;;  %s30_s29 = sshll.u32 %s381_s5, 4  ;;  %s285_s30 = smov [#allocation2]   ;;  %s31_s29 = int_to_ptr.hbm [resolvable:$true] %s30_s29 }
   0x2   :  { %s32_s9 = sshll.u32 %s285_s30, 4  ;;  %s286_s10 = smov 64   ;;  %s33_s9 = int_to_ptr.vmem [resolvable:$true] %s32_s9 }
   0x3   :  { %s287_s11 = smov 4  }
   0x4   :  { %38 = dma.hbm_to_vmem [thread:$0]  %s31_s29, 256, %s33_s9, [#allocation3], %s286_s10, %s286_s10, %s287_s11  }
   0x5   :  { %281 = dma.done.wait [#allocation3], 256  }
   0x6   :  { %282 = vsyncadd [#allocation3], 4294967040  ;;  %v221_v0 = vld [vmem:[%s377_s1 + $0x8] sm:$0xff]  ;;  %v46_v1 = vld [vmem:[%s376_s0] sm:$0xff]  ;;  %vm92_vm0 = vcmask 1040384   ;;  %vm69_vm1 = vcmask 261120  }
   0x7   :  { %v47_v2 = vld [vmem:[%s376_s0 + $0x8] sm:$0xff]  ;;  %124 = vmatpush.bf16.msra.mxu1 %v221_v0  ;;  %v220_v4 = vld [vmem:[%s377_s1] sm:$0xff]  ;;  %s288_s29 = smov [#allocation5]   ;;  %s179_s10 = sshll.u32 %s384_s8, 4  ;;  %s180_s10 = int_to_ptr.hbm [resolvable:$true] %s179_s10 }
   0x8   :  { %v219_v3 = vld [vmem:[#allocation2 + $0x8] sm:$0xff]  ;;  %v90_v5 = vrot.slane %v47_v2, 7  ;;  %v218_v8 = vld [vmem:[#allocation2] sm:$0xff]  ;;  %v48_v10 = vpack.c.bf16 %v47_v2, %v46_v1  ;;  %s177_s30 = sshll.u32 %s288_s29, 4  ;;  %s178_s30 = int_to_ptr.vmem [resolvable:$true] %s177_s30 }
   0x9   :  { %79 = vmatpush.bf16.msra.mxu0 %v219_v3  ;;  %v223_v9 = vld [vmem:[%s379_s3 + $0x8] sm:$0xff]  ;;  %v222_v11 = vld [vmem:[%s379_s3] sm:$0xff] }
   0xa   :  { %v93_v6 = vsel %vm92_vm0, %v46_v1, %v90_v5  ;;  %162 = vmatpush.bf16.msra.mxu2 %v223_v9  ;;  %v228_v12 = vld [vmem:[%s378_s2] ss:$0 sm:$0xff] }
   0xb   :  { %v94_v7 = vpack.c.bf16 %v93_v6, %v93_v6  ;;  %125 = vmatpush.bf16.msra.mxu1 %v220_v4  ;;  %v229_v18 = vld [vmem:[%s382_s6] ss:$0 sm:$0xff] }
   0xc   :  { %v230_v23 = vld [vmem:[%s380_s4] ss:$0 sm:$0xff] }
   0xd   :  { %80 = vmatpush.bf16.msra.mxu0 %v218_v8 }
   0xe   :  { %208 = vmatmul.msk.bf16.vlgmr.msra.gmra.mxu1 %vm69_vm1, %v94_v7  ;;  %163 = vmatpush.bf16.msra.mxu2 %v222_v11 }
  0x10   :  { %199 = vmatmul.msk.bf16.vlgmr.msra.gmra.mxu0 %vm69_vm1, %v48_v10 }
  0x8b   :  { %v127_v13 = vpop.f32.mrf.mxu1 }
  0x8c   :  { %v128_v14 = vadd.f32 %v228_v12, %v127_v13 }
  0x8d   :  { %v82_v19 = vpop.f32.mrf.mxu0 }
  0x8e   :  { %231 = vtanh.f32 %v128_v14  ;;  %v83_v20 = vadd.f32 %v229_v18, %v82_v19 }
  0x90   :  { %87 = vst [vmem:[%s383_s7] sm:$0xff] %v83_v20 }
  0x93   :  { %v129_v15 = vpop.f32.mrf.mxu1 }
  0x94   :  { %v232_v16 = vpop.eup %231 }
  0x95   :  { %v132_v17 = vpack.c.bf16 %v232_v16, %v232_v16  ;;  %v84_v21 = vpop.f32.mrf.mxu0 }
  0x96   :  { %v85_v22 = vadd.f32 %v229_v18, %v84_v21 }
  0x97   :  { %217 = vmatmul.msk.bf16.vlgmr.msra.gmra.mxu2 %vm69_vm1, %v132_v17 }
  0x98   :  { %88 = vst [vmem:[%s383_s7 + $0x8] sm:$0xff] %v85_v22 }
 0x11a   :  { %v165_v24 = vpop.f32.mrf.mxu2 }
 0x11b   :  { %v166_v25 = vadd.f32 %v230_v23, %v165_v24 }
 0x11d   :  { %169 = vst [vmem:[#allocation5] sm:$0x3] %v166_v25 }
 0x11e   :  { %182 = dma.vmem_to_hbm [thread:$0]  %s178_s30, 32, %s180_s10, [#allocation4]  }
 0x122   :  { %v167_v26 = vpop.f32.mrf.mxu2 }
 0x123   :  { %283 = dma.done.wait [#allocation4], 32  }
 0x124   :  { %284 = vsyncadd [#allocation4], 4294967264 }
 0x125   :  { %189 = vsyncpa [#allocation3], 1 }
 0x126   :  { %190 = vsyncpa [#allocation4], 1 }

// kernel: joint_bert_forward.4
= control target key start
LH: loop header
LB: loop body
LE: loop exit
PB: predicated region body
PF: predicated region fallthrough
CT: control target
= control target key end

     0   :  { %13 = vsyncpa [#allocation3], 0  ;;  %s487_s0 = inlined_call_operand.vmem [shape: s32[16,1], index: 0, kind: input, shape index: {}]   ;;  %s488_s1 = inlined_call_operand.vmem [shape: s32[16,1], index: 1, kind: input, shape index: {}]   ;;  %s489_s2 = inlined_call_operand.vmem [shape: s32[16,1], index: 2, kind: input, shape index: {}]   ;;  %s490_s3 = inlined_call_operand.hbm [shape: f32[100,32], index: 3, kind: input, shape index: {}]   ;;  %s491_s4 = inlined_call_operand.vmem [shape: f32[2,32], index: 4, kind: input, shape index: {}]   ;;  %s492_s5 = inlined_call_operand.hbm [shape: f32[16,32], index: 5, kind: input, shape index: {}]   ;;  %s493_s6 = inlined_call_operand.vmem [shape: f32[1,32], index: 6, kind: input, shape index: {}]   ;;  %s494_s7 = inlined_call_operand.vmem [shape: f32[1,32], index: 7, kind: input, shape index: {}]   ;;  %s495_s8 = inlined_call_operand.vmem [shape: f32[16,32], index: 8, kind: output, shape index: {}]  }
   0x1   :  { %s25_s29 = sshll.u32 %s490_s3, 4  ;;  %s26_s29 = int_to_ptr.hbm [resolvable:$true] %s25_s29 }
   0x2   :  { %14 = vsyncpa [#allocation5], 0  ;;  %s390_s30 = smov [#allocation2]   ;;  %s40_s12 = sshll.u32 %s492_s5, 4  ;;  %s41_s12 = int_to_ptr.hbm [resolvable:$true] %s40_s12 }
   0x3   :  { %s27_s9 = sshll.u32 %s390_s30, 4  ;;  %s391_s13 = smov 128   ;;  %s28_s9 = int_to_ptr.vmem [resolvable:$true] %s27_s9 }
   0x4   :  { %s392_s14 = smov 8   ;;  %s393_s15 = smov [#allocation4]  }
   0x5   :  { %33 = dma.hbm_to_vmem [thread:$0]  %s26_s29, 1664, %s28_s9, [#allocation3], %s391_s13, %s391_s13, %s392_s14  }
   0x6   :  { %s42_s16 = sshll.u32 %s393_s15, 4  ;;  %s43_s16 = int_to_ptr.vmem [resolvable:$true] %s42_s16 }
   0x7   :  { %48 = dma.hbm_to_vmem [thread:$0]  %s41_s12, 256, %s43_s16, [#allocation5], %s391_s13, %s391_s13, %s392_s14  }
   0x8   :  { %386 = dma.done.wait [#allocation3], 1664  }
   0x9   :  { %387 = vsyncadd [#allocation3], 4294965632 }
   0xa   :  { %388 = dma.done.wait [#allocation5], 256  }
   0xb   :  { %389 = vsyncadd [#allocation5], 4294967040  ;;  %v394_v0 = vmov 0   ;;  %v91_v1 = vld [vmem:[%s489_s2] sm:$0xff]  ;;  %v64_v2 = vld [vmem:[%s487_s0 + $0x8] sm:$0xff]  ;;  %vm160_vm0 = vcmask 1043456   ;;  %v61_v22 = vlaneseq }
   0xc   :  { %328 = vset.pattern.permute.xlu1 %v394_v0  ;;  %327 = vset.pattern.permute.xlu0 %v394_v0  ;;  %v63_v3 = vld [vmem:[%s487_s0] sm:$0xff]  ;;  %v116_v5 = vld [vmem:[#allocation2 + $0x58] sm:$0xff]  ;;  %v115_v6 = vld [vmem:[#allocation2 + $0x50] sm:$0xff]  ;;  %vm126_vm1 = vcmask 1041408   ;;  %v395_v26 = vmov 0.0   ;;  %vm153_vm3 = vcmask 818176  }
   0xd   :  { %329 = vset.pattern.permute.xlu2 %v394_v0  ;;  %94 = vperm.xlu0 %327, %v91_v1   ;;  %v117_v4 = vld [vmem:[#allocation2 + $0x60] sm:$0xf]  ;;  %v188_v7 = vld [vmem:[#allocation4 + $0x8] sm:$0xff]  ;;  %v92_v9 = vld [vmem:[%s489_s2 + $0x8] sm:$0xff]  ;;  %v62_v23 = vand.u32 127, %v61_v22  ;;  %vm189_vm4 = vcmask 130048  }
   0xe   :  { %69 = vperm.xlu1 %328, %v64_v2   ;;  %66 = vperm.xlu2 %329, %v63_v3   ;;  %v77_v8 = vld [vmem:[%s488_s1] sm:$0xff]  ;;  %v78_v10 = vld [vmem:[%s488_s1 + $0x8] sm:$0xff]  ;;  %v112_v13 = vld [vmem:[#allocation2 + $0x38] sm:$0xff]  ;;  %vm119_vm7 = vcmask 15360   ;;  %vm223_vm11 = vcmask 261120   ;;  %v396_v50 = vmov 32.0  }
   0xf   :  { %307 = vmatpush.msk.msra.mxu3 %vm160_vm0, %v117_v4  ;;  %302 = vmatpush.msk.msra.mxu1 %vm160_vm0, %v117_v4  ;;  %v114_v11 = vld [vmem:[#allocation2 + $0x48] sm:$0xff]  ;;  %v113_v12 = vld [vmem:[#allocation2 + $0x40] sm:$0xff]  ;;  %v111_v14 = vld [vmem:[#allocation2 + $0x30] sm:$0xff]  ;;  %332 = vrcp.f32 %v396_v50 }
  0x10   :  { %210 = vmatpush.msra.mxu2 %v188_v7  ;;  %v110_v15 = vld [vmem:[#allocation2 + $0x28] sm:$0xff]  ;;  %v109_v16 = vld [vmem:[#allocation2 + $0x20] sm:$0xff]  ;;  %v108_v17 = vld [vmem:[#allocation2 + $0x18] sm:$0xff] }
  0x11   :  { %308 = vmatpush.msra.mxu3 %v116_v5  ;;  %168 = vmatpush.msra.mxu1 %v116_v5  ;;  %v107_v18 = vld [vmem:[#allocation2 + $0x10] sm:$0xff]  ;;  %v187_v19 = vld [vmem:[#allocation4] sm:$0xff]  ;;  %v105_v21 = vld [vmem:[#allocation2] sm:$0xff] }
  0x12   :  { %211 = vmatpush.msra.mxu2 %v187_v19  ;;  %v106_v20 = vld [vmem:[#allocation2 + $0x8] sm:$0xff]  ;;  %v118_v25 = vld [vmem:[%s491_s4] sm:$0x3] }
  0x13   :  { %309 = vmatpush.msra.mxu3 %v115_v6  ;;  %169 = vmatpush.msra.mxu1 %v115_v6 }
  0x14   :  { %299 = vmatpush.msk.msra.mxu0 %vm126_vm1, %v118_v25 }
  0x15   :  { %80 = vperm.xlu0 %327, %v77_v8   ;;  %310 = vmatpush.msra.mxu3 %v114_v11  ;;  %v333_v51 = vpop.eup %332 }
  0x16   :  { %97 = vperm.xlu1 %328, %v92_v9   ;;  %83 = vperm.xlu2 %329, %v78_v10   ;;  %v231_v52 = vmul.f32 32.0, %v333_v51  ;;  %vm235_vm12 = vweird.f32 %v333_v51 }
  0x17   :  { %170 = vmatpush.msra.mxu1 %v114_v11  ;;  %311 = vmatpush.msra.mxu3 %v113_v12 }
  0x18   :  { %v232_v53 = vsub.f32 1.0, %v231_v52 }
  0x19   :  { %171 = vmatpush.msra.mxu1 %v113_v12  ;;  %312 = vmatpush.msra.mxu3 %v112_v13 }
  0x1a   :  { %v233_v54 = vmul.f32 %v333_v51, %v232_v53 }
  0x1b   :  { %172 = vmatpush.msra.mxu1 %v112_v13  ;;  %313 = vmatpush.msra.mxu3 %v111_v14 }
  0x1c   :  { %v234_v55 = vadd.f32 %v333_v51, %v233_v54 }
  0x1d   :  { %173 = vmatpush.msra.mxu1 %v111_v14  ;;  %314 = vmatpush.msra.mxu3 %v110_v15 }
  0x1e   :  { %v236_v56 = vsel %vm235_vm12, %v333_v51, %v234_v55 }
  0x1f   :  { %174 = vmatpush.msra.mxu1 %v110_v15  ;;  %315 = vmatpush.msra.mxu3 %v109_v16 }
  0x21   :  { %175 = vmatpush.msra.mxu1 %v109_v16  ;;  %316 = vmatpush.msra.mxu3 %v108_v17 }
  0x23   :  { %176 = vmatpush.msra.mxu1 %v108_v17  ;;  %317 = vmatpush.msra.mxu3 %v107_v18  ;;  %v330_v17 = vld [vmem:[%s493_s6] ss:$0 sm:$0xff] }
  0x25   :  { %177 = vmatpush.msra.mxu1 %v107_v18  ;;  %318 = vmatpush.msra.mxu3 %v106_v20 }
  0x27   :  { %178 = vmatpush.msra.mxu1 %v106_v20  ;;  %319 = vmatpush.msra.mxu3 %v105_v21  ;;  %v331_v20 = vld [vmem:[%s494_s7] ss:$0 sm:$0xff] }
  0x29   :  { %179 = vmatpush.msra.mxu1 %v105_v21 }
  0x68   :  { %v67_v24 = vpop.permute.xlu2 %66 }
  0x69   :  { %vm71_vm2 = vcmp.eq.s32.totalorder %v62_v23, %v67_v24 }
  0x6a   :  { %v293_v27 = vsel %vm71_vm2, 1.0, %v395_v26 }
  0x6b   :  { %303 = vmatmul.msk.f32.vlgmr.msra.gmra.mxu1 %vm153_vm3, %v293_v27 }
  0x70   :  { %v84_v36 = vpop.permute.xlu2 %83 }
  0x71   :  { %vm86_vm10 = vcmp.eq.s32.totalorder %v62_v23, %v84_v36 }
  0x72   :  { %v296_v37 = vsel %vm86_vm10, 1.0, %v395_v26 }
  0x7f   :  { %v95_v28 = vpop.permute.xlu0 %94 }
  0x80   :  { %v70_v29 = vpop.permute.xlu1 %69  ;;  %vm99_vm5 = vcmp.eq.s32.totalorder %v62_v23, %v95_v28 }
  0x81   :  { %vm72_vm6 = vcmp.eq.s32.totalorder %v62_v23, %v70_v29  ;;  %v297_v30 = vsel %vm99_vm5, 1.0, %v395_v26 }
  0x82   :  { %v294_v31 = vsel %vm72_vm6, 1.0, %v395_v26  ;;  %305 = vmatmul.msk.f32.vlgmr.msra.gmra.mxu2 %vm189_vm4, %v297_v30 }
  0x83   :  { %304 = vmatmul.msk.f32.vlgmr.msra.gmra.mxu3 %vm153_vm3, %v294_v31 }
  0x87   :  { %v81_v32 = vpop.permute.xlu0 %80 }
  0x88   :  { %v98_v33 = vpop.permute.xlu1 %97  ;;  %vm85_vm8 = vcmp.eq.s32.totalorder %v62_v23, %v81_v32 }
  0x89   :  { %vm100_vm9 = vcmp.eq.s32.totalorder %v62_v23, %v98_v33  ;;  %v295_v34 = vsel %vm85_vm8, 1.0, %v395_v26 }
  0x8a   :  { %v298_v35 = vsel %vm100_vm9, 1.0, %v395_v26  ;;  %300 = vmatmul.msk.f32.vlgmr.msra.gmra.mxu0 %vm119_vm7, %v295_v34 }
  0x8b   :  { %306 = vmatmul.msk.f32.gmra.mxu2 %vm189_vm4, %v298_v35 }
  0x92   :  { %301 = vmatmul.msk.f32.gmra.mxu0 %vm119_vm7, %v296_v37 }
  0xe8   :  { %v181_v38 = vpop.f32.mrf.mxu1 }
 0x105   :  { %v213_v39 = vpop.f32.mrf.mxu2 }
 0x106   :  { %v184_v44 = vpop.f32.mrf.mxu3 }
 0x107   :  { %v147_v40 = vpop.f32.mrf.mxu0 }
 0x108   :  { %v182_v41 = vadd.f32 %v181_v38, %v147_v40 }
 0x10a   :  { %v219_v42 = vadd.f32 %v213_v39, %v182_v41 }
 0x10c   :  { %v224_v43 = vsel %vm223_vm11, %v219_v42, 0.0 }
 0x10d   :  { %225 = vadd.xlane.f32.xlu0 %v224_v43 }
 0x10e   :  { %v216_v47 = vpop.f32.mrf.mxu2 }
 0x10f   :  { %v150_v45 = vpop.f32.mrf.mxu0 }
 0x110   :  { %v185_v46 = vadd.f32 %v184_v44, %v150_v45 }
 0x112   :  { %v220_v48 = vadd.f32 %v216_v47, %v185_v46 }
 0x114   :  { %v227_v49 = vsel %vm223_vm11, %v220_v48, 0.0 }
 0x115   :  { %228 = vadd.xlane.f32.xlu1 %v227_v49 }
 0x180   :  { %v226_v57 = vpop.xlane.xlu0 %225 }
 0x181   :  { %v237_v58 = vmul.f32 %v236_v56, %v226_v57 }
 0x183   :  { %v239_v59 = vsub.f32 %v219_v42, %v237_v58 }
 0x185   :  { %v241_v60 = vmul.f32 %v239_v59, %v239_v59 }
 0x187   :  { %v243_v61 = vsel %vm223_vm11, %v241_v60, 0.0 }
 0x188   :  { %244 = vadd.xlane.f32.xlu2 %v243_v61  ;;  %v229_v62 = vpop.xlane.xlu1 %228 }
 0x189   :  { %v238_v63 = vmul.f32 %v236_v56, %v229_v62 }
 0x18b   :  { %v240_v0 = vsub.f32 %v220_v48, %v238_v63 }
 0x18d   :  { %v242_v1 = vmul.f32 %v240_v0, %v240_v0 }
 0x18f   :  { %v246_v2 = vsel %vm223_vm11, %v242_v1, 0.0 }
 0x190   :  { %247 = vadd.xlane.f32.xlu2 %v246_v2 }
 0x1fb   :  { %v245_v3 = vpop.xlane.xlu2 %244 }
 0x1fc   :  { %v249_v4 = vmul.f32 %v245_v3, %v236_v56 }
 0x1fe   :  { %v251_v5 = vadd.f32 1e-12, %v249_v4 }
 0x200   :  { %334 = vrsqrt.f32 %v251_v5  ;;  %vm259_vm14 = vweird.f32 %v251_v5 }
 0x203   :  { %v248_v6 = vpop.xlane.xlu2 %247 }
 0x204   :  { %v250_v7 = vmul.f32 %v248_v6, %v236_v56 }
 0x206   :  { %v335_v8 = vpop.eup %334  ;;  %v252_v9 = vadd.f32 1e-12, %v250_v7 }
 0x207   :  { %v254_v10 = vmul.f32 %v335_v8, %v251_v5  ;;  %vm260_vm13 = vweird.f32 %v335_v8 }
 0x208   :  { %336 = vrsqrt.f32 %v252_v9  ;;  %vm261_vm15 = vmor %vm259_vm14, %vm260_vm13  ;;  %vm269_vm1 = vweird.f32 %v252_v9 }
 0x209   :  { %v255_v11 = vmul.f32 %v335_v8, %v254_v10 }
 0x20b   :  { %v256_v12 = vmul.f32 0.5, %v255_v11 }
 0x20d   :  { %v257_v13 = vsub.f32 1.5, %v256_v12 }
 0x20e   :  { %v337_v14 = vpop.eup %336 }
 0x20f   :  { %v258_v15 = vmul.f32 %v335_v8, %v257_v13  ;;  %v264_v16 = vmul.f32 %v337_v14, %v252_v9  ;;  %vm270_vm0 = vweird.f32 %v337_v14 }
 0x210   :  { %vm271_vm2 = vmor %vm269_vm1, %vm270_vm0 }
 0x211   :  { %v262_v18 = vsel %vm261_vm15, %v335_v8, %v258_v15  ;;  %v265_v19 = vmul.f32 %v337_v14, %v264_v16 }
 0x212   :  { %v273_v21 = vmul.f32 %v262_v18, %v239_v59 }
 0x213   :  { %v266_v22 = vmul.f32 0.5, %v265_v19 }
 0x214   :  { %v278_v23 = vmul.f32 %v330_v17, %v273_v21 }
 0x215   :  { %v267_v24 = vsub.f32 1.5, %v266_v22 }
 0x216   :  { %v283_v25 = vadd.f32 %v331_v20, %v278_v23 }
 0x217   :  { %v268_v26 = vmul.f32 %v337_v14, %v267_v24 }
 0x218   :  { %285 = vst.msk [vmem:[%s495_s8] sm:$0xff] %vm223_vm11, %v283_v25 }
 0x219   :  { %v272_v27 = vsel %vm271_vm2, %v337_v14, %v268_v26 }
 0x21a   :  { %v274_v28 = vmul.f32 %v272_v27, %v240_v0 }
 0x21c   :  { %v279_v29 = vmul.f32 %v330_v17, %v274_v28 }
 0x21e   :  { %v284_v30 = vadd.f32 %v331_v20, %v279_v29 }
 0x220   :  { %286 = vst.msk [vmem:[%s495_s8 + $0x8] sm:$0xff] %vm223_vm11, %v284_v30 }
 0x221   :  { %291 = vsyncpa [#allocation3], 1 }
 0x222   :  { %292 = vsyncpa [#allocation5], 1 }

// kernel: joint_bert_forward.5
= control target key start
LH: loop header
LB: loop body
LE: loop exit
PB: predicated region body
PF: predicated region fallthrough
CT: control target
= control target key end

     0   :  { %13 = vsyncpa [#allocation4], 0  ;;  %s2144_s0 = inlined_call_operand.vmem [shape: f32[16,32], index: 0, kind: input, shape index: {}]   ;;  %s2145_s1 = inlined_call_operand.vmem [shape: f32[2,1,8], index: 1, kind: input, shape index: {}]   ;;  %s2146_s2 = inlined_call_operand.hbm [shape: bf16[32,1536], index: 2, kind: input, shape index: {}]   ;;  %s2147_s3 = inlined_call_operand.vmem [shape: f32[1,1536], index: 3, kind: input, shape index: {}]   ;;  %s2148_s4 = inlined_call_operand.hbm [shape: bf16[512,32], index: 4, kind: input, shape index: {}]   ;;  %s2149_s5 = inlined_call_operand.vmem [shape: bf16[32,64], index: 5, kind: input, shape index: {}]   ;;  %s2150_s6 = inlined_call_operand.hbm [shape: bf16[64,32], index: 6, kind: input, shape index: {}]   ;;  %s2151_s7 = inlined_call_operand.hbm [shape: f32[8,64], index: 7, kind: input, shape index: {}]   ;;  %s2152_s8 = inlined_call_operand.vmem [shape: f32[16,32], index: 8, kind: output, shape index: {}]  }
   0x1   :  { %14 = vsyncpa [#allocation6], 0  ;;  %s39_s29 = sshll.u32 %s2148_s4, 4  ;;  %s40_s29 = int_to_ptr.hbm [resolvable:$true] %s39_s29 }
   0x2   :  { %15 = vsyncpa [#allocation9], 0  ;;  %s1905_s30 = smov [#allocation5]   ;;  %s24_s12 = sshll.u32 %s2146_s2, 4  ;;  %s25_s12 = int_to_ptr.hbm [resolvable:$true] %s24_s12 }
   0x3   :  { %s41_s9 = sshll.u32 %s1905_s30, 4  ;;  %s1906_s13 = smov 64   ;;  %s42_s9 = int_to_ptr.vmem [resolvable:$true] %s41_s9 }
   0x4   :  { %s1907_s14 = smov 4   ;;  %s1908_s15 = smov [#allocation3]  }
   0x5   :  { %47 = dma.hbm_to_vmem [thread:$0]  %s40_s29, 4096, %s42_s9, [#allocation6], %s1906_s13, %s1906_s13, %s1907_s14  }
   0x6   :  { %s26_s16 = sshll.u32 %s1908_s15, 4  ;;  %s1909_s17 = smov 768   ;;  %s27_s16 = int_to_ptr.vmem [resolvable:$true] %s26_s16 }
   0x7   :  { %s1910_s18 = smov 48   ;;  %s54_s20 = sshll.u32 %s2150_s6, 4  ;;  %s55_s20 = int_to_ptr.hbm [resolvable:$true] %s54_s20 }
   0x8   :  { %32 = dma.hbm_to_vmem [thread:$0]  %s25_s12, 3072, %s27_s16, [#allocation4], %s1909_s17, %s1909_s17, %s1910_s18  }
   0x9   :  { %s1911_s21 = smov [#allocation7]   ;;  %s68_s24 = sshll.u32 %s2151_s7, 4  ;;  %s69_s24 = int_to_ptr.hbm [resolvable:$true] %s68_s24 }
   0xa   :  { %s56_s22 = sshll.u32 %s1911_s21, 4  ;;  %s1912_s25 = smov [#allocation8]   ;;  %s57_s22 = int_to_ptr.vmem [resolvable:$true] %s56_s22 }
   0xb   :  { %62 = dma.hbm_to_vmem [thread:$0]  %s55_s20, 512, %s57_s22, [#allocation6], %s1906_s13, %s1906_s13, %s1907_s14  }
   0xc   :  { %s70_s26 = sshll.u32 %s1912_s25, 4  ;;  %s71_s26 = int_to_ptr.vmem [resolvable:$true] %s70_s26 }
   0xd   :  { %73 = dma.hbm_to_vmem [thread:$0]  %s69_s24, 128, %s71_s26, [#allocation9]  }
   0xe   :  { %1899 = dma.done.wait [#allocation4], 3072  }
   0xf   :  { %1900 = vsyncadd [#allocation4], 4294964224 }
  0x10   :  { %1901 = dma.done.wait [#allocation6], 4608  }
  0x11   :  { %1902 = vsyncadd [#allocation6], 4294962688 }
  0x12   :  { %1903 = dma.done.wait [#allocation9], 128  }
  0x13   :  { %1904 = vsyncadd [#allocation9], 4294967168  ;;  %v1456_v0 = vld [vmem:[#allocation3 + $0x60] sm:$0xf]  ;;  %v1695_v1 = vld [vmem:[#allocation3 + $0x8c] sm:$0xf0] }
  0x14   :  { %v1689_v2 = vld [vmem:[#allocation3 + $0x64] sm:$0xf]  ;;  %v1457_v3 = vor.u32 %v1695_v1, %v1456_v0  ;;  %v1458_v4 = vld [vmem:[#allocation3 + $0x90] sm:$0xf0]  ;;  %v1690_v5 = vld [vmem:[#allocation3 + $0x6c] sm:$0xf] }
  0x15   :  { %v1466_v6 = vld [vmem:[#allocation3 + $0x98] sm:$0xf0]  ;;  %v1461_v7 = vor.u32 %v1689_v2, %v1458_v4  ;;  %v1408_v9 = vld [vmem:[#allocation3] sm:$0xf]  ;;  %v1683_v10 = vld [vmem:[#allocation3 + $0x2c] sm:$0xf0] }
  0x16   :  { %v1469_v8 = vor.u32 %v1690_v5, %v1466_v6  ;;  %v1677_v11 = vld [vmem:[#allocation3 + $0x4] sm:$0xf]  ;;  %283 = vmatpush.bf16.msra.mxu0 %v1457_v3  ;;  %v1409_v12 = vor.u32 %v1683_v10, %v1408_v9  ;;  %v1410_v13 = vld [vmem:[#allocation3 + $0x30] sm:$0xf0]  ;;  %v1678_v14 = vld [vmem:[#allocation3 + $0xc] sm:$0xf] }
  0x17   :  { %v1418_v15 = vld [vmem:[#allocation3 + $0x38] sm:$0xf0]  ;;  %297 = vmatpush.bf16.msra.mxu1 %v1461_v7  ;;  %v1413_v16 = vor.u32 %v1677_v11, %v1410_v13  ;;  %v1974_v18 = vld [vmem:[%s2144_s0] sm:$0xff]  ;;  %v1979_v19 = vld [vmem:[%s2144_s0 + $0x8] sm:$0xff]  ;;  %vm273_vm0 = vcmask 261120   ;;  %vm483_vm1 = vcmask 1043456  }
  0x18   :  { %325 = vmatpush.bf16.msra.mxu3 %v1469_v8  ;;  %v1421_v17 = vor.u32 %v1678_v14, %v1418_v15  ;;  %v1464_v20 = vld [vmem:[#allocation3 + $0x68] sm:$0xf]  ;;  %v1696_v21 = vld [vmem:[#allocation3 + $0x94] sm:$0xf0]  ;;  %v1983_v24 = vpack.c.bf16 %v1979_v19, %v1974_v18  ;;  %v1472_v26 = vld [vmem:[#allocation3 + $0x70] sm:$0xf] }
  0x19   :  { %v1416_v22 = vld [vmem:[#allocation3 + $0x8] sm:$0xf]  ;;  %v1684_v23 = vld [vmem:[#allocation3 + $0x34] sm:$0xf0]  ;;  %v1465_v25 = vor.u32 %v1696_v21, %v1464_v20  ;;  %v1697_v27 = vld [vmem:[#allocation3 + $0x9c] sm:$0xf0] }
  0x1a   :  { %v1691_v28 = vld [vmem:[#allocation3 + $0x74] sm:$0xf]  ;;  %284 = vmatpush.bf16.msra.mxu0 %v1409_v12  ;;  %v1473_v29 = vor.u32 %v1697_v27, %v1472_v26  ;;  %v1474_v30 = vld [vmem:[#allocation3 + $0xa0] sm:$0xf0]  ;;  %v1692_v31 = vld [vmem:[#allocation3 + $0x7c] sm:$0xf]  ;;  %v1417_v38 = vor.u32 %v1684_v23, %v1416_v22 }
  0x1b   :  { %v1482_v32 = vld [vmem:[#allocation3 + $0xa8] sm:$0xf0]  ;;  %298 = vmatpush.bf16.msra.mxu1 %v1413_v16  ;;  %v1477_v33 = vor.u32 %v1691_v28, %v1474_v30  ;;  %v1424_v35 = vld [vmem:[#allocation3 + $0x10] sm:$0xf]  ;;  %v1685_v36 = vld [vmem:[#allocation3 + $0x3c] sm:$0xf0]  ;;  %311 = vmatpush.bf16.msra.mxu2 %v1465_v25 }
  0x1c   :  { %326 = vmatpush.bf16.msra.mxu3 %v1421_v17  ;;  %v1485_v34 = vor.u32 %v1692_v31, %v1482_v32  ;;  %v1679_v37 = vld [vmem:[#allocation3 + $0x14] sm:$0xf]  ;;  %v1425_v39 = vor.u32 %v1685_v36, %v1424_v35  ;;  %v1426_v40 = vld [vmem:[#allocation3 + $0x40] sm:$0xf0]  ;;  %v1680_v41 = vld [vmem:[#allocation3 + $0x1c] sm:$0xf] }
  0x1d   :  { %v1434_v42 = vld [vmem:[#allocation3 + $0x48] sm:$0xf0]  ;;  %1502 = vmatmul.msk.bf16.vlgmr.msra.gmra.mxu0 %vm273_vm0, %v1983_v24  ;;  %v1429_v43 = vor.u32 %v1679_v37, %v1426_v40  ;;  %v1480_v44 = vld [vmem:[#allocation3 + $0x78] sm:$0xf]  ;;  %v1698_v45 = vld [vmem:[#allocation3 + $0xa4] sm:$0xf0] }
  0x1e   :  { %339 = vmatpush.bf16.msrb.mxu0 %v1473_v29  ;;  %1503 = vmatmul.msk.bf16.vlgmr.msra.gmra.mxu1 %vm273_vm0, %v1983_v24  ;;  %v1481_v46 = vor.u32 %v1698_v45, %v1480_v44  ;;  %v1432_v47 = vld [vmem:[#allocation3 + $0x18] sm:$0xf]  ;;  %v1686_v48 = vld [vmem:[#allocation3 + $0x44] sm:$0xf0]  ;;  %v1437_v49 = vor.u32 %v1680_v41, %v1434_v42  ;;  %v1488_v57 = vld [vmem:[#allocation3 + $0x80] sm:$0xf] }
  0x1f   :  { %353 = vmatpush.bf16.msrb.mxu1 %v1477_v33  ;;  %1505 = vmatmul.msk.bf16.vlgmr.msra.gmra.mxu3 %vm273_vm0, %v1983_v24  ;;  %v1433_v50 = vor.u32 %v1686_v48, %v1432_v47  ;;  %v1496_v51 = vld [vmem:[#allocation3 + $0x88] sm:$0xf]  ;;  %v1700_v52 = vld [vmem:[#allocation3 + $0xb4] sm:$0xf0]  ;;  %v1699_v58 = vld [vmem:[#allocation3 + $0xac] sm:$0xf0] }
  0x20   :  { %381 = vmatpush.bf16.msrb.mxu3 %v1485_v34  ;;  %312 = vmatpush.bf16.msra.mxu2 %v1417_v38  ;;  %v1497_v53 = vor.u32 %v1700_v52, %v1496_v51  ;;  %v1448_v54 = vld [vmem:[#allocation3 + $0x28] sm:$0xf]  ;;  %v1688_v55 = vld [vmem:[#allocation3 + $0x54] sm:$0xf0]  ;;  %v1489_v59 = vor.u32 %v1699_v58, %v1488_v57  ;;  %v1440_v60 = vld [vmem:[#allocation3 + $0x20] sm:$0xf] }
  0x21   :  { %v1449_v56 = vor.u32 %v1688_v55, %v1448_v54  ;;  %v1687_v61 = vld [vmem:[#allocation3 + $0x4c] sm:$0xf0]  ;;  %v2008_v4 = vld [vmem:[%s2147_s3] sm:$0xff]  ;;  %vm466_vm2 = vcmask 64512   ;;  %vm1327_vm10 = vcmask 523264  }
  0x22   :  { %340 = vmatpush.bf16.msrb.mxu0 %v1425_v39  ;;  %v1441_v62 = vor.u32 %v1687_v61, %v1440_v60  ;;  %v133_v6 = vperm.slane %v2008_v4, 4  ;;  %v134_v7 = vperm.slane %v2008_v4, 5  ;;  %v129_v12 = vperm.slane %v2008_v4, 0  ;;  %v1490_v60 = vld [vmem:[#allocation3 + $0xb0] sm:$0xf0] }
  0x23   :  { %354 = vmatpush.bf16.msrb.mxu1 %v1429_v43  ;;  %1504 = vmatmul.msk.bf16.vlgmr.msra.gmra.mxu2 %vm273_vm0, %v1983_v24  ;;  %v130_v14 = vperm.slane %v2008_v4, 1  ;;  %v136_v20 = vperm.slane %v2008_v4, 7  ;;  %v135_v28 = vperm.slane %v2008_v4, 6  ;;  %v131_v39 = vperm.slane %v2008_v4, 2 }
  0x24   :  { %367 = vmatpush.bf16.msrb.mxu2 %v1481_v46  ;;  %382 = vmatpush.bf16.msrb.mxu3 %v1437_v49  ;;  %v132_v40 = vperm.slane %v2008_v4, 3 }
  0x26   :  { %395 = vmatpush.bf16.msra.mxu0 %v1489_v59  ;;  %v1693_v59 = vld [vmem:[#allocation3 + $0x84] sm:$0xf] }
  0x27   :  { %v1493_v61 = vor.u32 %v1693_v59, %v1490_v60 }
  0x28   :  { %368 = vmatpush.bf16.msrb.mxu2 %v1433_v50 }
  0x29   :  { %409 = vmatpush.bf16.msra.mxu1 %v1493_v61 }
  0x2a   :  { %396 = vmatpush.bf16.msra.mxu0 %v1441_v62  ;;  %v2021_v62 = vld [vmem:[%s2147_s3 + $0x8] sm:$0xf] }
  0x2c   :  { %423 = vmatpush.bf16.msra.mxu2 %v1497_v53 }
  0x2d   :  { %1506 = vmatmul.msk.bf16.vlgmr.msrb.gmra.mxu0 %vm273_vm0, %v1983_v24 }
  0x2e   :  { %1507 = vmatmul.msk.bf16.vlgmr.msrb.gmra.mxu1 %vm273_vm0, %v1983_v24 }
  0x2f   :  { %1509 = vmatmul.msk.bf16.vlgmr.msrb.gmra.mxu3 %vm273_vm0, %v1983_v24 }
  0x30   :  { %424 = vmatpush.bf16.msra.mxu2 %v1449_v56 }
  0x33   :  { %1508 = vmatmul.msk.bf16.vlgmr.msrb.gmra.mxu2 %vm273_vm0, %v1983_v24 }
  0x3d   :  { %1510 = vmatmul.msk.bf16.vlgmr.msra.gmra.mxu0 %vm273_vm0, %v1983_v24 }
  0x43   :  { %1512 = vmatmul.msk.bf16.vlgmr.msra.gmra.mxu2 %vm273_vm0, %v1983_v24 }
  0x9a   :  { %v286_v63 = vpop.f32.mrf.mxu0 }
  0x9b   :  { %v300_v0 = vpop.f32.mrf.mxu1  ;;  %v287_v21 = vadd.f32 %v286_v63, %v129_v12  ;;  %v137_v63 = vperm.slane %v2021_v62, 0 }
  0x9c   :  { %v301_v22 = vadd.f32 %v300_v0, %v130_v14  ;;  %v139_v0 = vperm.slane %v2021_v62, 2 }
  0x9d   :  { %v446_v29 = vpack.c.bf16 %v287_v21, %v287_v21 }
  0x9e   :  { %v501_v33 = vpack.c.bf16 %v301_v22, %v301_v22  ;;  %v1748_v22 = vld [vmem:[%s2145_s1] ss:$0 sm:$0xff] }
  0xa2   :  { %v328_v1 = vpop.f32.mrf.mxu3  ;;  %v288_v2 = vpop.f32.mrf.mxu0 }
  0xa3   :  { %v302_v3 = vpop.f32.mrf.mxu1  ;;  %v329_v45 = vadd.f32 %v328_v1, %v132_v40  ;;  %v289_v51 = vadd.f32 %v288_v2, %v129_v12 }
  0xa4   :  { %v303_v52 = vadd.f32 %v302_v3, %v130_v14 }
  0xa5   :  { %v601_v49 = vpack.c.bf16 %v329_v45, %v329_v45  ;;  %v653_v53 = vpack.c.bf16 %v289_v51, %v289_v51 }
  0xa6   :  { %v314_v5 = vpop.f32.mrf.mxu2  ;;  %v706_v54 = vpack.c.bf16 %v303_v52, %v303_v52 }
  0xa7   :  { %v315_v44 = vadd.f32 %v314_v5, %v131_v39 }
  0xa9   :  { %v551_v48 = vpack.c.bf16 %v315_v44, %v315_v44  ;;  %v1450_v44 = vld [vmem:[#allocation3 + $0x58] sm:$0xf0] }
  0xaa   :  { %v330_v8 = vpop.f32.mrf.mxu3  ;;  %v342_v9 = vpop.f32.mrf.mxu0 }
  0xab   :  { %v343_v10 = vadd.f32 %v342_v9, %v133_v6  ;;  %v356_v11 = vpop.f32.mrf.mxu1  ;;  %v331_v56 = vadd.f32 %v330_v8, %v132_v40  ;;  %v1681_v8 = vld [vmem:[#allocation3 + $0x24] sm:$0xf]  ;;  %v1442_v9 = vld [vmem:[#allocation3 + $0x50] sm:$0xf0]  ;;  %v1682_v40 = vld [vmem:[#allocation3 + $0x2c] sm:$0xf] }
  0xac   :  { %v357_v13 = vadd.f32 %v356_v11, %v134_v7  ;;  %v1445_v12 = vor.u32 %v1681_v8, %v1442_v9  ;;  %v1453_v45 = vor.u32 %v1682_v40, %v1450_v44 }
  0xad   :  { %v447_v15 = vpack.c.bf16 %v343_v10, %v343_v10  ;;  %v806_v58 = vpack.c.bf16 %v331_v56, %v331_v56 }
  0xae   :  { %v502_v16 = vpack.c.bf16 %v357_v13, %v357_v13  ;;  %v316_v17 = vpop.f32.mrf.mxu2  ;;  %410 = vmatpush.bf16.msra.mxu1 %v1445_v12 }
  0xaf   :  { %455 = vmatpush.bf16.xpose.msrb.mxu0 %v447_v15  ;;  %v317_v55 = vadd.f32 %v316_v17, %v131_v39  ;;  %v1498_v39 = vld [vmem:[#allocation3 + $0xb8] sm:$0xf0] }
  0xb0   :  { %510 = vmatpush.bf16.xpose.msrb.mxu2 %v502_v16 }
  0xb1   :  { %v756_v57 = vpack.c.bf16 %v317_v55, %v317_v55  ;;  %1511 = vmatmul.msk.bf16.vlgmr.msra.gmra.mxu1 %vm273_vm0, %v1983_v24 }
  0xb2   :  { %v384_v23 = vpop.f32.mrf.mxu3  ;;  %v344_v26 = vpop.f32.mrf.mxu0 }
  0xb3   :  { %v385_v25 = vadd.f32 %v384_v23, %v136_v20  ;;  %v358_v27 = vpop.f32.mrf.mxu1  ;;  %v345_v32 = vadd.f32 %v344_v26, %v133_v6 }
  0xb4   :  { %v359_v31 = vadd.f32 %v358_v27, %v134_v7 }
  0xb5   :  { %v602_v30 = vpack.c.bf16 %v385_v25, %v385_v25  ;;  %v654_v37 = vpack.c.bf16 %v345_v32, %v345_v32 }
  0xb6   :  { %v707_v34 = vpack.c.bf16 %v359_v31, %v359_v31  ;;  %456 = vmatmul.bf16.vlgmr.msrb.gmra.mxu0 %v446_v29  ;;  %v370_v35 = vpop.f32.mrf.mxu2 }
  0xb7   :  { %511 = vmatmul.bf16.vlgmr.msrb.gmra.mxu2 %v501_v33  ;;  %v371_v36 = vadd.f32 %v370_v35, %v135_v28 }
  0xb8   :  { %610 = vmatpush.bf16.xpose.msra.mxu2 %v602_v30 }
  0xb9   :  { %v552_v38 = vpack.c.bf16 %v371_v36, %v371_v36 }
  0xba   :  { %v386_v42 = vpop.f32.mrf.mxu3  ;;  %v398_v2 = vpop.f32.mrf.mxu0 }
  0xbb   :  { %560 = vmatpush.bf16.xpose.msra.mxu0 %v552_v38  ;;  %v387_v46 = vadd.f32 %v386_v42, %v136_v20  ;;  %v399_v3 = vadd.f32 %v398_v2, %v137_v63  ;;  %v1694_v38 = vld [vmem:[#allocation3 + $0x8c] sm:$0xf] }
  0xbd   :  { %v807_v50 = vpack.c.bf16 %v387_v46, %v387_v46  ;;  %v479_v5 = vpack.c.bf16 %v399_v3, %v399_v3 }
  0xbe   :  { %v372_v41 = vpop.f32.mrf.mxu2 }
  0xbf   :  { %v373_v43 = vadd.f32 %v372_v41, %v135_v28  ;;  %v485_v10 = vsel %vm483_vm1, %v479_v5, 0 }
  0xc0   :  { %715 = vmatpush.bf16.xpose.msrb.mxu2 %v707_v34  ;;  %494 = vmatpush.bf16.msrb.mxu1 %v485_v10 }
  0xc1   :  { %v757_v47 = vpack.c.bf16 %v373_v43, %v373_v43  ;;  %v1501_v43 = vor.u32 %v1694_v38, %v1498_v39 }
  0xc2   :  { %v400_v13 = vpop.f32.mrf.mxu0 }
  0xc3   :  { %662 = vmatpush.bf16.xpose.msrb.mxu0 %v654_v37  ;;  %v2028_v14 = vadd.f32 %v400_v13, %v137_v63  ;;  %437 = vmatpush.bf16.msra.mxu3 %v1501_v43 }
  0xc6   :  { %561 = vmatmul.bf16.vlgmr.msra.gmra.mxu0 %v551_v48  ;;  %v426_v1 = vpop.f32.mrf.mxu2 }
  0xc7   :  { %611 = vmatmul.bf16.vlgmr.msra.gmra.mxu2 %v601_v49  ;;  %v427_v4 = vadd.f32 %v426_v1, %v139_v0  ;;  %438 = vmatpush.bf16.msra.mxu3 %v1453_v45 }
  0xc8   :  { %815 = vmatpush.bf16.xpose.msra.mxu2 %v807_v50  ;;  %v1749_v50 = vld [vmem:[%s2145_s1 + $0x1] ss:$0 sm:$0xff] }
  0xc9   :  { %v580_v6 = vpack.c.bf16 %v427_v4, %v427_v4 }
  0xca   :  { %1513 = vmatmul.msk.bf16.vlgmr.msra.gmra.mxu3 %vm273_vm0, %v1983_v24 }
  0xcb   :  { %765 = vmatpush.bf16.xpose.msra.mxu0 %v757_v47  ;;  %v585_v15 = vsel %vm483_vm1, %v580_v6, 0 }
  0xcc   :  { %594 = vmatpush.bf16.msra.mxu1 %v585_v15 }
  0xce   :  { %v428_v7 = vpop.f32.mrf.mxu2 }
  0xcf   :  { %v2026_v11 = vadd.f32 %v428_v7, %v139_v0 }
  0xd6   :  { %663 = vmatmul.bf16.vlgmr.msrb.gmra.mxu0 %v653_v53 }
  0xd7   :  { %716 = vmatmul.bf16.vlgmr.msrb.gmra.mxu2 %v706_v54 }
  0xe6   :  { %766 = vmatmul.bf16.vlgmr.msra.gmra.mxu0 %v756_v57 }
  0xe7   :  { %816 = vmatmul.bf16.vlgmr.msra.gmra.mxu2 %v806_v58 }
 0x133   :  { %v457_v16 = vpop.f32.mrf.mxu0 }
 0x134   :  { %v461_v25 = vmul.f32 0.35355338, %v457_v16 }
 0x136   :  { %v465_v29 = vadd.f32 %v1748_v22, %v461_v25 }
 0x138   :  { %v467_v30 = vsel %vm466_vm2, %v465_v29, -inf }
 0x13a   :  { %v512_v17 = vpop.f32.mrf.mxu2 }
 0x13b   :  { %v516_v20 = vmul.f32 0.35355338, %v512_v17  ;;  %v459_v21 = vpop.f32.mrf.mxu0 }
 0x13d   :  { %v517_v23 = vadd.f32 %v1748_v22, %v516_v20 }
 0x13f   :  { %v518_v26 = vsel %vm466_vm2, %v517_v23, -inf }
 0x140   :  { %519 = vmax.xlane.f32.xlu0 %v518_v26  ;;  %v138_v26 = vperm.slane %v2021_v62, 1 }
 0x142   :  { %v514_v27 = vpop.f32.mrf.mxu2 }
 0x143   :  { %v562_v28 = vpop.f32.mrf.mxu0  ;;  %v412_v27 = vpop.f32.mrf.mxu1 }
 0x144   :  { %v566_v35 = vmul.f32 0.35355338, %v562_v28 }
 0x146   :  { %v567_v42 = vadd.f32 %v1748_v22, %v566_v35 }
 0x148   :  { %468 = vmax.xlane.f32.xlu0 %v467_v30  ;;  %v568_v46 = vsel %vm466_vm2, %v567_v42, -inf }
 0x14a   :  { %v612_v31 = vpop.f32.mrf.mxu2 }
 0x14b   :  { %v616_v32 = vmul.f32 0.35355338, %v612_v31  ;;  %v564_v33 = vpop.f32.mrf.mxu0 }
 0x14d   :  { %v617_v34 = vadd.f32 %v1748_v22, %v616_v32 }
 0x14f   :  { %v618_v36 = vsel %vm466_vm2, %v617_v34, -inf }
 0x150   :  { %619 = vmax.xlane.f32.xlu1 %v618_v36 }
 0x152   :  { %v614_v37 = vpop.f32.mrf.mxu2 }
 0x153   :  { %v664_v41 = vpop.f32.mrf.mxu0 }
 0x154   :  { %v668_v52 = vmul.f32 0.35355338, %v664_v41 }
 0x156   :  { %v672_v56 = vadd.f32 %v1749_v50, %v668_v52 }
 0x158   :  { %569 = vmax.xlane.f32.xlu1 %v568_v46  ;;  %v673_v58 = vsel %vm466_vm2, %v672_v56, -inf }
 0x15a   :  { %v717_v47 = vpop.f32.mrf.mxu2 }
 0x15b   :  { %v721_v48 = vmul.f32 0.35355338, %v717_v47  ;;  %v666_v49 = vpop.f32.mrf.mxu0 }
 0x15d   :  { %v722_v51 = vadd.f32 %v1749_v50, %v721_v48 }
 0x15f   :  { %v723_v53 = vsel %vm466_vm2, %v722_v51, -inf }
 0x160   :  { %724 = vmax.xlane.f32.xlu2 %v723_v53  ;;  %v140_v53 = vperm.slane %v2021_v62, 3 }
 0x162   :  { %v719_v54 = vpop.f32.mrf.mxu2 }
 0x163   :  { %v767_v55 = vpop.f32.mrf.mxu0  ;;  %v440_v54 = vpop.f32.mrf.mxu3 }
 0x164   :  { %v771_v57 = vmul.f32 0.35355338, %v767_v55  ;;  %v441_v55 = vadd.f32 %v440_v54, %v140_v53  ;;  %v1703_v54 = vld [vmem:[#allocation5 + $0x10] sm:$0xff] }
 0x166   :  { %v772_v63 = vadd.f32 %v1749_v50, %v771_v57 }
 0x168   :  { %674 = vmax.xlane.f32.xlu2 %v673_v58  ;;  %v773_v24 = vsel %vm466_vm2, %v772_v63, -inf  ;;  %v414_v58 = vpop.f32.mrf.mxu1 }
 0x16a   :  { %v817_v59 = vpop.f32.mrf.mxu2 }
 0x16b   :  { %v821_v60 = vmul.f32 0.35355338, %v817_v59  ;;  %v769_v61 = vpop.f32.mrf.mxu0 }
 0x16d   :  { %v822_v0 = vadd.f32 %v1749_v50, %v821_v60  ;;  %v415_v60 = vadd.f32 %v414_v58, %v138_v26  ;;  %v1702_v58 = vld [vmem:[#allocation5 + $0x8] sm:$0xff] }
 0x16f   :  { %v823_v1 = vsel %vm466_vm2, %v822_v0, -inf  ;;  %v735_v61 = vpack.c.bf16 %v415_v60, %v415_v60  ;;  %v1709_v60 = vld [vmem:[#allocation5 + $0x40] sm:$0xff] }
 0x170   :  { %824 = vmax.xlane.f32.xlu0 %v823_v1  ;;  %774 = vmax.xlane.f32.xlu2 %v773_v24 }
 0x172   :  { %v819_v2 = vpop.f32.mrf.mxu2 }
 0x173   :  { %v740_v2 = vsel %vm483_vm1, %v735_v61, 0  ;;  %v1729_v61 = vld [vmem:[#allocation5 + $0xe0] sm:$0xff] }
 0x1b3   :  { %v520_v3 = vpop.xlane.xlu0 %519 }
 0x1b4   :  { %v521_v4 = vsub.f32 %v517_v23, %v520_v3  ;;  %v442_v3 = vpop.f32.mrf.mxu3 }
 0x1b6   :  { %v522_v5 = vmul.f32 1.442695, %v521_v4  ;;  %v685_v4 = vpack.c.bf16 %v2028_v14, %v2028_v14 }
 0x1b8   :  { %1757 = vpow2.f32 %v522_v5 }
 0x1bb   :  { %v469_v6 = vpop.xlane.xlu0 %468 }
 0x1bc   :  { %v470_v7 = vsub.f32 %v465_v29, %v469_v6  ;;  %v413_v29 = vadd.f32 %v412_v27, %v138_v26 }
 0x1be   :  { %v2049_v8 = vpop.eup %1757  ;;  %v471_v9 = vmul.f32 1.442695, %v470_v7  ;;  %v530_v31 = vpack.c.bf16 %v413_v29, %v413_v29 }
 0x1bf   :  { %v524_v10 = vsel %vm466_vm2, %v2049_v8, 0.0 }
 0x1c0   :  { %1759 = vpow2.f32 %v471_v9  ;;  %525 = vadd.xlane.f32.xlu1 %v524_v10  ;;  %v535_v35 = vsel %vm483_vm1, %v530_v31, 0  ;;  %v443_v9 = vadd.f32 %v442_v3, %v140_v53  ;;  %v1731_v53 = vld [vmem:[#allocation5 + $0xf0] sm:$0xff] }
 0x1c1   :  { %544 = vmatpush.bf16.msrb.mxu3 %v535_v35  ;;  %v1727_v3 = vld [vmem:[#allocation5 + $0xd0] sm:$0xff] }
 0x1c2   :  { %v835_v10 = vpack.c.bf16 %v443_v9, %v443_v9  ;;  %v1718_v9 = vld [vmem:[#allocation5 + $0x88] sm:$0xff] }
 0x1c3   :  { %v620_v12 = vpop.xlane.xlu1 %619 }
 0x1c4   :  { %v621_v13 = vsub.f32 %v617_v34, %v620_v12  ;;  %v840_v14 = vsel %vm483_vm1, %v835_v10, 0 }
 0x1c6   :  { %v2053_v15 = vpop.eup %1759  ;;  %v622_v16 = vmul.f32 1.442695, %v621_v13 }
 0x1c7   :  { %v473_v17 = vsel %vm466_vm2, %v2053_v15, 0.0 }
 0x1c8   :  { %1761 = vpow2.f32 %v622_v16  ;;  %474 = vadd.xlane.f32.xlu0 %v473_v17 }
 0x1cb   :  { %v570_v20 = vpop.xlane.xlu1 %569 }
 0x1cc   :  { %v571_v21 = vsub.f32 %v567_v42, %v570_v20  ;;  %v785_v20 = vpack.c.bf16 %v2026_v11, %v2026_v11 }
 0x1ce   :  { %v2057_v22 = vpop.eup %1761  ;;  %v572_v23 = vmul.f32 1.442695, %v571_v21  ;;  %v790_v26 = vsel %vm483_vm1, %v785_v20, 0 }
 0x1cf   :  { %v624_v25 = vsel %vm466_vm2, %v2057_v22, 0.0 }
 0x1d0   :  { %1763 = vpow2.f32 %v572_v23  ;;  %625 = vadd.xlane.f32.xlu1 %v624_v25 }
 0x1d3   :  { %v725_v28 = vpop.xlane.xlu2 %724 }
 0x1d4   :  { %v726_v30 = vsub.f32 %v722_v51, %v725_v28 }
 0x1d6   :  { %v2062_v32 = vpop.eup %1763  ;;  %v727_v33 = vmul.f32 1.442695, %v726_v30 }
 0x1d7   :  { %v574_v34 = vsel %vm466_vm2, %v2062_v32, 0.0 }
 0x1d8   :  { %1765 = vpow2.f32 %v727_v33  ;;  %575 = vadd.xlane.f32.xlu2 %v574_v34 }
 0x1db   :  { %v675_v36 = vpop.xlane.xlu2 %674 }
 0x1dc   :  { %v676_v37 = vsub.f32 %v672_v56, %v675_v36  ;;  %v630_v56 = vpack.c.bf16 %v441_v55, %v441_v55  ;;  %v1723_v55 = vld [vmem:[#allocation5 + $0xb0] sm:$0xff] }
 0x1de   :  { %v2067_v38 = vpop.eup %1765  ;;  %v677_v39 = vmul.f32 1.442695, %v676_v37  ;;  %v635_v57 = vsel %vm483_vm1, %v630_v56, 0  ;;  %v1710_v56 = vld [vmem:[#allocation5 + $0x48] sm:$0xff] }
 0x1df   :  { %v729_v40 = vsel %vm466_vm2, %v2067_v38, 0.0  ;;  %644 = vmatpush.bf16.msra.mxu3 %v635_v57  ;;  %v1730_v57 = vld [vmem:[#allocation5 + $0xe8] sm:$0xff] }
 0x1e0   :  { %1767 = vpow2.f32 %v677_v39  ;;  %730 = vadd.xlane.f32.xlu0 %v729_v40  ;;  %v1716_v40 = vld [vmem:[#allocation5 + $0x78] sm:$0xff] }
 0x1e3   :  { %v825_v41 = vpop.xlane.xlu0 %824  ;;  %v775_v42 = vpop.xlane.xlu2 %774 }
 0x1e4   :  { %v826_v43 = vsub.f32 %v822_v0, %v825_v41  ;;  %v776_v44 = vsub.f32 %v772_v63, %v775_v42  ;;  %v1708_v41 = vld [vmem:[#allocation5 + $0x38] sm:$0xff]  ;;  %v1715_v42 = vld [vmem:[#allocation5 + $0x70] sm:$0xff] }
 0x1e5   :  { %1125 = vmatpush.bf16.msrb.mxu0 %v1708_v41 }
 0x1e6   :  { %v2071_v45 = vpop.eup %1767  ;;  %v827_v46 = vmul.f32 1.442695, %v826_v43  ;;  %v777_v47 = vmul.f32 1.442695, %v776_v44  ;;  %v1707_v43 = vld [vmem:[#allocation5 + $0x30] sm:$0xff]  ;;  %v1714_v44 = vld [vmem:[#allocation5 + $0x68] sm:$0xff] }
 0x1e7   :  { %v679_v48 = vsel %vm466_vm2, %v2071_v45, 0.0 }
 0x1e8   :  { %1769 = vpow2.f32 %v827_v46  ;;  %680 = vadd.xlane.f32.xlu1 %v679_v48  ;;  %v1713_v46 = vld [vmem:[#allocation5 + $0x60] sm:$0xff]  ;;  %v1712_v48 = vld [vmem:[#allocation5 + $0x58] sm:$0xff] }
 0x1e9   :  { %1771 = vpow2.f32 %v777_v47  ;;  %1126 = vmatpush.bf16.msrb.mxu0 %v1707_v43  ;;  %v1705_v47 = vld [vmem:[#allocation5 + $0x20] sm:$0xff] }
 0x1ee   :  { %v2075_v49 = vpop.eup %1769 }
 0x1ef   :  { %v2077_v50 = vpop.eup %1771  ;;  %v829_v51 = vsel %vm466_vm2, %v2075_v49, 0.0 }
 0x1f0   :  { %830 = vadd.xlane.f32.xlu2 %v829_v51  ;;  %v779_v52 = vsel %vm466_vm2, %v2077_v50, 0.0  ;;  %v1724_v51 = vld [vmem:[#allocation5 + $0xb8] sm:$0xff] }
 0x1f1   :  { %780 = vadd.xlane.f32.xlu0 %v779_v52  ;;  %1153 = vmatpush.bf16.msrb.mxu2 %v1724_v51  ;;  %v1711_v52 = vld [vmem:[#allocation5 + $0x50] sm:$0xff]  ;;  %v1913_v51 = vmov 32.0  }
 0x1f5   :  { %1154 = vmatpush.bf16.msrb.mxu2 %v1723_v55 }
 0x233   :  { %v526_v59 = vpop.xlane.xlu1 %525 }
 0x234   :  { %1773 = vrcp.f32 %v526_v59  ;;  %v1722_v59 = vld [vmem:[#allocation5 + $0xa8] sm:$0xff] }
 0x235   :  { %1155 = vmatpush.bf16.msrb.mxu2 %v1722_v59 }
 0x23a   :  { %v1774_v63 = vpop.eup %1773 }
 0x23b   :  { %v528_v0 = vmul.f32 %v1774_v63, %v2049_v8  ;;  %v475_v1 = vpop.xlane.xlu0 %474  ;;  %v690_v8 = vsel %vm483_vm1, %v685_v4, 0 }
 0x23c   :  { %1775 = vrcp.f32 %v475_v1  ;;  %v1721_v1 = vld [vmem:[#allocation5 + $0xa0] sm:$0xff] }
 0x23d   :  { %v529_v24 = vpack.c.bf16 %v528_v0, %v528_v0  ;;  %v1701_v0 = vld [vmem:[#allocation5] sm:$0xff]  ;;  %1156 = vmatpush.bf16.msrb.mxu2 %v1721_v1 }
 0x23f   :  { %1515 = vmatmul.msk.bf16.vlgmr.msrb.gmra.mxu3 %vm466_vm2, %v529_v24 }
 0x240   :  { %749 = vmatpush.bf16.msrb.mxu3 %v740_v2  ;;  %v1728_v2 = vld [vmem:[#allocation5 + $0xd8] sm:$0xff] }
 0x242   :  { %v1776_v62 = vpop.eup %1775 }
 0x243   :  { %v477_v5 = vmul.f32 %v1776_v62, %v2053_v15  ;;  %v626_v6 = vpop.xlane.xlu1 %625  ;;  %v1720_v62 = vld [vmem:[#allocation5 + $0x98] sm:$0xff] }
 0x244   :  { %1777 = vrcp.f32 %v626_v6  ;;  %1157 = vmatpush.bf16.msrb.mxu2 %v1720_v62 }
 0x245   :  { %v478_v7 = vpack.c.bf16 %v477_v5, %v477_v5  ;;  %v1719_v5 = vld [vmem:[#allocation5 + $0x90] sm:$0xff] }
 0x247   :  { %1514 = vmatmul.msk.bf16.vlgmr.msrb.gmra.mxu1 %vm466_vm2, %v478_v7  ;;  %v1726_v7 = vld [vmem:[#allocation5 + $0xc8] sm:$0xff] }
 0x248   :  { %699 = vmatpush.bf16.msrb.mxu1 %v690_v8  ;;  %1158 = vmatpush.bf16.msrb.mxu2 %v1719_v5  ;;  %v1725_v8 = vld [vmem:[#allocation5 + $0xc0] sm:$0xff] }
 0x249   :  { %v1733_v5 = vld [vmem:[%s2149_s5] sm:$0xff] }
 0x24a   :  { %v1778_v12 = vpop.eup %1777 }
 0x24b   :  { %v628_v13 = vmul.f32 %v1778_v12, %v2057_v22  ;;  %v576_v16 = vpop.xlane.xlu2 %575  ;;  %v1717_v12 = vld [vmem:[#allocation5 + $0x80] sm:$0xff] }
 0x24c   :  { %1779 = vrcp.f32 %v576_v16  ;;  %1159 = vmatpush.bf16.msrb.mxu2 %v1718_v9 }
 0x24d   :  { %v629_v17 = vpack.c.bf16 %v628_v13, %v628_v13 }
 0x24f   :  { %1517 = vmatmul.msk.bf16.vlgmr.msra.gmra.mxu3 %vm466_vm2, %v629_v17 }
 0x250   :  { %849 = vmatpush.bf16.msra.mxu3 %v840_v14  ;;  %1160 = vmatpush.bf16.msrb.mxu2 %v1717_v12 }
 0x252   :  { %v1780_v15 = vpop.eup %1779 }
 0x253   :  { %v578_v21 = vmul.f32 %v1780_v15, %v2062_v32  ;;  %v731_v23 = vpop.xlane.xlu0 %730 }
 0x254   :  { %1781 = vrcp.f32 %v731_v23 }
 0x255   :  { %v579_v25 = vpack.c.bf16 %v578_v21, %v578_v21 }
 0x257   :  { %1516 = vmatmul.msk.bf16.vlgmr.msra.gmra.mxu1 %vm466_vm2, %v579_v25 }
 0x258   :  { %799 = vmatpush.bf16.msra.mxu1 %v790_v26 }
 0x25a   :  { %v1782_v22 = vpop.eup %1781 }
 0x25b   :  { %v733_v27 = vmul.f32 %v1782_v22, %v2067_v38  ;;  %v681_v28 = vpop.xlane.xlu1 %680 }
 0x25c   :  { %1783 = vrcp.f32 %v681_v28 }
 0x25d   :  { %v734_v29 = vpack.c.bf16 %v733_v27, %v733_v27 }
 0x25f   :  { %1520 = vmatmul.msk.bf16.vlgmr.msrb.gmra.mxu3 %vm466_vm2, %v734_v29 }
 0x262   :  { %v1784_v30 = vpop.eup %1783 }
 0x263   :  { %v683_v11 = vmul.f32 %v1784_v30, %v2071_v45  ;;  %v831_v31 = vpop.xlane.xlu2 %830  ;;  %v1706_v45 = vld [vmem:[#allocation5 + $0x28] sm:$0xff] }
 0x264   :  { %1785 = vrcp.f32 %v831_v31  ;;  %v781_v33 = vpop.xlane.xlu0 %780  ;;  %1127 = vmatpush.bf16.msrb.mxu0 %v1706_v45  ;;  %v1750_v31 = vld [vmem:[#allocation8] ss:$0 sm:$0xff] }
 0x265   :  { %v684_v32 = vpack.c.bf16 %v683_v11, %v683_v11  ;;  %1787 = vrcp.f32 %v781_v33 }
 0x266   :  { %1789 = vrcp.f32 %v1913_v51 }
 0x267   :  { %1519 = vmatmul.msk.bf16.vlgmr.msrb.gmra.mxu1 %vm466_vm2, %v684_v32 }
 0x268   :  { %1139 = vmatpush.bf16.msrb.mxu1 %v1716_v40  ;;  %1128 = vmatpush.bf16.msrb.mxu0 %v1705_v47 }
 0x26a   :  { %v1786_v34 = vpop.eup %1785 }
 0x26b   :  { %v833_v35 = vmul.f32 %v1786_v34, %v2075_v49  ;;  %v1788_v37 = vpop.eup %1787  ;;  %v1732_v49 = vld [vmem:[#allocation5 + $0xf8] sm:$0xff] }
 0x26c   :  { %v783_v38 = vmul.f32 %v1788_v37, %v2077_v50  ;;  %1140 = vmatpush.bf16.msrb.mxu1 %v1715_v42  ;;  %v1704_v50 = vld [vmem:[#allocation5 + $0x18] sm:$0xff]  ;;  %1167 = vmatpush.bf16.msrb.mxu3 %v1732_v49 }
 0x26d   :  { %v834_v36 = vpack.c.bf16 %v833_v35, %v833_v35  ;;  %1129 = vmatpush.bf16.msrb.mxu0 %v1704_v50 }
 0x26e   :  { %v784_v39 = vpack.c.bf16 %v783_v38, %v783_v38 }
 0x26f   :  { %1522 = vmatmul.msk.bf16.vlgmr.msra.gmra.mxu3 %vm466_vm2, %v834_v36 }
 0x270   :  { %1141 = vmatpush.bf16.msrb.mxu1 %v1714_v44  ;;  %1168 = vmatpush.bf16.msrb.mxu3 %v1731_v53 }
 0x271   :  { %1130 = vmatpush.bf16.msrb.mxu0 %v1703_v54 }
 0x274   :  { %1142 = vmatpush.bf16.msrb.mxu1 %v1713_v46  ;;  %1169 = vmatpush.bf16.msrb.mxu3 %v1730_v57 }
 0x275   :  { %1131 = vmatpush.bf16.msrb.mxu0 %v1702_v58 }
 0x277   :  { %1521 = vmatmul.msk.bf16.vlgmr.msra.gmra.mxu1 %vm466_vm2, %v784_v39 }
 0x278   :  { %1143 = vmatpush.bf16.msrb.mxu1 %v1712_v48  ;;  %1170 = vmatpush.bf16.msrb.mxu3 %v1729_v61 }
 0x279   :  { %1132 = vmatpush.bf16.msrb.mxu0 %v1701_v0 }
 0x27c   :  { %1144 = vmatpush.bf16.msrb.mxu1 %v1711_v52  ;;  %1171 = vmatpush.bf16.msrb.mxu3 %v1728_v2  ;;  %v1790_v52 = vpop.eup %1789  ;;  %v1734_v2 = vld [vmem:[%s2149_s5 + $0x8] sm:$0xff] }
 0x27d   :  { %v1190_v53 = vmul.f32 32.0, %v1790_v52  ;;  %vm1194_vm3 = vweird.f32 %v1790_v52  ;;  %1267 = vmatpush.bf16.msra.mxu0 %v1734_v2 }
 0x27f   :  { %v1191_v54 = vsub.f32 1.0, %v1190_v53 }
 0x280   :  { %1145 = vmatpush.bf16.msrb.mxu1 %v1710_v56  ;;  %1172 = vmatpush.bf16.msrb.mxu3 %v1727_v3 }
 0x281   :  { %1268 = vmatpush.bf16.msra.mxu0 %v1733_v5 }
 0x284   :  { %1146 = vmatpush.bf16.msrb.mxu1 %v1709_v60  ;;  %1173 = vmatpush.bf16.msrb.mxu3 %v1726_v7 }
 0x288   :  { %1174 = vmatpush.bf16.msrb.mxu3 %v1725_v8 }
 0x2c2   :  { %v546_v63 = vpop.f32.mrf.mxu3 }
 0x2c4   :  { %v496_v24 = vpop.f32.mrf.mxu1 }
 0x2ca   :  { %v548_v4 = vpop.f32.mrf.mxu3 }
 0x2cc   :  { %v498_v6 = vpop.f32.mrf.mxu1 }
 0x2d2   :  { %v646_v10 = vpop.f32.mrf.mxu3 }
 0x2d4   :  { %v596_v13 = vpop.f32.mrf.mxu1 }
 0x2da   :  { %v648_v16 = vpop.f32.mrf.mxu3 }
 0x2dc   :  { %v598_v17 = vpop.f32.mrf.mxu1 }
 0x2e2   :  { %v751_v14 = vpop.f32.mrf.mxu3 }
 0x2e3   :  { %v865_v15 = vpack.c.bf16 %v751_v14, %v546_v63 }
 0x2e4   :  { %v701_v20 = vpop.f32.mrf.mxu1 }
 0x2e5   :  { %v864_v21 = vpack.c.bf16 %v701_v20, %v496_v24  ;;  %1147 = vmatmul.bf16.vlgmr.msrb.gmra.mxu1 %v865_v15 }
 0x2e7   :  { %1133 = vmatmul.bf16.vlgmr.msrb.gmra.mxu0 %v864_v21 }
 0x2ea   :  { %v753_v23 = vpop.f32.mrf.mxu3 }
 0x2ec   :  { %v703_v25 = vpop.f32.mrf.mxu1 }
 0x2f2   :  { %v851_v26 = vpop.f32.mrf.mxu3 }
 0x2f3   :  { %v867_v22 = vpack.c.bf16 %v851_v26, %v646_v10  ;;  %v1751_v26 = vld [vmem:[#allocation8 + $0x3] ss:$0 sm:$0xff] }
 0x2f4   :  { %v801_v27 = vpop.f32.mrf.mxu1 }
 0x2f5   :  { %v866_v28 = vpack.c.bf16 %v801_v27, %v596_v13  ;;  %1175 = vmatmul.bf16.vlgmr.msrb.gmra.mxu3 %v867_v22 }
 0x2f7   :  { %1161 = vmatmul.bf16.vlgmr.msrb.gmra.mxu2 %v866_v28 }
 0x2fa   :  { %v853_v29 = vpop.f32.mrf.mxu3 }
 0x2fb   :  { %v1752_v29 = vld [vmem:[#allocation8 + $0x4] ss:$0 sm:$0xff] }
 0x2fc   :  { %v803_v30 = vpop.f32.mrf.mxu1 }
 0x362   :  { %v1148_v33 = vpop.f32.mrf.mxu1 }
 0x364   :  { %v1134_v11 = vpop.f32.mrf.mxu0 }
 0x365   :  { %v1135_v32 = vadd.f32 %v1750_v31, %v1134_v11 }
 0x367   :  { %v1149_v35 = vadd.f32 %v1148_v33, %v1135_v32 }
 0x36a   :  { %v1150_v42 = vpop.f32.mrf.mxu1 }
 0x36c   :  { %v1136_v34 = vpop.f32.mrf.mxu0 }
 0x36d   :  { %v1137_v39 = vadd.f32 %v1750_v31, %v1136_v34 }
 0x36f   :  { %v1151_v43 = vadd.f32 %v1150_v42, %v1137_v39  ;;  %v1753_v39 = vld [vmem:[#allocation8 + $0x1] ss:$0 sm:$0xff] }
 0x378   :  { %v1176_v36 = vpop.f32.mrf.mxu3 }
 0x37a   :  { %v1162_v37 = vpop.f32.mrf.mxu2 }
 0x37b   :  { %v1163_v38 = vadd.f32 %v1162_v37, %v1149_v35  ;;  %v1738_v35 = vld [vmem:[#allocation7 + $0x18] sm:$0xff]  ;;  %v1736_v37 = vld [vmem:[#allocation7 + $0x8] sm:$0xff] }
 0x37c   :  { %1335 = vmatpush.bf16.msra.mxu1 %v1738_v35 }
 0x37d   :  { %v1177_v40 = vadd.f32 %v1176_v36, %v1163_v38  ;;  %v1737_v36 = vld [vmem:[#allocation7 + $0x10] sm:$0xff]  ;;  %v1735_v38 = vld [vmem:[#allocation7] sm:$0xff] }
 0x37f   :  { %v1181_v41 = vadd.f32 %v1177_v40, %v1974_v18  ;;  %v1192_v18 = vmul.f32 %v1790_v52, %v1191_v54 }
 0x380   :  { %v1178_v47 = vpop.f32.mrf.mxu3  ;;  %1336 = vmatpush.bf16.msra.mxu1 %v1737_v36  ;;  %v1756_v36 = vld [vmem:[#allocation8 + $0x6] ss:$0 sm:$0xff] }
 0x381   :  { %v1183_v44 = vsel %vm273_vm0, %v1181_v41, 0.0  ;;  %v1193_v55 = vadd.f32 %v1790_v52, %v1192_v18 }
 0x382   :  { %v1164_v45 = vpop.f32.mrf.mxu2  ;;  %1184 = vadd.xlane.f32.xlu1 %v1183_v44 }
 0x383   :  { %v1165_v46 = vadd.f32 %v1164_v45, %v1151_v43  ;;  %v2113_v56 = vsel %vm1194_vm3, %v1790_v52, %v1193_v55 }
 0x384   :  { %1337 = vmatpush.bf16.msra.mxu1 %v1736_v37 }
 0x385   :  { %v1179_v48 = vadd.f32 %v1178_v47, %v1165_v46 }
 0x387   :  { %v1182_v49 = vadd.f32 %v1179_v48, %v1979_v19 }
 0x388   :  { %1338 = vmatpush.bf16.msra.mxu1 %v1735_v38 }
 0x389   :  { %v1186_v50 = vsel %vm273_vm0, %v1182_v49, 0.0 }
 0x38a   :  { %1187 = vadd.xlane.f32.xlu2 %v1186_v50 }
 0x3f5   :  { %v1185_v57 = vpop.xlane.xlu1 %1184 }
 0x3f6   :  { %v1196_v58 = vmul.f32 %v2113_v56, %v1185_v57 }
 0x3f8   :  { %v1198_v59 = vsub.f32 %v1181_v41, %v1196_v58 }
 0x3fa   :  { %v1200_v60 = vmul.f32 %v1198_v59, %v1198_v59 }
 0x3fc   :  { %v1202_v19 = vsel %vm273_vm0, %v1200_v60, 0.0 }
 0x3fd   :  { %v1188_v61 = vpop.xlane.xlu2 %1187  ;;  %1203 = vadd.xlane.f32.xlu0 %v1202_v19 }
 0x3fe   :  { %v1197_v63 = vmul.f32 %v2113_v56, %v1188_v61 }
 0x400   :  { %v1199_v0 = vsub.f32 %v1182_v49, %v1197_v63  ;;  %v1754_v63 = vld [vmem:[#allocation8 + $0x2] ss:$0 sm:$0xff] }
 0x402   :  { %v1201_v1 = vmul.f32 %v1199_v0, %v1199_v0 }
 0x404   :  { %v1205_v24 = vsel %vm273_vm0, %v1201_v1, 0.0 }
 0x405   :  { %1206 = vadd.xlane.f32.xlu1 %v1205_v24 }
 0x470   :  { %v1204_v62 = vpop.xlane.xlu0 %1203 }
 0x471   :  { %v1208_v3 = vmul.f32 %v1204_v62, %v2113_v56 }
 0x473   :  { %v1210_v4 = vadd.f32 1e-12, %v1208_v3 }
 0x475   :  { %1791 = vrsqrt.f32 %v1210_v4  ;;  %vm1218_vm5 = vweird.f32 %v1210_v4 }
 0x478   :  { %v1207_v6 = vpop.xlane.xlu1 %1206 }
 0x479   :  { %v1209_v7 = vmul.f32 %v1207_v6, %v2113_v56 }
 0x47b   :  { %v1792_v9 = vpop.eup %1791  ;;  %v1211_v8 = vadd.f32 1e-12, %v1209_v7 }
 0x47c   :  { %v1213_v10 = vmul.f32 %v1792_v9, %v1210_v4  ;;  %vm1219_vm4 = vweird.f32 %v1792_v9 }
 0x47d   :  { %1793 = vrsqrt.f32 %v1211_v8  ;;  %vm1220_vm6 = vmor %vm1218_vm5, %vm1219_vm4  ;;  %vm1228_vm8 = vweird.f32 %v1211_v8 }
 0x47e   :  { %v1214_v12 = vmul.f32 %v1792_v9, %v1213_v10 }
 0x480   :  { %v1215_v13 = vmul.f32 0.5, %v1214_v12 }
 0x482   :  { %v1216_v16 = vsub.f32 1.5, %v1215_v13 }
 0x483   :  { %v1794_v17 = vpop.eup %1793 }
 0x484   :  { %v1217_v14 = vmul.f32 %v1792_v9, %v1216_v16  ;;  %v1223_v15 = vmul.f32 %v1794_v17, %v1211_v8  ;;  %vm1229_vm7 = vweird.f32 %v1794_v17 }
 0x485   :  { %vm1230_vm9 = vmor %vm1228_vm8, %vm1229_vm7 }
 0x486   :  { %v1224_v20 = vmul.f32 %v1794_v17, %v1223_v15  ;;  %v1221_v21 = vsel %vm1220_vm6, %v1792_v9, %v1217_v14 }
 0x487   :  { %v1232_v22 = vmul.f32 %v1221_v21, %v1198_v59 }
 0x488   :  { %v1225_v23 = vmul.f32 0.5, %v1224_v20 }
 0x489   :  { %v1235_v30 = vmul.f32 %v1751_v26, %v1232_v22 }
 0x48a   :  { %v1226_v25 = vsub.f32 1.5, %v1225_v23 }
 0x48b   :  { %v1238_v32 = vadd.f32 %v1752_v29, %v1235_v30 }
 0x48c   :  { %v1227_v27 = vmul.f32 %v1794_v17, %v1226_v25 }
 0x48e   :  { %v1231_v28 = vsel %vm1230_vm9, %v1794_v17, %v1227_v27 }
 0x48f   :  { %v1233_v11 = vmul.f32 %v1231_v28, %v1199_v0 }
 0x491   :  { %v1236_v31 = vmul.f32 %v1751_v26, %v1233_v11 }
 0x493   :  { %v1239_v33 = vadd.f32 %v1752_v29, %v1236_v31 }
 0x495   :  { %v1240_v34 = vpack.c.bf16 %v1239_v33, %v1238_v32 }
 0x497   :  { %1659 = vmatmul.msk.bf16.vlgmr.msra.gmra.mxu0 %vm273_vm0, %v1240_v34 }
 0x514   :  { %v1270_v40 = vpop.f32.mrf.mxu0 }
 0x515   :  { %v1271_v41 = vadd.f32 %v1753_v39, %v1270_v40 }
 0x517   :  { %v1277_v42 = vmul.f32 0.044715, %v1271_v41  ;;  %v1275_v57 = vmul.f32 0.5, %v1271_v41 }
 0x519   :  { %v1279_v43 = vmul.f32 %v1277_v42, %v1271_v41 }
 0x51b   :  { %v1281_v44 = vmul.f32 %v1279_v43, %v1271_v41 }
 0x51c   :  { %v1272_v45 = vpop.f32.mrf.mxu0 }
 0x51d   :  { %v1283_v46 = vadd.f32 %v1281_v44, %v1271_v41  ;;  %v1273_v47 = vadd.f32 %v1753_v39, %v1272_v45 }
 0x51f   :  { %v1278_v48 = vmul.f32 0.044715, %v1273_v47  ;;  %v1285_v49 = vmul.f32 0.7978846, %v1283_v46  ;;  %v1276_v58 = vmul.f32 0.5, %v1273_v47 }
 0x521   :  { %v1280_v50 = vmul.f32 %v1278_v48, %v1273_v47  ;;  %1795 = vtanh.f32 %v1285_v49 }
 0x523   :  { %v1282_v51 = vmul.f32 %v1280_v50, %v1273_v47 }
 0x525   :  { %v1284_v52 = vadd.f32 %v1282_v51, %v1273_v47 }
 0x527   :  { %v1286_v53 = vmul.f32 0.7978846, %v1284_v52  ;;  %v1796_v54 = vpop.eup %1795 }
 0x528   :  { %v1289_v18 = vadd.f32 1.0, %v1796_v54 }
 0x529   :  { %1797 = vtanh.f32 %v1286_v53 }
 0x52a   :  { %v1291_v60 = vmul.f32 %v1289_v18, %v1275_v57 }
 0x52f   :  { %v1798_v55 = vpop.eup %1797 }
 0x530   :  { %v1290_v59 = vadd.f32 1.0, %v1798_v55 }
 0x532   :  { %v1292_v19 = vmul.f32 %v1290_v59, %v1276_v58 }
 0x534   :  { %v1293_v61 = vpack.c.bf16 %v1292_v19, %v1291_v60 }
 0x536   :  { %1676 = vmatmul.msk.bf16.vlgmr.msra.gmra.mxu1 %vm1327_vm10, %v1293_v61 }
 0x5b3   :  { %v1340_v0 = vpop.f32.mrf.mxu1 }
 0x5b4   :  { %v1341_v1 = vadd.f32 %v1754_v63, %v1340_v0 }
 0x5b6   :  { %v1345_v24 = vadd.f32 %v1341_v1, %v1238_v32 }
 0x5b8   :  { %v1347_v2 = vsel %vm273_vm0, %v1345_v24, 0.0 }
 0x5b9   :  { %1348 = vadd.xlane.f32.xlu2 %v1347_v2 }
 0x5bb   :  { %v1342_v62 = vpop.f32.mrf.mxu1 }
 0x5bc   :  { %v1343_v3 = vadd.f32 %v1754_v63, %v1342_v62 }
 0x5be   :  { %v1346_v4 = vadd.f32 %v1343_v3, %v1239_v33  ;;  %v1755_v33 = vld [vmem:[#allocation8 + $0x5] ss:$0 sm:$0xff] }
 0x5c0   :  { %v1350_v5 = vsel %vm273_vm0, %v1346_v4, 0.0 }
 0x5c1   :  { %1351 = vadd.xlane.f32.xlu0 %v1350_v5 }
 0x62c   :  { %v1349_v6 = vpop.xlane.xlu2 %1348 }
 0x62d   :  { %v1353_v7 = vmul.f32 %v1349_v6, %v2113_v56 }
 0x62f   :  { %v1355_v9 = vsub.f32 %v1345_v24, %v1353_v7 }
 0x631   :  { %v1357_v8 = vmul.f32 %v1355_v9, %v1355_v9 }
 0x633   :  { %v1359_v10 = vsel %vm273_vm0, %v1357_v8, 0.0 }
 0x634   :  { %v1352_v12 = vpop.xlane.xlu0 %1351  ;;  %1360 = vadd.xlane.f32.xlu1 %v1359_v10 }
 0x635   :  { %v1354_v13 = vmul.f32 %v1352_v12, %v2113_v56 }
 0x637   :  { %v1356_v16 = vsub.f32 %v1346_v4, %v1354_v13 }
 0x639   :  { %v1358_v17 = vmul.f32 %v1356_v16, %v1356_v16 }
 0x63b   :  { %v1362_v14 = vsel %vm273_vm0, %v1358_v17, 0.0 }
 0x63c   :  { %1363 = vadd.xlane.f32.xlu2 %v1362_v14 }
 0x6a7   :  { %v1361_v15 = vpop.xlane.xlu1 %1360 }
 0x6a8   :  { %v1365_v20 = vmul.f32 %v1361_v15, %v2113_v56 }
 0x6aa   :  { %v1367_v21 = vadd.f32 1e-12, %v1365_v20 }
 0x6ac   :  { %1799 = vrsqrt.f32 %v1367_v21  ;;  %vm1375_vm12 = vweird.f32 %v1367_v21 }
 0x6af   :  { %v1364_v23 = vpop.xlane.xlu2 %1363 }
 0x6b0   :  { %v1366_v25 = vmul.f32 %v1364_v23, %v2113_v56 }
 0x6b2   :  { %v1800_v26 = vpop.eup %1799  ;;  %v1368_v22 = vadd.f32 1e-12, %v1366_v25 }
 0x6b3   :  { %v1370_v27 = vmul.f32 %v1800_v26, %v1367_v21  ;;  %vm1376_vm11 = vweird.f32 %v1800_v26 }
 0x6b4   :  { %1801 = vrsqrt.f32 %v1368_v22  ;;  %vm1377_vm13 = vmor %vm1375_vm12, %vm1376_vm11  ;;  %vm1385_vm15 = vweird.f32 %v1368_v22 }
 0x6b5   :  { %v1371_v28 = vmul.f32 %v1800_v26, %v1370_v27 }
 0x6b7   :  { %v1372_v29 = vmul.f32 0.5, %v1371_v28 }
 0x6b9   :  { %v1373_v30 = vsub.f32 1.5, %v1372_v29 }
 0x6ba   :  { %v1802_v11 = vpop.eup %1801 }
 0x6bb   :  { %v1374_v31 = vmul.f32 %v1800_v26, %v1373_v30  ;;  %v1380_v32 = vmul.f32 %v1802_v11, %v1368_v22  ;;  %vm1386_vm14 = vweird.f32 %v1802_v11 }
 0x6bc   :  { %vm1387_vm1 = vmor %vm1385_vm15, %vm1386_vm14 }
 0x6bd   :  { %v1378_v34 = vsel %vm1377_vm13, %v1800_v26, %v1374_v31  ;;  %v1381_v35 = vmul.f32 %v1802_v11, %v1380_v32 }
 0x6be   :  { %v1389_v37 = vmul.f32 %v1378_v34, %v1355_v9 }
 0x6bf   :  { %v1382_v38 = vmul.f32 0.5, %v1381_v35 }
 0x6c0   :  { %v1392_v56 = vmul.f32 %v1755_v33, %v1389_v37 }
 0x6c1   :  { %v1383_v39 = vsub.f32 1.5, %v1382_v38 }
 0x6c2   :  { %v1395_v40 = vadd.f32 %v1756_v36, %v1392_v56 }
 0x6c3   :  { %v1384_v41 = vmul.f32 %v1802_v11, %v1383_v39 }
 0x6c4   :  { %1397 = vst.msk [vmem:[%s2152_s8] sm:$0xff] %vm273_vm0, %v1395_v40 }
 0x6c5   :  { %v1388_v42 = vsel %vm1387_vm1, %v1802_v11, %v1384_v41 }
 0x6c6   :  { %v1390_v43 = vmul.f32 %v1388_v42, %v1356_v16 }
 0x6c8   :  { %v1393_v44 = vmul.f32 %v1755_v33, %v1390_v43 }
 0x6ca   :  { %v1396_v45 = vadd.f32 %v1756_v36, %v1393_v44 }
 0x6cc   :  { %1398 = vst.msk [vmem:[%s2152_s8 + $0x8] sm:$0xff] %vm273_vm0, %v1396_v45 }
 0x6cd   :  { %1403 = vsyncpa [#allocation4], 1 }
 0x6ce   :  { %1404 = vsyncpa [#allocation6], 1 }
 0x6cf   :  { %1405 = vsyncpa [#allocation9], 1 }

// kernel: joint_bert_forward.6
= control target key start
LH: loop header
LB: loop body
LE: loop exit
PB: predicated region body
PF: predicated region fallthrough
CT: control target
= control target key end

     0   :  { %13 = vsyncpa [#allocation4], 0  ;;  %s2150_s0 = inlined_call_operand.vmem [shape: f32[16,32], index: 0, kind: input, shape index: {}]   ;;  %s2151_s1 = inlined_call_operand.vmem [shape: f32[2,1,8], index: 1, kind: input, shape index: {}]   ;;  %s2152_s2 = inlined_call_operand.hbm [shape: bf16[32,1536], index: 2, kind: input, shape index: {}]   ;;  %s2153_s3 = inlined_call_operand.vmem [shape: f32[1,1536], index: 3, kind: input, shape index: {}]   ;;  %s2154_s4 = inlined_call_operand.hbm [shape: bf16[512,32], index: 4, kind: input, shape index: {}]   ;;  %s2155_s5 = inlined_call_operand.hbm [shape: bf16[32,64], index: 5, kind: input, shape index: {}]   ;;  %s2156_s6 = inlined_call_operand.vmem [shape: bf16[64,32], index: 6, kind: input, shape index: {}]   ;;  %s2157_s7 = inlined_call_operand.hbm [shape: f32[8,64], index: 7, kind: input, shape index: {}]   ;;  %s2158_s8 = inlined_call_operand.vmem [shape: f32[16,32], index: 8, kind: output, shape index: {}]  }
   0x1   :  { %14 = vsyncpa [#allocation6], 0  ;;  %s39_s29 = sshll.u32 %s2154_s4, 4  ;;  %s40_s29 = int_to_ptr.hbm [resolvable:$true] %s39_s29 }
   0x2   :  { %15 = vsyncpa [#allocation9], 0  ;;  %s1905_s30 = smov [#allocation5]   ;;  %s24_s12 = sshll.u32 %s2152_s2, 4  ;;  %s25_s12 = int_to_ptr.hbm [resolvable:$true] %s24_s12 }
   0x3   :  { %s41_s9 = sshll.u32 %s1905_s30, 4  ;;  %s1906_s13 = smov 64   ;;  %s42_s9 = int_to_ptr.vmem [resolvable:$true] %s41_s9 }
   0x4   :  { %s1907_s14 = smov 4   ;;  %s1908_s15 = smov [#allocation3]  }
   0x5   :  { %47 = dma.hbm_to_vmem [thread:$0]  %s40_s29, 4096, %s42_s9, [#allocation6], %s1906_s13, %s1906_s13, %s1907_s14  }
   0x6   :  { %s26_s16 = sshll.u32 %s1908_s15, 4  ;;  %s1909_s17 = smov 768   ;;  %s27_s16 = int_to_ptr.vmem [resolvable:$true] %s26_s16 }
   0x7   :  { %s1910_s18 = smov 48   ;;  %s52_s20 = sshll.u32 %s2155_s5, 4  ;;  %s53_s20 = int_to_ptr.hbm [resolvable:$true] %s52_s20 }
   0x8   :  { %32 = dma.hbm_to_vmem [thread:$0]  %s25_s12, 3072, %s27_s16, [#allocation4], %s1909_s17, %s1909_s17, %s1910_s18  }
   0x9   :  { %s1911_s21 = smov [#allocation7]   ;;  %s68_s24 = sshll.u32 %s2157_s7, 4  ;;  %s69_s24 = int_to_ptr.hbm [resolvable:$true] %s68_s24 }
   0xa   :  { %s54_s22 = sshll.u32 %s1911_s21, 4  ;;  %s1912_s25 = smov [#allocation8]   ;;  %s55_s22 = int_to_ptr.vmem [resolvable:$true] %s54_s22 }
   0xb   :  { %60 = dma.hbm_to_vmem [thread:$0]  %s53_s20, 256, %s55_s22, [#allocation6], %s1906_s13, %s1906_s13, %s1907_s14  }
   0xc   :  { %s70_s26 = sshll.u32 %s1912_s25, 4  ;;  %s71_s26 = int_to_ptr.vmem [resolvable:$true] %s70_s26 }
   0xd   :  { %73 = dma.hbm_to_vmem [thread:$0]  %s69_s24, 128, %s71_s26, [#allocation9]  }
   0xe   :  { %1899 = dma.done.wait [#allocation4], 3072  }
   0xf   :  { %1900 = vsyncadd [#allocation4], 4294964224 }
  0x10   :  { %1901 = dma.done.wait [#allocation6], 4352  }
  0x11   :  { %1902 = vsyncadd [#allocation6], 4294962944 }
  0x12   :  { %1903 = dma.done.wait [#allocation9], 128  }
  0x13   :  { %1904 = vsyncadd [#allocation9], 4294967168  ;;  %v1456_v0 = vld [vmem:[#allocation3 + $0x60] sm:$0xf]  ;;  %v1695_v1 = vld [vmem:[#allocation3 + $0x8c] sm:$0xf0] }
  0x14   :  { %v1689_v2 = vld [vmem:[#allocation3 + $0x64] sm:$0xf]  ;;  %v1457_v3 = vor.u32 %v1695_v1, %v1456_v0  ;;  %v1458_v4 = vld [vmem:[#allocation3 + $0x90] sm:$0xf0]  ;;  %v1690_v5 = vld [vmem:[#allocation3 + $0x6c] sm:$0xf] }
  0x15   :  { %v1466_v6 = vld [vmem:[#allocation3 + $0x98] sm:$0xf0]  ;;  %v1461_v7 = vor.u32 %v1689_v2, %v1458_v4  ;;  %v1408_v9 = vld [vmem:[#allocation3] sm:$0xf]  ;;  %v1683_v10 = vld [vmem:[#allocation3 + $0x2c] sm:$0xf0] }
  0x16   :  { %v1469_v8 = vor.u32 %v1690_v5, %v1466_v6  ;;  %v1677_v11 = vld [vmem:[#allocation3 + $0x4] sm:$0xf]  ;;  %283 = vmatpush.bf16.msra.mxu0 %v1457_v3  ;;  %v1409_v12 = vor.u32 %v1683_v10, %v1408_v9  ;;  %v1410_v13 = vld [vmem:[#allocation3 + $0x30] sm:$0xf0]  ;;  %v1678_v14 = vld [vmem:[#allocation3 + $0xc] sm:$0xf] }
  0x17   :  { %v1418_v15 = vld [vmem:[#allocation3 + $0x38] sm:$0xf0]  ;;  %297 = vmatpush.bf16.msra.mxu1 %v1461_v7  ;;  %v1413_v16 = vor.u32 %v1677_v11, %v1410_v13  ;;  %v1974_v18 = vld [vmem:[%s2150_s0] sm:$0xff]  ;;  %v1979_v19 = vld [vmem:[%s2150_s0 + $0x8] sm:$0xff]  ;;  %vm273_vm0 = vcmask 261120   ;;  %vm483_vm1 = vcmask 1043456  }
  0x18   :  { %325 = vmatpush.bf16.msra.mxu3 %v1469_v8  ;;  %v1421_v17 = vor.u32 %v1678_v14, %v1418_v15  ;;  %v1464_v20 = vld [vmem:[#allocation3 + $0x68] sm:$0xf]  ;;  %v1696_v21 = vld [vmem:[#allocation3 + $0x94] sm:$0xf0]  ;;  %v1983_v24 = vpack.c.bf16 %v1979_v19, %v1974_v18  ;;  %v1472_v26 = vld [vmem:[#allocation3 + $0x70] sm:$0xf] }
  0x19   :  { %v1416_v22 = vld [vmem:[#allocation3 + $0x8] sm:$0xf]  ;;  %v1684_v23 = vld [vmem:[#allocation3 + $0x34] sm:$0xf0]  ;;  %v1465_v25 = vor.u32 %v1696_v21, %v1464_v20  ;;  %v1697_v27 = vld [vmem:[#allocation3 + $0x9c] sm:$0xf0] }
  0x1a   :  { %v1691_v28 = vld [vmem:[#allocation3 + $0x74] sm:$0xf]  ;;  %284 = vmatpush.bf16.msra.mxu0 %v1409_v12  ;;  %v1473_v29 = vor.u32 %v1697_v27, %v1472_v26  ;;  %v1474_v30 = vld [vmem:[#allocation3 + $0xa0] sm:$0xf0]  ;;  %v1692_v31 = vld [vmem:[#allocation3 + $0x7c] sm:$0xf]  ;;  %v1417_v38 = vor.u32 %v1684_v23, %v1416_v22 }
  0x1b   :  { %v1482_v32 = vld [vmem:[#allocation3 + $0xa8] sm:$0xf0]  ;;  %298 = vmatpush.bf16.msra.mxu1 %v1413_v16  ;;  %v1477_v33 = vor.u32 %v1691_v28, %v1474_v30  ;;  %v1424_v35 = vld [vmem:[#allocation3 + $0x10] sm:$0xf]  ;;  %v1685_v36 = vld [vmem:[#allocation3 + $0x3c] sm:$0xf0]  ;;  %311 = vmatpush.bf16.msra.mxu2 %v1465_v25 }
  0x1c   :  { %326 = vmatpush.bf16.msra.mxu3 %v1421_v17  ;;  %v1485_v34 = vor.u32 %v1692_v31, %v1482_v32  ;;  %v1679_v37 = vld [vmem:[#allocation3 + $0x14] sm:$0xf]  ;;  %v1425_v39 = vor.u32 %v1685_v36, %v1424_v35  ;;  %v1426_v40 = vld [vmem:[#allocation3 + $0x40] sm:$0xf0]  ;;  %v1680_v41 = vld [vmem:[#allocation3 + $0x1c] sm:$0xf] }
  0x1d   :  { %v1434_v42 = vld [vmem:[#allocation3 + $0x48] sm:$0xf0]  ;;  %1502 = vmatmul.msk.bf16.vlgmr.msra.gmra.mxu0 %vm273_vm0, %v1983_v24  ;;  %v1429_v43 = vor.u32 %v1679_v37, %v1426_v40  ;;  %v1480_v44 = vld [vmem:[#allocation3 + $0x78] sm:$0xf]  ;;  %v1698_v45 = vld [vmem:[#allocation3 + $0xa4] sm:$0xf0] }
  0x1e   :  { %339 = vmatpush.bf16.msrb.mxu0 %v1473_v29  ;;  %1503 = vmatmul.msk.bf16.vlgmr.msra.gmra.mxu1 %vm273_vm0, %v1983_v24  ;;  %v1481_v46 = vor.u32 %v1698_v45, %v1480_v44  ;;  %v1432_v47 = vld [vmem:[#allocation3 + $0x18] sm:$0xf]  ;;  %v1686_v48 = vld [vmem:[#allocation3 + $0x44] sm:$0xf0]  ;;  %v1437_v49 = vor.u32 %v1680_v41, %v1434_v42  ;;  %v1488_v57 = vld [vmem:[#allocation3 + $0x80] sm:$0xf] }
  0x1f   :  { %353 = vmatpush.bf16.msrb.mxu1 %v1477_v33  ;;  %1505 = vmatmul.msk.bf16.vlgmr.msra.gmra.mxu3 %vm273_vm0, %v1983_v24  ;;  %v1433_v50 = vor.u32 %v1686_v48, %v1432_v47  ;;  %v1496_v51 = vld [vmem:[#allocation3 + $0x88] sm:$0xf]  ;;  %v1700_v52 = vld [vmem:[#allocation3 + $0xb4] sm:$0xf0]  ;;  %v1699_v58 = vld [vmem:[#allocation3 + $0xac] sm:$0xf0] }
  0x20   :  { %381 = vmatpush.bf16.msrb.mxu3 %v1485_v34  ;;  %312 = vmatpush.bf16.msra.mxu2 %v1417_v38  ;;  %v1497_v53 = vor.u32 %v1700_v52, %v1496_v51  ;;  %v1448_v54 = vld [vmem:[#allocation3 + $0x28] sm:$0xf]  ;;  %v1688_v55 = vld [vmem:[#allocation3 + $0x54] sm:$0xf0]  ;;  %v1489_v59 = vor.u32 %v1699_v58, %v1488_v57  ;;  %v1440_v60 = vld [vmem:[#allocation3 + $0x20] sm:$0xf] }
  0x21   :  { %v1449_v56 = vor.u32 %v1688_v55, %v1448_v54  ;;  %v1687_v61 = vld [vmem:[#allocation3 + $0x4c] sm:$0xf0]  ;;  %v2008_v4 = vld [vmem:[%s2153_s3] sm:$0xff]  ;;  %vm466_vm2 = vcmask 64512   ;;  %vm1327_vm10 = vcmask 523264  }
  0x22   :  { %340 = vmatpush.bf16.msrb.mxu0 %v1425_v39  ;;  %v1441_v62 = vor.u32 %v1687_v61, %v1440_v60  ;;  %v133_v6 = vperm.slane %v2008_v4, 4  ;;  %v134_v7 = vperm.slane %v2008_v4, 5  ;;  %v129_v12 = vperm.slane %v2008_v4, 0  ;;  %v1490_v60 = vld [vmem:[#allocation3 + $0xb0] sm:$0xf0] }
  0x23   :  { %354 = vmatpush.bf16.msrb.mxu1 %v1429_v43  ;;  %1504 = vmatmul.msk.bf16.vlgmr.msra.gmra.mxu2 %vm273_vm0, %v1983_v24  ;;  %v130_v14 = vperm.slane %v2008_v4, 1  ;;  %v136_v20 = vperm.slane %v2008_v4, 7  ;;  %v135_v28 = vperm.slane %v2008_v4, 6  ;;  %v131_v39 = vperm.slane %v2008_v4, 2 }
  0x24   :  { %367 = vmatpush.bf16.msrb.mxu2 %v1481_v46  ;;  %382 = vmatpush.bf16.msrb.mxu3 %v1437_v49  ;;  %v132_v40 = vperm.slane %v2008_v4, 3 }
  0x26   :  { %395 = vmatpush.bf16.msra.mxu0 %v1489_v59  ;;  %v1693_v59 = vld [vmem:[#allocation3 + $0x84] sm:$0xf] }
  0x27   :  { %v1493_v61 = vor.u32 %v1693_v59, %v1490_v60 }
  0x28   :  { %368 = vmatpush.bf16.msrb.mxu2 %v1433_v50 }
  0x29   :  { %409 = vmatpush.bf16.msra.mxu1 %v1493_v61 }
  0x2a   :  { %396 = vmatpush.bf16.msra.mxu0 %v1441_v62  ;;  %v2021_v62 = vld [vmem:[%s2153_s3 + $0x8] sm:$0xf] }
  0x2c   :  { %423 = vmatpush.bf16.msra.mxu2 %v1497_v53 }
  0x2d   :  { %1506 = vmatmul.msk.bf16.vlgmr.msrb.gmra.mxu0 %vm273_vm0, %v1983_v24 }
  0x2e   :  { %1507 = vmatmul.msk.bf16.vlgmr.msrb.gmra.mxu1 %vm273_vm0, %v1983_v24 }
  0x2f   :  { %1509 = vmatmul.msk.bf16.vlgmr.msrb.gmra.mxu3 %vm273_vm0, %v1983_v24 }
  0x30   :  { %424 = vmatpush.bf16.msra.mxu2 %v1449_v56 }
  0x33   :  { %1508 = vmatmul.msk.bf16.vlgmr.msrb.gmra.mxu2 %vm273_vm0, %v1983_v24 }
  0x3d   :  { %1510 = vmatmul.msk.bf16.vlgmr.msra.gmra.mxu0 %vm273_vm0, %v1983_v24 }
  0x43   :  { %1512 = vmatmul.msk.bf16.vlgmr.msra.gmra.mxu2 %vm273_vm0, %v1983_v24 }
  0x9a   :  { %v286_v63 = vpop.f32.mrf.mxu0 }
  0x9b   :  { %v300_v0 = vpop.f32.mrf.mxu1  ;;  %v287_v21 = vadd.f32 %v286_v63, %v129_v12  ;;  %v137_v63 = vperm.slane %v2021_v62, 0 }
  0x9c   :  { %v301_v22 = vadd.f32 %v300_v0, %v130_v14  ;;  %v139_v0 = vperm.slane %v2021_v62, 2 }
  0x9d   :  { %v446_v29 = vpack.c.bf16 %v287_v21, %v287_v21 }
  0x9e   :  { %v501_v33 = vpack.c.bf16 %v301_v22, %v301_v22  ;;  %v1748_v22 = vld [vmem:[%s2151_s1] ss:$0 sm:$0xff] }
  0xa2   :  { %v328_v1 = vpop.f32.mrf.mxu3  ;;  %v288_v2 = vpop.f32.mrf.mxu0 }
  0xa3   :  { %v302_v3 = vpop.f32.mrf.mxu1  ;;  %v329_v45 = vadd.f32 %v328_v1, %v132_v40  ;;  %v289_v51 = vadd.f32 %v288_v2, %v129_v12 }
  0xa4   :  { %v303_v52 = vadd.f32 %v302_v3, %v130_v14 }
  0xa5   :  { %v601_v49 = vpack.c.bf16 %v329_v45, %v329_v45  ;;  %v653_v53 = vpack.c.bf16 %v289_v51, %v289_v51 }
  0xa6   :  { %v314_v5 = vpop.f32.mrf.mxu2  ;;  %v706_v54 = vpack.c.bf16 %v303_v52, %v303_v52 }
  0xa7   :  { %v315_v44 = vadd.f32 %v314_v5, %v131_v39 }
  0xa9   :  { %v551_v48 = vpack.c.bf16 %v315_v44, %v315_v44  ;;  %v1450_v44 = vld [vmem:[#allocation3 + $0x58] sm:$0xf0] }
  0xaa   :  { %v330_v8 = vpop.f32.mrf.mxu3  ;;  %v342_v9 = vpop.f32.mrf.mxu0 }
  0xab   :  { %v343_v10 = vadd.f32 %v342_v9, %v133_v6  ;;  %v356_v11 = vpop.f32.mrf.mxu1  ;;  %v331_v56 = vadd.f32 %v330_v8, %v132_v40  ;;  %v1681_v8 = vld [vmem:[#allocation3 + $0x24] sm:$0xf]  ;;  %v1442_v9 = vld [vmem:[#allocation3 + $0x50] sm:$0xf0]  ;;  %v1682_v40 = vld [vmem:[#allocation3 + $0x2c] sm:$0xf] }
  0xac   :  { %v357_v13 = vadd.f32 %v356_v11, %v134_v7  ;;  %v1445_v12 = vor.u32 %v1681_v8, %v1442_v9  ;;  %v1453_v45 = vor.u32 %v1682_v40, %v1450_v44 }
  0xad   :  { %v447_v15 = vpack.c.bf16 %v343_v10, %v343_v10  ;;  %v806_v58 = vpack.c.bf16 %v331_v56, %v331_v56 }
  0xae   :  { %v502_v16 = vpack.c.bf16 %v357_v13, %v357_v13  ;;  %v316_v17 = vpop.f32.mrf.mxu2  ;;  %410 = vmatpush.bf16.msra.mxu1 %v1445_v12 }
  0xaf   :  { %455 = vmatpush.bf16.xpose.msrb.mxu0 %v447_v15  ;;  %v317_v55 = vadd.f32 %v316_v17, %v131_v39  ;;  %v1498_v39 = vld [vmem:[#allocation3 + $0xb8] sm:$0xf0] }
  0xb0   :  { %510 = vmatpush.bf16.xpose.msrb.mxu2 %v502_v16 }
  0xb1   :  { %v756_v57 = vpack.c.bf16 %v317_v55, %v317_v55  ;;  %1511 = vmatmul.msk.bf16.vlgmr.msra.gmra.mxu1 %vm273_vm0, %v1983_v24 }
  0xb2   :  { %v384_v23 = vpop.f32.mrf.mxu3  ;;  %v344_v26 = vpop.f32.mrf.mxu0 }
  0xb3   :  { %v385_v25 = vadd.f32 %v384_v23, %v136_v20  ;;  %v358_v27 = vpop.f32.mrf.mxu1  ;;  %v345_v32 = vadd.f32 %v344_v26, %v133_v6 }
  0xb4   :  { %v359_v31 = vadd.f32 %v358_v27, %v134_v7 }
  0xb5   :  { %v602_v30 = vpack.c.bf16 %v385_v25, %v385_v25  ;;  %v654_v37 = vpack.c.bf16 %v345_v32, %v345_v32 }
  0xb6   :  { %v707_v34 = vpack.c.bf16 %v359_v31, %v359_v31  ;;  %456 = vmatmul.bf16.vlgmr.msrb.gmra.mxu0 %v446_v29  ;;  %v370_v35 = vpop.f32.mrf.mxu2 }
  0xb7   :  { %511 = vmatmul.bf16.vlgmr.msrb.gmra.mxu2 %v501_v33  ;;  %v371_v36 = vadd.f32 %v370_v35, %v135_v28 }
  0xb8   :  { %610 = vmatpush.bf16.xpose.msra.mxu2 %v602_v30 }
  0xb9   :  { %v552_v38 = vpack.c.bf16 %v371_v36, %v371_v36 }
  0xba   :  { %v386_v42 = vpop.f32.mrf.mxu3  ;;  %v398_v2 = vpop.f32.mrf.mxu0 }
  0xbb   :  { %560 = vmatpush.bf16.xpose.msra.mxu0 %v552_v38  ;;  %v387_v46 = vadd.f32 %v386_v42, %v136_v20  ;;  %v399_v3 = vadd.f32 %v398_v2, %v137_v63  ;;  %v1694_v38 = vld [vmem:[#allocation3 + $0x8c] sm:$0xf] }
  0xbd   :  { %v807_v50 = vpack.c.bf16 %v387_v46, %v387_v46  ;;  %v479_v5 = vpack.c.bf16 %v399_v3, %v399_v3 }
  0xbe   :  { %v372_v41 = vpop.f32.mrf.mxu2 }
  0xbf   :  { %v373_v43 = vadd.f32 %v372_v41, %v135_v28  ;;  %v485_v10 = vsel %vm483_vm1, %v479_v5, 0 }
  0xc0   :  { %715 = vmatpush.bf16.xpose.msrb.mxu2 %v707_v34  ;;  %494 = vmatpush.bf16.msrb.mxu1 %v485_v10 }
  0xc1   :  { %v757_v47 = vpack.c.bf16 %v373_v43, %v373_v43  ;;  %v1501_v43 = vor.u32 %v1694_v38, %v1498_v39 }
  0xc2   :  { %v400_v13 = vpop.f32.mrf.mxu0 }
  0xc3   :  { %662 = vmatpush.bf16.xpose.msrb.mxu0 %v654_v37  ;;  %v2028_v14 = vadd.f32 %v400_v13, %v137_v63  ;;  %437 = vmatpush.bf16.msra.mxu3 %v1501_v43 }
  0xc6   :  { %561 = vmatmul.bf16.vlgmr.msra.gmra.mxu0 %v551_v48  ;;  %v426_v1 = vpop.f32.mrf.mxu2 }
  0xc7   :  { %611 = vmatmul.bf16.vlgmr.msra.gmra.mxu2 %v601_v49  ;;  %v427_v4 = vadd.f32 %v426_v1, %v139_v0  ;;  %438 = vmatpush.bf16.msra.mxu3 %v1453_v45 }
  0xc8   :  { %815 = vmatpush.bf16.xpose.msra.mxu2 %v807_v50  ;;  %v1749_v50 = vld [vmem:[%s2151_s1 + $0x1] ss:$0 sm:$0xff] }
  0xc9   :  { %v580_v6 = vpack.c.bf16 %v427_v4, %v427_v4 }
  0xca   :  { %1513 = vmatmul.msk.bf16.vlgmr.msra.gmra.mxu3 %vm273_vm0, %v1983_v24 }
  0xcb   :  { %765 = vmatpush.bf16.xpose.msra.mxu0 %v757_v47  ;;  %v585_v15 = vsel %vm483_vm1, %v580_v6, 0 }
  0xcc   :  { %594 = vmatpush.bf16.msra.mxu1 %v585_v15 }
  0xce   :  { %v428_v7 = vpop.f32.mrf.mxu2 }
  0xcf   :  { %v2026_v11 = vadd.f32 %v428_v7, %v139_v0 }
  0xd6   :  { %663 = vmatmul.bf16.vlgmr.msrb.gmra.mxu0 %v653_v53 }
  0xd7   :  { %716 = vmatmul.bf16.vlgmr.msrb.gmra.mxu2 %v706_v54 }
  0xe6   :  { %766 = vmatmul.bf16.vlgmr.msra.gmra.mxu0 %v756_v57 }
  0xe7   :  { %816 = vmatmul.bf16.vlgmr.msra.gmra.mxu2 %v806_v58 }
 0x133   :  { %v457_v16 = vpop.f32.mrf.mxu0 }
 0x134   :  { %v461_v25 = vmul.f32 0.35355338, %v457_v16 }
 0x136   :  { %v465_v29 = vadd.f32 %v1748_v22, %v461_v25 }
 0x138   :  { %v467_v30 = vsel %vm466_vm2, %v465_v29, -inf }
 0x13a   :  { %v512_v17 = vpop.f32.mrf.mxu2 }
 0x13b   :  { %v516_v20 = vmul.f32 0.35355338, %v512_v17  ;;  %v459_v21 = vpop.f32.mrf.mxu0 }
 0x13d   :  { %v517_v23 = vadd.f32 %v1748_v22, %v516_v20 }
 0x13f   :  { %v518_v26 = vsel %vm466_vm2, %v517_v23, -inf }
 0x140   :  { %519 = vmax.xlane.f32.xlu0 %v518_v26  ;;  %v138_v26 = vperm.slane %v2021_v62, 1 }
 0x142   :  { %v514_v27 = vpop.f32.mrf.mxu2 }
 0x143   :  { %v562_v28 = vpop.f32.mrf.mxu0  ;;  %v412_v27 = vpop.f32.mrf.mxu1 }
 0x144   :  { %v566_v35 = vmul.f32 0.35355338, %v562_v28 }
 0x146   :  { %v567_v42 = vadd.f32 %v1748_v22, %v566_v35 }
 0x148   :  { %468 = vmax.xlane.f32.xlu0 %v467_v30  ;;  %v568_v46 = vsel %vm466_vm2, %v567_v42, -inf }
 0x14a   :  { %v612_v31 = vpop.f32.mrf.mxu2 }
 0x14b   :  { %v616_v32 = vmul.f32 0.35355338, %v612_v31  ;;  %v564_v33 = vpop.f32.mrf.mxu0 }
 0x14d   :  { %v617_v34 = vadd.f32 %v1748_v22, %v616_v32 }
 0x14f   :  { %v618_v36 = vsel %vm466_vm2, %v617_v34, -inf }
 0x150   :  { %619 = vmax.xlane.f32.xlu1 %v618_v36 }
 0x152   :  { %v614_v37 = vpop.f32.mrf.mxu2 }
 0x153   :  { %v664_v41 = vpop.f32.mrf.mxu0 }
 0x154   :  { %v668_v52 = vmul.f32 0.35355338, %v664_v41 }
 0x156   :  { %v672_v56 = vadd.f32 %v1749_v50, %v668_v52 }
 0x158   :  { %569 = vmax.xlane.f32.xlu1 %v568_v46  ;;  %v673_v58 = vsel %vm466_vm2, %v672_v56, -inf }
 0x15a   :  { %v717_v47 = vpop.f32.mrf.mxu2 }
 0x15b   :  { %v721_v48 = vmul.f32 0.35355338, %v717_v47  ;;  %v666_v49 = vpop.f32.mrf.mxu0 }
 0x15d   :  { %v722_v51 = vadd.f32 %v1749_v50, %v721_v48 }
 0x15f   :  { %v723_v53 = vsel %vm466_vm2, %v722_v51, -inf }
 0x160   :  { %724 = vmax.xlane.f32.xlu2 %v723_v53  ;;  %v140_v53 = vperm.slane %v2021_v62, 3 }
 0x162   :  { %v719_v54 = vpop.f32.mrf.mxu2 }
 0x163   :  { %v767_v55 = vpop.f32.mrf.mxu0  ;;  %v440_v54 = vpop.f32.mrf.mxu3 }
 0x164   :  { %v771_v57 = vmul.f32 0.35355338, %v767_v55  ;;  %v441_v55 = vadd.f32 %v440_v54, %v140_v53  ;;  %v1703_v54 = vld [vmem:[#allocation5 + $0x10] sm:$0xff] }
 0x166   :  { %v772_v63 = vadd.f32 %v1749_v50, %v771_v57 }
 0x168   :  { %674 = vmax.xlane.f32.xlu2 %v673_v58  ;;  %v773_v24 = vsel %vm466_vm2, %v772_v63, -inf  ;;  %v414_v58 = vpop.f32.mrf.mxu1 }
 0x16a   :  { %v817_v59 = vpop.f32.mrf.mxu2 }
 0x16b   :  { %v821_v60 = vmul.f32 0.35355338, %v817_v59  ;;  %v769_v61 = vpop.f32.mrf.mxu0 }
 0x16d   :  { %v822_v0 = vadd.f32 %v1749_v50, %v821_v60  ;;  %v415_v60 = vadd.f32 %v414_v58, %v138_v26  ;;  %v1702_v58 = vld [vmem:[#allocation5 + $0x8] sm:$0xff] }
 0x16f   :  { %v823_v1 = vsel %vm466_vm2, %v822_v0, -inf  ;;  %v735_v61 = vpack.c.bf16 %v415_v60, %v415_v60  ;;  %v1709_v60 = vld [vmem:[#allocation5 + $0x40] sm:$0xff] }
 0x170   :  { %824 = vmax.xlane.f32.xlu0 %v823_v1  ;;  %774 = vmax.xlane.f32.xlu2 %v773_v24 }
 0x172   :  { %v819_v2 = vpop.f32.mrf.mxu2 }
 0x173   :  { %v740_v2 = vsel %vm483_vm1, %v735_v61, 0  ;;  %v1729_v61 = vld [vmem:[#allocation5 + $0xe0] sm:$0xff] }
 0x1b3   :  { %v520_v3 = vpop.xlane.xlu0 %519 }
 0x1b4   :  { %v521_v4 = vsub.f32 %v517_v23, %v520_v3  ;;  %v442_v3 = vpop.f32.mrf.mxu3 }
 0x1b6   :  { %v522_v5 = vmul.f32 1.442695, %v521_v4  ;;  %v685_v4 = vpack.c.bf16 %v2028_v14, %v2028_v14 }
 0x1b8   :  { %1757 = vpow2.f32 %v522_v5 }
 0x1bb   :  { %v469_v6 = vpop.xlane.xlu0 %468 }
 0x1bc   :  { %v470_v7 = vsub.f32 %v465_v29, %v469_v6  ;;  %v413_v29 = vadd.f32 %v412_v27, %v138_v26 }
 0x1be   :  { %v2049_v8 = vpop.eup %1757  ;;  %v471_v9 = vmul.f32 1.442695, %v470_v7  ;;  %v530_v31 = vpack.c.bf16 %v413_v29, %v413_v29 }
 0x1bf   :  { %v524_v10 = vsel %vm466_vm2, %v2049_v8, 0.0 }
 0x1c0   :  { %1759 = vpow2.f32 %v471_v9  ;;  %525 = vadd.xlane.f32.xlu1 %v524_v10  ;;  %v535_v35 = vsel %vm483_vm1, %v530_v31, 0  ;;  %v443_v9 = vadd.f32 %v442_v3, %v140_v53  ;;  %v1731_v53 = vld [vmem:[#allocation5 + $0xf0] sm:$0xff] }
 0x1c1   :  { %544 = vmatpush.bf16.msrb.mxu3 %v535_v35  ;;  %v1727_v3 = vld [vmem:[#allocation5 + $0xd0] sm:$0xff] }
 0x1c2   :  { %v835_v10 = vpack.c.bf16 %v443_v9, %v443_v9  ;;  %v1718_v9 = vld [vmem:[#allocation5 + $0x88] sm:$0xff] }
 0x1c3   :  { %v620_v12 = vpop.xlane.xlu1 %619 }
 0x1c4   :  { %v621_v13 = vsub.f32 %v617_v34, %v620_v12  ;;  %v840_v14 = vsel %vm483_vm1, %v835_v10, 0 }
 0x1c6   :  { %v2053_v15 = vpop.eup %1759  ;;  %v622_v16 = vmul.f32 1.442695, %v621_v13 }
 0x1c7   :  { %v473_v17 = vsel %vm466_vm2, %v2053_v15, 0.0 }
 0x1c8   :  { %1761 = vpow2.f32 %v622_v16  ;;  %474 = vadd.xlane.f32.xlu0 %v473_v17 }
 0x1cb   :  { %v570_v20 = vpop.xlane.xlu1 %569 }
 0x1cc   :  { %v571_v21 = vsub.f32 %v567_v42, %v570_v20  ;;  %v785_v20 = vpack.c.bf16 %v2026_v11, %v2026_v11 }
 0x1ce   :  { %v2057_v22 = vpop.eup %1761  ;;  %v572_v23 = vmul.f32 1.442695, %v571_v21  ;;  %v790_v26 = vsel %vm483_vm1, %v785_v20, 0 }
 0x1cf   :  { %v624_v25 = vsel %vm466_vm2, %v2057_v22, 0.0 }
 0x1d0   :  { %1763 = vpow2.f32 %v572_v23  ;;  %625 = vadd.xlane.f32.xlu1 %v624_v25 }
 0x1d3   :  { %v725_v28 = vpop.xlane.xlu2 %724 }
 0x1d4   :  { %v726_v30 = vsub.f32 %v722_v51, %v725_v28 }
 0x1d6   :  { %v2062_v32 = vpop.eup %1763  ;;  %v727_v33 = vmul.f32 1.442695, %v726_v30 }
 0x1d7   :  { %v574_v34 = vsel %vm466_vm2, %v2062_v32, 0.0 }
 0x1d8   :  { %1765 = vpow2.f32 %v727_v33  ;;  %575 = vadd.xlane.f32.xlu2 %v574_v34 }
 0x1db   :  { %v675_v36 = vpop.xlane.xlu2 %674 }
 0x1dc   :  { %v676_v37 = vsub.f32 %v672_v56, %v675_v36  ;;  %v630_v56 = vpack.c.bf16 %v441_v55, %v441_v55  ;;  %v1723_v55 = vld [vmem:[#allocation5 + $0xb0] sm:$0xff] }
 0x1de   :  { %v2067_v38 = vpop.eup %1765  ;;  %v677_v39 = vmul.f32 1.442695, %v676_v37  ;;  %v635_v57 = vsel %vm483_vm1, %v630_v56, 0  ;;  %v1710_v56 = vld [vmem:[#allocation5 + $0x48] sm:$0xff] }
 0x1df   :  { %v729_v40 = vsel %vm466_vm2, %v2067_v38, 0.0  ;;  %644 = vmatpush.bf16.msra.mxu3 %v635_v57  ;;  %v1730_v57 = vld [vmem:[#allocation5 + $0xe8] sm:$0xff] }
 0x1e0   :  { %1767 = vpow2.f32 %v677_v39  ;;  %730 = vadd.xlane.f32.xlu0 %v729_v40  ;;  %v1716_v40 = vld [vmem:[#allocation5 + $0x78] sm:$0xff] }
 0x1e3   :  { %v825_v41 = vpop.xlane.xlu0 %824  ;;  %v775_v42 = vpop.xlane.xlu2 %774 }
 0x1e4   :  { %v826_v43 = vsub.f32 %v822_v0, %v825_v41  ;;  %v776_v44 = vsub.f32 %v772_v63, %v775_v42  ;;  %v1708_v41 = vld [vmem:[#allocation5 + $0x38] sm:$0xff]  ;;  %v1715_v42 = vld [vmem:[#allocation5 + $0x70] sm:$0xff] }
 0x1e5   :  { %1125 = vmatpush.bf16.msrb.mxu0 %v1708_v41 }
 0x1e6   :  { %v2071_v45 = vpop.eup %1767  ;;  %v827_v46 = vmul.f32 1.442695, %v826_v43  ;;  %v777_v47 = vmul.f32 1.442695, %v776_v44  ;;  %v1707_v43 = vld [vmem:[#allocation5 + $0x30] sm:$0xff]  ;;  %v1714_v44 = vld [vmem:[#allocation5 + $0x68] sm:$0xff] }
 0x1e7   :  { %v679_v48 = vsel %vm466_vm2, %v2071_v45, 0.0 }
 0x1e8   :  { %1769 = vpow2.f32 %v827_v46  ;;  %680 = vadd.xlane.f32.xlu1 %v679_v48  ;;  %v1713_v46 = vld [vmem:[#allocation5 + $0x60] sm:$0xff]  ;;  %v1712_v48 = vld [vmem:[#allocation5 + $0x58] sm:$0xff] }
 0x1e9   :  { %1771 = vpow2.f32 %v777_v47  ;;  %1126 = vmatpush.bf16.msrb.mxu0 %v1707_v43  ;;  %v1705_v47 = vld [vmem:[#allocation5 + $0x20] sm:$0xff] }
 0x1ee   :  { %v2075_v49 = vpop.eup %1769 }
 0x1ef   :  { %v2077_v50 = vpop.eup %1771  ;;  %v829_v51 = vsel %vm466_vm2, %v2075_v49, 0.0 }
 0x1f0   :  { %830 = vadd.xlane.f32.xlu2 %v829_v51  ;;  %v779_v52 = vsel %vm466_vm2, %v2077_v50, 0.0  ;;  %v1724_v51 = vld [vmem:[#allocation5 + $0xb8] sm:$0xff] }
 0x1f1   :  { %780 = vadd.xlane.f32.xlu0 %v779_v52  ;;  %1153 = vmatpush.bf16.msrb.mxu2 %v1724_v51  ;;  %v1711_v52 = vld [vmem:[#allocation5 + $0x50] sm:$0xff]  ;;  %v1913_v51 = vmov 32.0  }
 0x1f5   :  { %1154 = vmatpush.bf16.msrb.mxu2 %v1723_v55 }
 0x233   :  { %v526_v59 = vpop.xlane.xlu1 %525 }
 0x234   :  { %1773 = vrcp.f32 %v526_v59  ;;  %v1722_v59 = vld [vmem:[#allocation5 + $0xa8] sm:$0xff] }
 0x235   :  { %1155 = vmatpush.bf16.msrb.mxu2 %v1722_v59 }
 0x23a   :  { %v1774_v63 = vpop.eup %1773 }
 0x23b   :  { %v528_v0 = vmul.f32 %v1774_v63, %v2049_v8  ;;  %v475_v1 = vpop.xlane.xlu0 %474  ;;  %v690_v8 = vsel %vm483_vm1, %v685_v4, 0 }
 0x23c   :  { %1775 = vrcp.f32 %v475_v1  ;;  %v1721_v1 = vld [vmem:[#allocation5 + $0xa0] sm:$0xff] }
 0x23d   :  { %v529_v24 = vpack.c.bf16 %v528_v0, %v528_v0  ;;  %v1701_v0 = vld [vmem:[#allocation5] sm:$0xff]  ;;  %1156 = vmatpush.bf16.msrb.mxu2 %v1721_v1 }
 0x23f   :  { %1515 = vmatmul.msk.bf16.vlgmr.msrb.gmra.mxu3 %vm466_vm2, %v529_v24 }
 0x240   :  { %749 = vmatpush.bf16.msrb.mxu3 %v740_v2  ;;  %v1728_v2 = vld [vmem:[#allocation5 + $0xd8] sm:$0xff] }
 0x242   :  { %v1776_v62 = vpop.eup %1775 }
 0x243   :  { %v477_v5 = vmul.f32 %v1776_v62, %v2053_v15  ;;  %v626_v6 = vpop.xlane.xlu1 %625  ;;  %v1720_v62 = vld [vmem:[#allocation5 + $0x98] sm:$0xff] }
 0x244   :  { %1777 = vrcp.f32 %v626_v6  ;;  %1157 = vmatpush.bf16.msrb.mxu2 %v1720_v62 }
 0x245   :  { %v478_v7 = vpack.c.bf16 %v477_v5, %v477_v5  ;;  %v1719_v5 = vld [vmem:[#allocation5 + $0x90] sm:$0xff] }
 0x247   :  { %1514 = vmatmul.msk.bf16.vlgmr.msrb.gmra.mxu1 %vm466_vm2, %v478_v7  ;;  %v1726_v7 = vld [vmem:[#allocation5 + $0xc8] sm:$0xff] }
 0x248   :  { %699 = vmatpush.bf16.msrb.mxu1 %v690_v8  ;;  %1158 = vmatpush.bf16.msrb.mxu2 %v1719_v5  ;;  %v1725_v8 = vld [vmem:[#allocation5 + $0xc0] sm:$0xff] }
 0x249   :  { %v1733_v5 = vld [vmem:[#allocation7] sm:$0xff] }
 0x24a   :  { %v1778_v12 = vpop.eup %1777 }
 0x24b   :  { %v628_v13 = vmul.f32 %v1778_v12, %v2057_v22  ;;  %v576_v16 = vpop.xlane.xlu2 %575  ;;  %v1717_v12 = vld [vmem:[#allocation5 + $0x80] sm:$0xff] }
 0x24c   :  { %1779 = vrcp.f32 %v576_v16  ;;  %1159 = vmatpush.bf16.msrb.mxu2 %v1718_v9 }
 0x24d   :  { %v629_v17 = vpack.c.bf16 %v628_v13, %v628_v13 }
 0x24f   :  { %1517 = vmatmul.msk.bf16.vlgmr.msra.gmra.mxu3 %vm466_vm2, %v629_v17 }
 0x250   :  { %849 = vmatpush.bf16.msra.mxu3 %v840_v14  ;;  %1160 = vmatpush.bf16.msrb.mxu2 %v1717_v12 }
 0x252   :  { %v1780_v15 = vpop.eup %1779 }
 0x253   :  { %v578_v21 = vmul.f32 %v1780_v15, %v2062_v32  ;;  %v731_v23 = vpop.xlane.xlu0 %730 }
 0x254   :  { %1781 = vrcp.f32 %v731_v23 }
 0x255   :  { %v579_v25 = vpack.c.bf16 %v578_v21, %v578_v21 }
 0x257   :  { %1516 = vmatmul.msk.bf16.vlgmr.msra.gmra.mxu1 %vm466_vm2, %v579_v25 }
 0x258   :  { %799 = vmatpush.bf16.msra.mxu1 %v790_v26 }
 0x25a   :  { %v1782_v22 = vpop.eup %1781 }
 0x25b   :  { %v733_v27 = vmul.f32 %v1782_v22, %v2067_v38  ;;  %v681_v28 = vpop.xlane.xlu1 %680 }
 0x25c   :  { %1783 = vrcp.f32 %v681_v28 }
 0x25d   :  { %v734_v29 = vpack.c.bf16 %v733_v27, %v733_v27 }
 0x25f   :  { %1520 = vmatmul.msk.bf16.vlgmr.msrb.gmra.mxu3 %vm466_vm2, %v734_v29 }
 0x262   :  { %v1784_v30 = vpop.eup %1783 }
 0x263   :  { %v683_v11 = vmul.f32 %v1784_v30, %v2071_v45  ;;  %v831_v31 = vpop.xlane.xlu2 %830  ;;  %v1706_v45 = vld [vmem:[#allocation5 + $0x28] sm:$0xff] }
 0x264   :  { %1785 = vrcp.f32 %v831_v31  ;;  %v781_v33 = vpop.xlane.xlu0 %780  ;;  %1127 = vmatpush.bf16.msrb.mxu0 %v1706_v45  ;;  %v1750_v31 = vld [vmem:[#allocation8] ss:$0 sm:$0xff] }
 0x265   :  { %v684_v32 = vpack.c.bf16 %v683_v11, %v683_v11  ;;  %1787 = vrcp.f32 %v781_v33 }
 0x266   :  { %1789 = vrcp.f32 %v1913_v51 }
 0x267   :  { %1519 = vmatmul.msk.bf16.vlgmr.msrb.gmra.mxu1 %vm466_vm2, %v684_v32 }
 0x268   :  { %1139 = vmatpush.bf16.msrb.mxu1 %v1716_v40  ;;  %1128 = vmatpush.bf16.msrb.mxu0 %v1705_v47 }
 0x26a   :  { %v1786_v34 = vpop.eup %1785 }
 0x26b   :  { %v833_v35 = vmul.f32 %v1786_v34, %v2075_v49  ;;  %v1788_v37 = vpop.eup %1787  ;;  %v1732_v49 = vld [vmem:[#allocation5 + $0xf8] sm:$0xff] }
 0x26c   :  { %v783_v38 = vmul.f32 %v1788_v37, %v2077_v50  ;;  %1140 = vmatpush.bf16.msrb.mxu1 %v1715_v42  ;;  %v1704_v50 = vld [vmem:[#allocation5 + $0x18] sm:$0xff]  ;;  %1167 = vmatpush.bf16.msrb.mxu3 %v1732_v49 }
 0x26d   :  { %v834_v36 = vpack.c.bf16 %v833_v35, %v833_v35  ;;  %1129 = vmatpush.bf16.msrb.mxu0 %v1704_v50 }
 0x26e   :  { %v784_v39 = vpack.c.bf16 %v783_v38, %v783_v38 }
 0x26f   :  { %1522 = vmatmul.msk.bf16.vlgmr.msra.gmra.mxu3 %vm466_vm2, %v834_v36 }
 0x270   :  { %1141 = vmatpush.bf16.msrb.mxu1 %v1714_v44  ;;  %1168 = vmatpush.bf16.msrb.mxu3 %v1731_v53 }
 0x271   :  { %1130 = vmatpush.bf16.msrb.mxu0 %v1703_v54 }
 0x274   :  { %1142 = vmatpush.bf16.msrb.mxu1 %v1713_v46  ;;  %1169 = vmatpush.bf16.msrb.mxu3 %v1730_v57 }
 0x275   :  { %1131 = vmatpush.bf16.msrb.mxu0 %v1702_v58 }
 0x277   :  { %1521 = vmatmul.msk.bf16.vlgmr.msra.gmra.mxu1 %vm466_vm2, %v784_v39 }
 0x278   :  { %1143 = vmatpush.bf16.msrb.mxu1 %v1712_v48  ;;  %1170 = vmatpush.bf16.msrb.mxu3 %v1729_v61 }
 0x279   :  { %1132 = vmatpush.bf16.msrb.mxu0 %v1701_v0 }
 0x27c   :  { %1144 = vmatpush.bf16.msrb.mxu1 %v1711_v52  ;;  %1171 = vmatpush.bf16.msrb.mxu3 %v1728_v2  ;;  %v1790_v52 = vpop.eup %1789  ;;  %v1734_v2 = vld [vmem:[#allocation7 + $0x8] sm:$0xff] }
 0x27d   :  { %v1190_v53 = vmul.f32 32.0, %v1790_v52  ;;  %vm1194_vm3 = vweird.f32 %v1790_v52  ;;  %1267 = vmatpush.bf16.msra.mxu0 %v1734_v2 }
 0x27f   :  { %v1191_v54 = vsub.f32 1.0, %v1190_v53 }
 0x280   :  { %1145 = vmatpush.bf16.msrb.mxu1 %v1710_v56  ;;  %1172 = vmatpush.bf16.msrb.mxu3 %v1727_v3 }
 0x281   :  { %1268 = vmatpush.bf16.msra.mxu0 %v1733_v5 }
 0x284   :  { %1146 = vmatpush.bf16.msrb.mxu1 %v1709_v60  ;;  %1173 = vmatpush.bf16.msrb.mxu3 %v1726_v7 }
 0x288   :  { %1174 = vmatpush.bf16.msrb.mxu3 %v1725_v8 }
 0x2c2   :  { %v546_v63 = vpop.f32.mrf.mxu3 }
 0x2c4   :  { %v496_v24 = vpop.f32.mrf.mxu1 }
 0x2ca   :  { %v548_v4 = vpop.f32.mrf.mxu3 }
 0x2cc   :  { %v498_v6 = vpop.f32.mrf.mxu1 }
 0x2d2   :  { %v646_v10 = vpop.f32.mrf.mxu3 }
 0x2d4   :  { %v596_v13 = vpop.f32.mrf.mxu1 }
 0x2da   :  { %v648_v16 = vpop.f32.mrf.mxu3 }
 0x2dc   :  { %v598_v17 = vpop.f32.mrf.mxu1 }
 0x2e2   :  { %v751_v14 = vpop.f32.mrf.mxu3 }
 0x2e3   :  { %v865_v15 = vpack.c.bf16 %v751_v14, %v546_v63 }
 0x2e4   :  { %v701_v20 = vpop.f32.mrf.mxu1 }
 0x2e5   :  { %v864_v21 = vpack.c.bf16 %v701_v20, %v496_v24  ;;  %1147 = vmatmul.bf16.vlgmr.msrb.gmra.mxu1 %v865_v15 }
 0x2e7   :  { %1133 = vmatmul.bf16.vlgmr.msrb.gmra.mxu0 %v864_v21 }
 0x2ea   :  { %v753_v23 = vpop.f32.mrf.mxu3 }
 0x2ec   :  { %v703_v25 = vpop.f32.mrf.mxu1 }
 0x2f2   :  { %v851_v26 = vpop.f32.mrf.mxu3 }
 0x2f3   :  { %v867_v22 = vpack.c.bf16 %v851_v26, %v646_v10  ;;  %v1751_v26 = vld [vmem:[#allocation8 + $0x3] ss:$0 sm:$0xff] }
 0x2f4   :  { %v801_v27 = vpop.f32.mrf.mxu1 }
 0x2f5   :  { %v866_v28 = vpack.c.bf16 %v801_v27, %v596_v13  ;;  %1175 = vmatmul.bf16.vlgmr.msrb.gmra.mxu3 %v867_v22 }
 0x2f7   :  { %1161 = vmatmul.bf16.vlgmr.msrb.gmra.mxu2 %v866_v28 }
 0x2fa   :  { %v853_v29 = vpop.f32.mrf.mxu3 }
 0x2fb   :  { %v1752_v29 = vld [vmem:[#allocation8 + $0x4] ss:$0 sm:$0xff] }
 0x2fc   :  { %v803_v30 = vpop.f32.mrf.mxu1 }
 0x362   :  { %v1148_v33 = vpop.f32.mrf.mxu1 }
 0x364   :  { %v1134_v11 = vpop.f32.mrf.mxu0 }
 0x365   :  { %v1135_v32 = vadd.f32 %v1750_v31, %v1134_v11 }
 0x367   :  { %v1149_v35 = vadd.f32 %v1148_v33, %v1135_v32 }
 0x36a   :  { %v1150_v42 = vpop.f32.mrf.mxu1 }
 0x36c   :  { %v1136_v34 = vpop.f32.mrf.mxu0 }
 0x36d   :  { %v1137_v39 = vadd.f32 %v1750_v31, %v1136_v34 }
 0x36f   :  { %v1151_v43 = vadd.f32 %v1150_v42, %v1137_v39  ;;  %v1753_v39 = vld [vmem:[#allocation8 + $0x1] ss:$0 sm:$0xff] }
 0x378   :  { %v1176_v36 = vpop.f32.mrf.mxu3 }
 0x37a   :  { %v1162_v37 = vpop.f32.mrf.mxu2 }
 0x37b   :  { %v1163_v38 = vadd.f32 %v1162_v37, %v1149_v35  ;;  %v1738_v35 = vld [vmem:[%s2156_s6 + $0x18] sm:$0xff]  ;;  %v1736_v37 = vld [vmem:[%s2156_s6 + $0x8] sm:$0xff] }
 0x37c   :  { %1335 = vmatpush.bf16.msra.mxu1 %v1738_v35 }
 0x37d   :  { %v1177_v40 = vadd.f32 %v1176_v36, %v1163_v38  ;;  %v1737_v36 = vld [vmem:[%s2156_s6 + $0x10] sm:$0xff]  ;;  %v1735_v38 = vld [vmem:[%s2156_s6] sm:$0xff] }
 0x37f   :  { %v1181_v41 = vadd.f32 %v1177_v40, %v1974_v18  ;;  %v1192_v18 = vmul.f32 %v1790_v52, %v1191_v54 }
 0x380   :  { %v1178_v47 = vpop.f32.mrf.mxu3  ;;  %1336 = vmatpush.bf16.msra.mxu1 %v1737_v36  ;;  %v1756_v36 = vld [vmem:[#allocation8 + $0x6] ss:$0 sm:$0xff] }
 0x381   :  { %v1183_v44 = vsel %vm273_vm0, %v1181_v41, 0.0  ;;  %v1193_v55 = vadd.f32 %v1790_v52, %v1192_v18 }
 0x382   :  { %v1164_v45 = vpop.f32.mrf.mxu2  ;;  %1184 = vadd.xlane.f32.xlu1 %v1183_v44 }
 0x383   :  { %v1165_v46 = vadd.f32 %v1164_v45, %v1151_v43  ;;  %v2113_v56 = vsel %vm1194_vm3, %v1790_v52, %v1193_v55 }
 0x384   :  { %1337 = vmatpush.bf16.msra.mxu1 %v1736_v37 }
 0x385   :  { %v1179_v48 = vadd.f32 %v1178_v47, %v1165_v46 }
 0x387   :  { %v1182_v49 = vadd.f32 %v1179_v48, %v1979_v19 }
 0x388   :  { %1338 = vmatpush.bf16.msra.mxu1 %v1735_v38 }
 0x389   :  { %v1186_v50 = vsel %vm273_vm0, %v1182_v49, 0.0 }
 0x38a   :  { %1187 = vadd.xlane.f32.xlu2 %v1186_v50 }
 0x3f5   :  { %v1185_v57 = vpop.xlane.xlu1 %1184 }
 0x3f6   :  { %v1196_v58 = vmul.f32 %v2113_v56, %v1185_v57 }
 0x3f8   :  { %v1198_v59 = vsub.f32 %v1181_v41, %v1196_v58 }
 0x3fa   :  { %v1200_v60 = vmul.f32 %v1198_v59, %v1198_v59 }
 0x3fc   :  { %v1202_v19 = vsel %vm273_vm0, %v1200_v60, 0.0 }
 0x3fd   :  { %v1188_v61 = vpop.xlane.xlu2 %1187  ;;  %1203 = vadd.xlane.f32.xlu0 %v1202_v19 }
 0x3fe   :  { %v1197_v63 = vmul.f32 %v2113_v56, %v1188_v61 }
 0x400   :  { %v1199_v0 = vsub.f32 %v1182_v49, %v1197_v63  ;;  %v1754_v63 = vld [vmem:[#allocation8 + $0x2] ss:$0 sm:$0xff] }
 0x402   :  { %v1201_v1 = vmul.f32 %v1199_v0, %v1199_v0 }
 0x404   :  { %v1205_v24 = vsel %vm273_vm0, %v1201_v1, 0.0 }
 0x405   :  { %1206 = vadd.xlane.f32.xlu1 %v1205_v24 }
 0x470   :  { %v1204_v62 = vpop.xlane.xlu0 %1203 }
 0x471   :  { %v1208_v3 = vmul.f32 %v1204_v62, %v2113_v56 }
 0x473   :  { %v1210_v4 = vadd.f32 1e-12, %v1208_v3 }
 0x475   :  { %1791 = vrsqrt.f32 %v1210_v4  ;;  %vm1218_vm5 = vweird.f32 %v1210_v4 }
 0x478   :  { %v1207_v6 = vpop.xlane.xlu1 %1206 }
 0x479   :  { %v1209_v7 = vmul.f32 %v1207_v6, %v2113_v56 }
 0x47b   :  { %v1792_v9 = vpop.eup %1791  ;;  %v1211_v8 = vadd.f32 1e-12, %v1209_v7 }
 0x47c   :  { %v1213_v10 = vmul.f32 %v1792_v9, %v1210_v4  ;;  %vm1219_vm4 = vweird.f32 %v1792_v9 }
 0x47d   :  { %1793 = vrsqrt.f32 %v1211_v8  ;;  %vm1220_vm6 = vmor %vm1218_vm5, %vm1219_vm4  ;;  %vm1228_vm8 = vweird.f32 %v1211_v8 }
 0x47e   :  { %v1214_v12 = vmul.f32 %v1792_v9, %v1213_v10 }
 0x480   :  { %v1215_v13 = vmul.f32 0.5, %v1214_v12 }
 0x482   :  { %v1216_v16 = vsub.f32 1.5, %v1215_v13 }
 0x483   :  { %v1794_v17 = vpop.eup %1793 }
 0x484   :  { %v1217_v14 = vmul.f32 %v1792_v9, %v1216_v16  ;;  %v1223_v15 = vmul.f32 %v1794_v17, %v1211_v8  ;;  %vm1229_vm7 = vweird.f32 %v1794_v17 }
 0x485   :  { %vm1230_vm9 = vmor %vm1228_vm8, %vm1229_vm7 }
 0x486   :  { %v1224_v20 = vmul.f32 %v1794_v17, %v1223_v15  ;;  %v1221_v21 = vsel %vm1220_vm6, %v1792_v9, %v1217_v14 }
 0x487   :  { %v1232_v22 = vmul.f32 %v1221_v21, %v1198_v59 }
 0x488   :  { %v1225_v23 = vmul.f32 0.5, %v1224_v20 }
 0x489   :  { %v1235_v30 = vmul.f32 %v1751_v26, %v1232_v22 }
 0x48a   :  { %v1226_v25 = vsub.f32 1.5, %v1225_v23 }
 0x48b   :  { %v1238_v32 = vadd.f32 %v1752_v29, %v1235_v30 }
 0x48c   :  { %v1227_v27 = vmul.f32 %v1794_v17, %v1226_v25 }
 0x48e   :  { %v1231_v28 = vsel %vm1230_vm9, %v1794_v17, %v1227_v27 }
 0x48f   :  { %v1233_v11 = vmul.f32 %v1231_v28, %v1199_v0 }
 0x491   :  { %v1236_v31 = vmul.f32 %v1751_v26, %v1233_v11 }
 0x493   :  { %v1239_v33 = vadd.f32 %v1752_v29, %v1236_v31 }
 0x495   :  { %v1240_v34 = vpack.c.bf16 %v1239_v33, %v1238_v32 }
 0x497   :  { %1659 = vmatmul.msk.bf16.vlgmr.msra.gmra.mxu0 %vm273_vm0, %v1240_v34 }
 0x514   :  { %v1270_v40 = vpop.f32.mrf.mxu0 }
 0x515   :  { %v1271_v41 = vadd.f32 %v1753_v39, %v1270_v40 }
 0x517   :  { %v1277_v42 = vmul.f32 0.044715, %v1271_v41  ;;  %v1275_v57 = vmul.f32 0.5, %v1271_v41 }
 0x519   :  { %v1279_v43 = vmul.f32 %v1277_v42, %v1271_v41 }
 0x51b   :  { %v1281_v44 = vmul.f32 %v1279_v43, %v1271_v41 }
 0x51c   :  { %v1272_v45 = vpop.f32.mrf.mxu0 }
 0x51d   :  { %v1283_v46 = vadd.f32 %v1281_v44, %v1271_v41  ;;  %v1273_v47 = vadd.f32 %v1753_v39, %v1272_v45 }
 0x51f   :  { %v1278_v48 = vmul.f32 0.044715, %v1273_v47  ;;  %v1285_v49 = vmul.f32 0.7978846, %v1283_v46  ;;  %v1276_v58 = vmul.f32 0.5, %v1273_v47 }
 0x521   :  { %v1280_v50 = vmul.f32 %v1278_v48, %v1273_v47  ;;  %1795 = vtanh.f32 %v1285_v49 }
 0x523   :  { %v1282_v51 = vmul.f32 %v1280_v50, %v1273_v47 }
 0x525   :  { %v1284_v52 = vadd.f32 %v1282_v51, %v1273_v47 }
 0x527   :  { %v1286_v53 = vmul.f32 0.7978846, %v1284_v52  ;;  %v1796_v54 = vpop.eup %1795 }
 0x528   :  { %v1289_v18 = vadd.f32 1.0, %v1796_v54 }
 0x529   :  { %1797 = vtanh.f32 %v1286_v53 }
 0x52a   :  { %v1291_v60 = vmul.f32 %v1289_v18, %v1275_v57 }
 0x52f   :  { %v1798_v55 = vpop.eup %1797 }
 0x530   :  { %v1290_v59 = vadd.f32 1.0, %v1798_v55 }
 0x532   :  { %v1292_v19 = vmul.f32 %v1290_v59, %v1276_v58 }
 0x534   :  { %v1293_v61 = vpack.c.bf16 %v1292_v19, %v1291_v60 }
 0x536   :  { %1676 = vmatmul.msk.bf16.vlgmr.msra.gmra.mxu1 %vm1327_vm10, %v1293_v61 }
 0x5b3   :  { %v1340_v0 = vpop.f32.mrf.mxu1 }
 0x5b4   :  { %v1341_v1 = vadd.f32 %v1754_v63, %v1340_v0 }
 0x5b6   :  { %v1345_v24 = vadd.f32 %v1341_v1, %v1238_v32 }
 0x5b8   :  { %v1347_v2 = vsel %vm273_vm0, %v1345_v24, 0.0 }
 0x5b9   :  { %1348 = vadd.xlane.f32.xlu2 %v1347_v2 }
 0x5bb   :  { %v1342_v62 = vpop.f32.mrf.mxu1 }
 0x5bc   :  { %v1343_v3 = vadd.f32 %v1754_v63, %v1342_v62 }
 0x5be   :  { %v1346_v4 = vadd.f32 %v1343_v3, %v1239_v33  ;;  %v1755_v33 = vld [vmem:[#allocation8 + $0x5] ss:$0 sm:$0xff] }
 0x5c0   :  { %v1350_v5 = vsel %vm273_vm0, %v1346_v4, 0.0 }
 0x5c1   :  { %1351 = vadd.xlane.f32.xlu0 %v1350_v5 }
 0x62c   :  { %v1349_v6 = vpop.xlane.xlu2 %1348 }
 0x62d   :  { %v1353_v7 = vmul.f32 %v1349_v6, %v2113_v56 }
 0x62f   :  { %v1355_v9 = vsub.f32 %v1345_v24, %v1353_v7 }
 0x631   :  { %v1357_v8 = vmul.f32 %v1355_v9, %v1355_v9 }
 0x633   :  { %v1359_v10 = vsel %vm273_vm0, %v1357_v8, 0.0 }
 0x634   :  { %v1352_v12 = vpop.xlane.xlu0 %1351  ;;  %1360 = vadd.xlane.f32.xlu1 %v1359_v10 }
 0x635   :  { %v1354_v13 = vmul.f32 %v1352_v12, %v2113_v56 }
 0x637   :  { %v1356_v16 = vsub.f32 %v1346_v4, %v1354_v13 }
 0x639   :  { %v1358_v17 = vmul.f32 %v1356_v16, %v1356_v16 }
 0x63b   :  { %v1362_v14 = vsel %vm273_vm0, %v1358_v17, 0.0 }
 0x63c   :  { %1363 = vadd.xlane.f32.xlu2 %v1362_v14 }
 0x6a7   :  { %v1361_v15 = vpop.xlane.xlu1 %1360 }
 0x6a8   :  { %v1365_v20 = vmul.f32 %v1361_v15, %v2113_v56 }
 0x6aa   :  { %v1367_v21 = vadd.f32 1e-12, %v1365_v20 }
 0x6ac   :  { %1799 = vrsqrt.f32 %v1367_v21  ;;  %vm1375_vm12 = vweird.f32 %v1367_v21 }
 0x6af   :  { %v1364_v23 = vpop.xlane.xlu2 %1363 }
 0x6b0   :  { %v1366_v25 = vmul.f32 %v1364_v23, %v2113_v56 }
 0x6b2   :  { %v1800_v26 = vpop.eup %1799  ;;  %v1368_v22 = vadd.f32 1e-12, %v1366_v25 }
 0x6b3   :  { %v1370_v27 = vmul.f32 %v1800_v26, %v1367_v21  ;;  %vm1376_vm11 = vweird.f32 %v1800_v26 }
 0x6b4   :  { %1801 = vrsqrt.f32 %v1368_v22  ;;  %vm1377_vm13 = vmor %vm1375_vm12, %vm1376_vm11  ;;  %vm1385_vm15 = vweird.f32 %v1368_v22 }
 0x6b5   :  { %v1371_v28 = vmul.f32 %v1800_v26, %v1370_v27 }
 0x6b7   :  { %v1372_v29 = vmul.f32 0.5, %v1371_v28 }
 0x6b9   :  { %v1373_v30 = vsub.f32 1.5, %v1372_v29 }
 0x6ba   :  { %v1802_v11 = vpop.eup %1801 }
 0x6bb   :  { %v1374_v31 = vmul.f32 %v1800_v26, %v1373_v30  ;;  %v1380_v32 = vmul.f32 %v1802_v11, %v1368_v22  ;;  %vm1386_vm14 = vweird.f32 %v1802_v11 }
 0x6bc   :  { %vm1387_vm1 = vmor %vm1385_vm15, %vm1386_vm14 }
 0x6bd   :  { %v1378_v34 = vsel %vm1377_vm13, %v1800_v26, %v1374_v31  ;;  %v1381_v35 = vmul.f32 %v1802_v11, %v1380_v32 }
 0x6be   :  { %v1389_v37 = vmul.f32 %v1378_v34, %v1355_v9 }
 0x6bf   :  { %v1382_v38 = vmul.f32 0.5, %v1381_v35 }
 0x6c0   :  { %v1392_v56 = vmul.f32 %v1755_v33, %v1389_v37 }
 0x6c1   :  { %v1383_v39 = vsub.f32 1.5, %v1382_v38 }
 0x6c2   :  { %v1395_v40 = vadd.f32 %v1756_v36, %v1392_v56 }
 0x6c3   :  { %v1384_v41 = vmul.f32 %v1802_v11, %v1383_v39 }
 0x6c4   :  { %1397 = vst.msk [vmem:[%s2158_s8] sm:$0xff] %vm273_vm0, %v1395_v40 }
 0x6c5   :  { %v1388_v42 = vsel %vm1387_vm1, %v1802_v11, %v1384_v41 }
 0x6c6   :  { %v1390_v43 = vmul.f32 %v1388_v42, %v1356_v16 }
 0x6c8   :  { %v1393_v44 = vmul.f32 %v1755_v33, %v1390_v43 }
 0x6ca   :  { %v1396_v45 = vadd.f32 %v1756_v36, %v1393_v44 }
 0x6cc   :  { %1398 = vst.msk [vmem:[%s2158_s8 + $0x8] sm:$0xff] %vm273_vm0, %v1396_v45 }
 0x6cd   :  { %1403 = vsyncpa [#allocation4], 1 }
 0x6ce   :  { %1404 = vsyncpa [#allocation6], 1 }
 0x6cf   :  { %1405 = vsyncpa [#allocation9], 1 }

</bundles_post_ra>
